<compile_context>
chip_gen: v5e
topology: v5e:2x2
jax: 0.10.0
libtpu: 0.0.40
codegen_flags: <defaults>
</compile_context>

<pallas_src>
import functools

import jax
import jax.numpy as jnp
from jax import lax
from jax.experimental import pallas as pl
from jax.experimental.pallas import tpu as pltpu

EPS = 1e-5
DIL = 2          # dilation / spatial padding of both convs
LANE = 128       # pad channels to a multiple of the TPU lane width


def _round_up(x, m):
    return (x + m - 1) // m * m


def _vmem_capacity():
    try:
        return int(pltpu.get_tpu_info().vmem_capacity_bytes)
    except Exception:
        return 64 * 1024 * 1024   # conservative (v7x per-core VMEM)


def _pick_row_tile(h, w, cin_p, cout_p, budget_bytes):
    """Largest divisor of H whose per-step working set fits the VMEM budget."""
    row_len = w + 2 * DIL
    for th in range(h, 0, -1):
        if h % th:
            continue
        m2 = th * row_len
        slab = (th + 2 * DIL) * row_len + 8
        need = (slab * cin_p * 2            # input slab scratch (bf16)
                + slab * cin_p * 4          # headroom for in-place pre-op / relayouts
                + 3 * m2 * cout_p * 4       # f32 accumulator + double-buffered output
                + 4 * 9 * cin_p * cout_p)   # resident bf16 weights (x2 buffers)
        if m2 <= 4096 and need <= budget_bytes:
            return th
    return 1


# ---------------------------------------------------------------------------
# Kernel 1: (optional ReLU) -> 3x3 dilated conv as 9 shifted GEMMs -> +bias
#           -> per-tile BatchNorm partial statistics (sum, sum of squares)
# ---------------------------------------------------------------------------
def _conv_stage_kernel(th, wimg, apply_relu,
                       x_hbm, w_ref, b_ref, mask_ref,
                       y_ref, stats_ref,
                       xbuf, sem):
    row_len = wimg + 2 * DIL
    m2 = th * row_len                       # flat output rows of this tile (incl. garbage cols)
    slab = (th + 2 * DIL) * row_len         # flat input rows needed (tile + dilated halo)
    cout_p = w_ref.shape[2]

    b = pl.program_id(0)
    t = pl.program_id(1)

    # Rows past the slab are only read when producing discarded (garbage) output columns;
    # zero them so they stay finite/deterministic.
    xbuf[slab:slab + 8, :] = jnp.zeros((8, xbuf.shape[1]), xbuf.dtype)

    # Manual halo DMA: overlapping row windows are not expressible with a plain BlockSpec.
    r0 = t * m2
    if m2 % 8 == 0:
        r0 = pl.multiple_of(r0, 8)
    dma = pltpu.make_async_copy(x_hbm.at[b, pl.ds(r0, slab)],
                                xbuf.at[pl.ds(0, slab)], sem)
    dma.start()
    dma.wait()
    # TODO(synk): double-buffer this DMA (prefetch tile t+1) to overlap HBM with the MXU.

    if apply_relu:                          # applied once to the slab (commutes with zero pad)
        xbuf[...] = jnp.maximum(xbuf[...], 0)

    # 3x3 dilated conv as 9 shifted bf16 GEMMs accumulated in f32 (conv-as-GEMM, no im2col).
    acc = jnp.zeros((m2, cout_p), jnp.float32)
    for ky in range(3):
        for kx in range(3):
            shift = DIL * ky * row_len + DIL * kx
            acc = acc + jnp.dot(xbuf[shift:shift + m2, :], w_ref[3 * ky + kx],
                                preferred_element_type=jnp.float32)

    y = (acc + b_ref[...]) * mask_ref[...]  # + bias; zero the 2*DIL garbage columns per row
    # Per-tile BatchNorm partial statistics; the (tiny) global finalize happens outside.
    s1 = jnp.sum(y, axis=0, keepdims=True)
    s2 = jnp.sum(y * y, axis=0, keepdims=True)
    stats_ref[0, 0, :, :] = jnp.concatenate([s1, s2], axis=0)
    y_ref[...] = y[None].astype(y_ref.dtype)


def _conv_bn_stats(x_flat, w_taps, bias, col_mask, *, th, wimg,
                   apply_relu, out_dtype, vmem_limit):
    n, flat_rows, cin_p = x_flat.shape
    row_len = wimg + 2 * DIL
    h = flat_rows // row_len - 2 * DIL
    t = h // th
    m2 = th * row_len
    slab = (th + 2 * DIL) * row_len
    cout_p = w_taps.shape[-1]

    kernel = functools.partial(_conv_stage_kernel, th, wimg, apply_relu)
    out_bytes = jnp.dtype(out_dtype).itemsize
    cost = pl.CostEstimate(
        flops=2 * n * t * m2 * 9 * cin_p * cout_p,
        transcendentals=0,
        bytes_accessed=int(x_flat.size * x_flat.dtype.itemsize
                           + w_taps.size * w_taps.dtype.itemsize
                           + n * t * m2 * cout_p * out_bytes))

    y, stats = pl.pallas_call(
        kernel,
        grid=(n, t),
        in_specs=[
            pl.BlockSpec(memory_space=pl.ANY),                          # activations stay in HBM
            pl.BlockSpec((9, cin_p, cout_p), lambda i, j: (0, 0, 0)),   # resident per-tap weights
            pl.BlockSpec((1, cout_p), lambda i, j: (0, 0)),             # resident bias
            pl.BlockSpec((m2, 1), lambda i, j: (0, 0)),                 # resident column mask
        ],
        out_specs=[
            pl.BlockSpec((1, m2, cout_p), lambda i, j: (i, j, 0)),
            pl.BlockSpec((1, 1, 2, cout_p), lambda i, j: (i, j, 0, 0)),
        ],
        out_shape=[
            jax.ShapeDtypeStruct((n, t * m2, cout_p), out_dtype),
            jax.ShapeDtypeStruct((n, t, 2, cout_p), jnp.float32),
        ],
        scratch_shapes=[
            pltpu.VMEM((slab + 8, cin_p), x_flat.dtype),
            pltpu.SemaphoreType.DMA,
        ],
        compiler_params=pltpu.CompilerParams(
            dimension_semantics=("parallel", "parallel"),
            vmem_limit_bytes=vmem_limit),
        cost_estimate=cost,
    )(x_flat, w_taps, bias, col_mask)
    return y, stats


# ---------------------------------------------------------------------------
# Kernel 2: BatchNorm affine apply  y * scale + shift  (lane-dense, tiled)
# ---------------------------------------------------------------------------
def _affine_kernel(y_ref, scale_ref, shift_ref, o_ref):
    o_ref[...] = (y_ref[...].astype(jnp.float32) * scale_ref[...]
                  + shift_ref[...]).astype(o_ref.dtype)


def _bn_apply(y_flat, scale, shift, *, m2, out_dtype):
    n, mtot, cp = y_flat.shape
    t = mtot // m2
    return pl.pallas_call(
        _affine_kernel,
        grid=(n, t),
        in_specs=[pl.BlockSpec((1, m2, cp), lambda i, j: (i, j, 0)),
                  pl.BlockSpec((1, cp), lambda i, j: (0, 0)),
                  pl.BlockSpec((1, cp), lambda i, j: (0, 0))],
        out_specs=pl.BlockSpec((1, m2, cp), lambda i, j: (i, j, 0)),
        out_shape=jax.ShapeDtypeStruct((n, mtot, cp), out_dtype),
        compiler_params=pltpu.CompilerParams(
            dimension_semantics=("parallel", "parallel")),
    )(y_flat, scale, shift)


# ---------------------------------------------------------------------------
# Glue: parameter packing, flat layout helpers, BN finalize (tiny per-channel math)
# ---------------------------------------------------------------------------
def _prep_weight(w_oihw, cin_p, cout_p):
    """PyTorch (Cout, Cin, 3, 3) -> (9, Cin_p, Cout_p) bf16 per-tap matrices."""
    co, ci, kh, kw = w_oihw.shape
    w_t = jnp.transpose(w_oihw.astype(jnp.float32), (2, 3, 1, 0)).reshape(kh * kw, ci, co)
    w_full = jnp.zeros((kh * kw, cin_p, cout_p), jnp.float32).at[:, :ci, :co].set(w_t)
    return w_full.astype(jnp.bfloat16)


def _pad_vec(v, cp):
    return jnp.zeros((cp,), jnp.float32).at[:v.shape[0]].set(v.astype(jnp.float32))


def _col_mask(th, wimg):
    row_len = wimg + 2 * DIL
    col = jnp.arange(th * row_len, dtype=jnp.int32) % row_len
    return (col < wimg).astype(jnp.float32).reshape(th * row_len, 1)


def _bn_scale_shift(stats, gamma_p, beta_p, count):
    s1 = jnp.sum(stats[:, :, 0, :], axis=(0, 1))
    s2 = jnp.sum(stats[:, :, 1, :], axis=(0, 1))
    mean = s1 / count
    var = jnp.maximum(s2 / count - mean * mean, 0.0)   # biased variance (PyTorch training BN)
    scale = gamma_p * lax.rsqrt(var + EPS)
    shift = beta_p - mean * scale
    return scale, shift


# ---------------------------------------------------------------------------
# DilatedBlock forward
# ---------------------------------------------------------------------------
def dilated_block(x_nchw, params, *, row_tile=None):
    n, cin, h, w = x_nchw.shape
    cmid = params["w1"].shape[0]
    cout = params["w2"].shape[0]
    cin_p = _round_up(cin, LANE)
    cmid_p = _round_up(cmid, LANE)
    cout_p = _round_up(cout, LANE)
    row_len = w + 2 * DIL

    vmem_cap = _vmem_capacity()
    th = row_tile if row_tile is not None else _pick_row_tile(
        h, w, max(cin_p, cmid_p), max(cmid_p, cout_p), vmem_cap // 4)
    assert h % th == 0, "row tile must divide H"
    vmem_limit = min(vmem_cap * 3 // 4, 96 * 1024 * 1024)

    m2 = th * row_len
    mask = _col_mask(th, w)
    count = n * h * w

    # ---- stage 1: ReLU -> dilated conv1 (+ batch stats) -> BN1 affine ----
    x_nhwc = jnp.transpose(x_nchw, (0, 2, 3, 1)).astype(jnp.float32)
    x1 = jnp.pad(x_nhwc, ((0, 0), (DIL, DIL), (DIL, DIL), (0, cin_p - cin)))
    x1 = x1.reshape(n, (h + 2 * DIL) * row_len, cin_p).astype(jnp.bfloat16)

    w1 = _prep_weight(params["w1"], cin_p, cmid_p)
    b1 = _pad_vec(params["b1"], cmid_p).reshape(1, cmid_p)
    y1, st1 = _conv_bn_stats(x1, w1, b1, mask, th=th, wimg=w,
                             apply_relu=True, out_dtype=jnp.bfloat16,
                             vmem_limit=vmem_limit)
    scale1, shift1 = _bn_scale_shift(st1, _pad_vec(params["g1"], cmid_p),
                                     _pad_vec(params["be1"], cmid_p), count)
    h1 = _bn_apply(y1, scale1.reshape(1, cmid_p), shift1.reshape(1, cmid_p),
                   m2=m2, out_dtype=jnp.bfloat16)

    # re-layout only (pure data movement): drop garbage columns, re-pad spatially for conv2
    h1_img = h1.reshape(n, h, row_len, cmid_p)[:, :, :w, :]
    x2 = jnp.pad(h1_img, ((0, 0), (DIL, DIL), (DIL, DIL), (0, 0)))
    x2 = x2.reshape(n, (h + 2 * DIL) * row_len, cmid_p)
    # TODO(synk): fuse both conv stages in one pallas_call (keep h1 in VMEM) once a 3-phase
    # in-kernel schedule around the global BN statistics is worth the complexity.

    # ---- stage 2: dilated conv2 (+ batch stats) -> BN2 affine ----
    w2 = _prep_weight(params["w2"], cmid_p, cout_p)
    b2 = _pad_vec(params["b2"], cout_p).reshape(1, cout_p)
    y2, st2 = _conv_bn_stats(x2, w2, b2, mask, th=th, wimg=w,
                             apply_relu=False, out_dtype=jnp.float32,
                             vmem_limit=vmem_limit)
    scale2, shift2 = _bn_scale_shift(st2, _pad_vec(params["g2"], cout_p),
                                     _pad_vec(params["be2"], cout_p), count)
    out_flat = _bn_apply(y2, scale2.reshape(1, cout_p), shift2.reshape(1, cout_p),
                         m2=m2, out_dtype=jnp.float32)

    out = out_flat.reshape(n, h, row_len, cout_p)[:, :, :w, :cout]
    return jnp.transpose(out, (0, 3, 1, 2))   # back to NCHW


# ---------------------------------------------------------------------------
# Pure-JAX reference (for correctness check)
# ---------------------------------------------------------------------------
def _bn_train(y_nchw, gamma, beta):
    mean = y_nchw.mean(axis=(0, 2, 3), keepdims=True)
    var = ((y_nchw - mean) ** 2).mean(axis=(0, 2, 3), keepdims=True)
    return gamma[None, :, None, None] * (y_nchw - mean) / jnp.sqrt(var + EPS) \
        + beta[None, :, None, None]


def _ref_forward(x_nchw, params):
    x = jnp.maximum(x_nchw.astype(jnp.float32), 0.0)
    dn = ("NCHW", "OIHW", "NCHW")
    y = lax.conv_general_dilated(x, params["w1"], (1, 1), ((DIL, DIL), (DIL, DIL)),
                                 rhs_dilation=(DIL, DIL), dimension_numbers=dn)
    y = y + params["b1"][None, :, None, None]
    y = _bn_train(y, params["g1"], params["be1"])
    z = lax.conv_general_dilated(y, params["w2"], (1, 1), ((DIL, DIL), (DIL, DIL)),
                                 rhs_dilation=(DIL, DIL), dimension_numbers=dn)
    z = z + params["b2"][None, :, None, None]
    return _bn_train(z, params["g2"], params["be2"])


# ---------------------------------------------------------------------------
if __name__ == "__main__":
    N, Cin, Cmid, Cout, H, W = 2, 4, 8, 4, 16, 16

    key = jax.random.PRNGKey(0)
    ks = jax.random.split(key, 9)
    params = {
        "w1": 0.1 * jax.random.normal(ks[0], (Cmid, Cin, 3, 3), jnp.float32),
        "b1": 0.1 * jax.random.normal(ks[1], (Cmid,), jnp.float32),
        "g1": 1.0 + 0.1 * jax.random.normal(ks[2], (Cmid,), jnp.float32),
        "be1": 0.1 * jax.random.normal(ks[3], (Cmid,), jnp.float32),
        "w2": 0.1 * jax.random.normal(ks[4], (Cout, Cmid, 3, 3), jnp.float32),
        "b2": 0.1 * jax.random.normal(ks[5], (Cout,), jnp.float32),
        "g2": 1.0 + 0.1 * jax.random.normal(ks[6], (Cout,), jnp.float32),
        "be2": 0.1 * jax.random.normal(ks[7], (Cout,), jnp.float32),
    }
    x = jax.random.normal(ks[8], (N, Cin, H, W), jnp.float32)

    # row_tile=8 -> 2 row tiles per image, so the inter-tile halo path is exercised.
    fwd = jax.jit(functools.partial(dilated_block, row_tile=8))
    out = jax.block_until_ready(fwd(x, params))
    ref = jax.block_until_ready(_ref_forward(x, params))

    assert out.shape == (N, Cout, H, W), out.shape
    err = float(jnp.max(jnp.abs(out - ref)))
    assert err < 1e-1, err   # bf16 matmul inputs -> looser tolerance than the pure-f32 path
    print("KERNEL_OK")
</pallas_src>

<mosaic_0001>
module attributes {stable_mosaic.version = 11 : i64} {
  func.func @_conv_stage_kernel(%arg0: i32, %arg1: i32, %arg2: memref<2x400x128xbf16, #tpu.memory_space<any>>, %arg3: memref<9x128x128xbf16, #tpu.memory_space<vmem>>, %arg4: memref<1x128xf32, #tpu.memory_space<vmem>>, %arg5: memref<160x1xf32, #tpu.memory_space<vmem>>, %arg6: memref<1x160x128xbf16, #tpu.memory_space<vmem>>, %arg7: memref<1x1x2x128xf32, #tpu.memory_space<vmem>>, %arg8: memref<248x128xbf16, #tpu.memory_space<vmem>>, %arg9: memref<!tpu.dma_semaphore, #tpu.memory_space<semaphore_mem>>) attributes {dimension_semantics = [#tpu.dimension_semantics<parallel>, #tpu.dimension_semantics<parallel>], iteration_bounds = array<i64: 2, 2>, scalar_prefetch = 0 : i64, scratch_operands = 2 : i64, tpu.core_type = #tpu.core_type<tc>, window_params = [{}, {pipeline_mode = #tpu.pipeline_mode<synchronous>, transform_indices = @transform_1, window_bounds = array<i64: 9, 128, 128>}, {pipeline_mode = #tpu.pipeline_mode<synchronous>, transform_indices = @transform_2, window_bounds = array<i64: 1, 128>}, {pipeline_mode = #tpu.pipeline_mode<synchronous>, transform_indices = @transform_3, window_bounds = array<i64: 160, 1>}, {transform_indices = @transform_4, window_bounds = array<i64: 1, 160, 128>}, {transform_indices = @transform_5, window_bounds = array<i64: 1, 1, 2, 128>}]} {
    %cst = arith.constant 0.000000e+00 : bf16
    %0 = vector.broadcast %cst : bf16 to vector<8x128xbf16>
    %c240 = arith.constant 240 : index
    %c0 = arith.constant 0 : index
    %1 = vector.load %arg8[%c240, %c0] : memref<248x128xbf16, #tpu.memory_space<vmem>>, vector<8x128xbf16>
    tpu.vector_store %arg8[%c240, %c0], %0 {strides = array<i32>} : memref<248x128xbf16, #tpu.memory_space<vmem>>, vector<8x128xbf16>,
    %c160_i32 = arith.constant 160 : i32
    %2 = arith.muli %arg1, %c160_i32 : i32
    %3 = tpu.assume_multiple %2, 8 : i32
    %c0_i32 = arith.constant 0 : i32
    %4 = tpu.memref_slice %arg2[%arg0, %3, %c0_i32] : memref<2x400x128xbf16, #tpu.memory_space<any>> -> memref<1x240x128xbf16, #tpu.memory_space<any>>
    %5 = tpu.memref_squeeze %4 : memref<1x240x128xbf16, #tpu.memory_space<any>> -> memref<240x128xbf16, #tpu.memory_space<any>>
    %c0_i32_0 = arith.constant 0 : i32
    %c0_i32_1 = arith.constant 0 : i32
    %6 = tpu.memref_slice %arg8[%c0_i32_0, %c0_i32_1] : memref<248x128xbf16, #tpu.memory_space<vmem>> -> memref<240x128xbf16, #tpu.memory_space<vmem>>
    tpu.enqueue_dma source(%5 : memref<240x128xbf16, #tpu.memory_space<any>>) target(%6 : memref<240x128xbf16, #tpu.memory_space<vmem>>) target_semaphore(%arg9 : memref<!tpu.dma_semaphore, #tpu.memory_space<semaphore_mem>>)
    %c0_i32_2 = arith.constant 0 : i32
    %7 = tpu.memref_slice %arg2[%arg0, %3, %c0_i32_2] : memref<2x400x128xbf16, #tpu.memory_space<any>> -> memref<1x240x128xbf16, #tpu.memory_space<any>>
    %8 = tpu.memref_squeeze %7 : memref<1x240x128xbf16, #tpu.memory_space<any>> -> memref<240x128xbf16, #tpu.memory_space<any>>
    %c0_i32_3 = arith.constant 0 : i32
    %c0_i32_4 = arith.constant 0 : i32
    %9 = tpu.memref_slice %arg8[%c0_i32_3, %c0_i32_4] : memref<248x128xbf16, #tpu.memory_space<vmem>> -> memref<240x128xbf16, #tpu.memory_space<vmem>>
    tpu.wait_dma2 semaphore(%arg9 : memref<!tpu.dma_semaphore, #tpu.memory_space<semaphore_mem>>) src(%8 : memref<240x128xbf16, #tpu.memory_space<any>>) dst(%9 : memref<240x128xbf16, #tpu.memory_space<vmem>>)
    %c0_5 = arith.constant 0 : index
    %c0_6 = arith.constant 0 : index
    %10 = vector.load %arg8[%c0_5, %c0_6] : memref<248x128xbf16, #tpu.memory_space<vmem>>, vector<248x128xbf16>
    %cst_7 = arith.constant 0.000000e+00 : bf16
    %11 = vector.broadcast %cst_7 : bf16 to vector<248x128xbf16>
    %12 = arith.maximumf %10, %11 : vector<248x128xbf16>
    %c0_8 = arith.constant 0 : index
    %c0_9 = arith.constant 0 : index
    %13 = vector.load %arg8[%c0_8, %c0_9] : memref<248x128xbf16, #tpu.memory_space<vmem>>, vector<248x128xbf16>
    tpu.vector_store %arg8[%c0_8, %c0_9], %12 {strides = array<i32>} : memref<248x128xbf16, #tpu.memory_space<vmem>>, vector<248x128xbf16>,
    %cst_10 = arith.constant 0.000000e+00 : f32
    %14 = vector.broadcast %cst_10 : f32 to vector<160x128xf32>
    %c0_11 = arith.constant 0 : index
    %c0_12 = arith.constant 0 : index
    %15 = vector.load %arg8[%c0_11, %c0_12] : memref<248x128xbf16, #tpu.memory_space<vmem>>, vector<160x128xbf16>
    %c0_13 = arith.constant 0 : index
    %c0_14 = arith.constant 0 : index
    %c0_15 = arith.constant 0 : index
    %16 = vector.load %arg3[%c0_13, %c0_14, %c0_15] : memref<9x128x128xbf16, #tpu.memory_space<vmem>>, vector<1x128x128xbf16>
    %17 = vector.shape_cast %16 : vector<1x128x128xbf16> to vector<128x128xbf16>
    %cst_16 = arith.constant dense<0.000000e+00> : vector<160x128xf32>
    %18 = tpu.matmul %15, %17, %cst_16 {dimension_numbers = #tpu.dot_dimension_numbers<[1], [0], [0], [1], [0, 0, 1, 1], [], []>} : vector<160x128xbf16>, vector<128x128xbf16>, vector<160x128xf32> -> vector<160x128xf32>
    %19 = arith.addf %14, %18 : vector<160x128xf32>
    %c2 = arith.constant 2 : index
    %c0_17 = arith.constant 0 : index
    %20 = vector.load %arg8[%c2, %c0_17] : memref<248x128xbf16, #tpu.memory_space<vmem>>, vector<160x128xbf16>
    %c1 = arith.constant 1 : index
    %c0_18 = arith.constant 0 : index
    %c0_19 = arith.constant 0 : index
    %21 = vector.load %arg3[%c1, %c0_18, %c0_19] : memref<9x128x128xbf16, #tpu.memory_space<vmem>>, vector<1x128x128xbf16>
    %22 = vector.shape_cast %21 : vector<1x128x128xbf16> to vector<128x128xbf16>
    %cst_20 = arith.constant dense<0.000000e+00> : vector<160x128xf32>
    %23 = tpu.matmul %20, %22, %cst_20 {dimension_numbers = #tpu.dot_dimension_numbers<[1], [0], [0], [1], [0, 0, 1, 1], [], []>} : vector<160x128xbf16>, vector<128x128xbf16>, vector<160x128xf32> -> vector<160x128xf32>
    %24 = arith.addf %19, %23 : vector<160x128xf32>
    %c4 = arith.constant 4 : index
    %c0_21 = arith.constant 0 : index
    %25 = vector.load %arg8[%c4, %c0_21] : memref<248x128xbf16, #tpu.memory_space<vmem>>, vector<160x128xbf16>
    %c2_22 = arith.constant 2 : index
    %c0_23 = arith.constant 0 : index
    %c0_24 = arith.constant 0 : index
    %26 = vector.load %arg3[%c2_22, %c0_23, %c0_24] : memref<9x128x128xbf16, #tpu.memory_space<vmem>>, vector<1x128x128xbf16>
    %27 = vector.shape_cast %26 : vector<1x128x128xbf16> to vector<128x128xbf16>
    %cst_25 = arith.constant dense<0.000000e+00> : vector<160x128xf32>
    %28 = tpu.matmul %25, %27, %cst_25 {dimension_numbers = #tpu.dot_dimension_numbers<[1], [0], [0], [1], [0, 0, 1, 1], [], []>} : vector<160x128xbf16>, vector<128x128xbf16>, vector<160x128xf32> -> vector<160x128xf32>
    %29 = arith.addf %24, %28 : vector<160x128xf32>
    %c40 = arith.constant 40 : index
    %c0_26 = arith.constant 0 : index
    %30 = vector.load %arg8[%c40, %c0_26] : memref<248x128xbf16, #tpu.memory_space<vmem>>, vector<160x128xbf16>
    %c3 = arith.constant 3 : index
    %c0_27 = arith.constant 0 : index
    %c0_28 = arith.constant 0 : index
    %31 = vector.load %arg3[%c3, %c0_27, %c0_28] : memref<9x128x128xbf16, #tpu.memory_space<vmem>>, vector<1x128x128xbf16>
    %32 = vector.shape_cast %31 : vector<1x128x128xbf16> to vector<128x128xbf16>
    %cst_29 = arith.constant dense<0.000000e+00> : vector<160x128xf32>
    %33 = tpu.matmul %30, %32, %cst_29 {dimension_numbers = #tpu.dot_dimension_numbers<[1], [0], [0], [1], [0, 0, 1, 1], [], []>} : vector<160x128xbf16>, vector<128x128xbf16>, vector<160x128xf32> -> vector<160x128xf32>
    %34 = arith.addf %29, %33 : vector<160x128xf32>
    %c42 = arith.constant 42 : index
    %c0_30 = arith.constant 0 : index
    %35 = vector.load %arg8[%c42, %c0_30] : memref<248x128xbf16, #tpu.memory_space<vmem>>, vector<160x128xbf16>
    %c4_31 = arith.constant 4 : index
    %c0_32 = arith.constant 0 : index
    %c0_33 = arith.constant 0 : index
    %36 = vector.load %arg3[%c4_31, %c0_32, %c0_33] : memref<9x128x128xbf16, #tpu.memory_space<vmem>>, vector<1x128x128xbf16>
    %37 = vector.shape_cast %36 : vector<1x128x128xbf16> to vector<128x128xbf16>
    %cst_34 = arith.constant dense<0.000000e+00> : vector<160x128xf32>
    %38 = tpu.matmul %35, %37, %cst_34 {dimension_numbers = #tpu.dot_dimension_numbers<[1], [0], [0], [1], [0, 0, 1, 1], [], []>} : vector<160x128xbf16>, vector<128x128xbf16>, vector<160x128xf32> -> vector<160x128xf32>
    %39 = arith.addf %34, %38 : vector<160x128xf32>
    %c44 = arith.constant 44 : index
    %c0_35 = arith.constant 0 : index
    %40 = vector.load %arg8[%c44, %c0_35] : memref<248x128xbf16, #tpu.memory_space<vmem>>, vector<160x128xbf16>
    %c5 = arith.constant 5 : index
    %c0_36 = arith.constant 0 : index
    %c0_37 = arith.constant 0 : index
    %41 = vector.load %arg3[%c5, %c0_36, %c0_37] : memref<9x128x128xbf16, #tpu.memory_space<vmem>>, vector<1x128x128xbf16>
    %42 = vector.shape_cast %41 : vector<1x128x128xbf16> to vector<128x128xbf16>
    %cst_38 = arith.constant dense<0.000000e+00> : vector<160x128xf32>
    %43 = tpu.matmul %40, %42, %cst_38 {dimension_numbers = #tpu.dot_dimension_numbers<[1], [0], [0], [1], [0, 0, 1, 1], [], []>} : vector<160x128xbf16>, vector<128x128xbf16>, vector<160x128xf32> -> vector<160x128xf32>
    %44 = arith.addf %39, %43 : vector<160x128xf32>
    %c80 = arith.constant 80 : index
    %c0_39 = arith.constant 0 : index
    %45 = vector.load %arg8[%c80, %c0_39] : memref<248x128xbf16, #tpu.memory_space<vmem>>, vector<160x128xbf16>
    %c6 = arith.constant 6 : index
    %c0_40 = arith.constant 0 : index
    %c0_41 = arith.constant 0 : index
    %46 = vector.load %arg3[%c6, %c0_40, %c0_41] : memref<9x128x128xbf16, #tpu.memory_space<vmem>>, vector<1x128x128xbf16>
    %47 = vector.shape_cast %46 : vector<1x128x128xbf16> to vector<128x128xbf16>
    %cst_42 = arith.constant dense<0.000000e+00> : vector<160x128xf32>
    %48 = tpu.matmul %45, %47, %cst_42 {dimension_numbers = #tpu.dot_dimension_numbers<[1], [0], [0], [1], [0, 0, 1, 1], [], []>} : vector<160x128xbf16>, vector<128x128xbf16>, vector<160x128xf32> -> vector<160x128xf32>
    %49 = arith.addf %44, %48 : vector<160x128xf32>
    %c82 = arith.constant 82 : index
    %c0_43 = arith.constant 0 : index
    %50 = vector.load %arg8[%c82, %c0_43] : memref<248x128xbf16, #tpu.memory_space<vmem>>, vector<160x128xbf16>
    %c7 = arith.constant 7 : index
    %c0_44 = arith.constant 0 : index
    %c0_45 = arith.constant 0 : index
    %51 = vector.load %arg3[%c7, %c0_44, %c0_45] : memref<9x128x128xbf16, #tpu.memory_space<vmem>>, vector<1x128x128xbf16>
    %52 = vector.shape_cast %51 : vector<1x128x128xbf16> to vector<128x128xbf16>
    %cst_46 = arith.constant dense<0.000000e+00> : vector<160x128xf32>
    %53 = tpu.matmul %50, %52, %cst_46 {dimension_numbers = #tpu.dot_dimension_numbers<[1], [0], [0], [1], [0, 0, 1, 1], [], []>} : vector<160x128xbf16>, vector<128x128xbf16>, vector<160x128xf32> -> vector<160x128xf32>
    %54 = arith.addf %49, %53 : vector<160x128xf32>
    %c84 = arith.constant 84 : index
    %c0_47 = arith.constant 0 : index
    %55 = vector.load %arg8[%c84, %c0_47] : memref<248x128xbf16, #tpu.memory_space<vmem>>, vector<160x128xbf16>
    %c8 = arith.constant 8 : index
    %c0_48 = arith.constant 0 : index
    %c0_49 = arith.constant 0 : index
    %56 = vector.load %arg3[%c8, %c0_48, %c0_49] : memref<9x128x128xbf16, #tpu.memory_space<vmem>>, vector<1x128x128xbf16>
    %57 = vector.shape_cast %56 : vector<1x128x128xbf16> to vector<128x128xbf16>
    %cst_50 = arith.constant dense<0.000000e+00> : vector<160x128xf32>
    %58 = tpu.matmul %55, %57, %cst_50 {dimension_numbers = #tpu.dot_dimension_numbers<[1], [0], [0], [1], [0, 0, 1, 1], [], []>} : vector<160x128xbf16>, vector<128x128xbf16>, vector<160x128xf32> -> vector<160x128xf32>
    %59 = arith.addf %54, %58 : vector<160x128xf32>
    %c0_51 = arith.constant 0 : index
    %c0_52 = arith.constant 0 : index
    %60 = vector.load %arg4[%c0_51, %c0_52] : memref<1x128xf32, #tpu.memory_space<vmem>>, vector<1x128xf32>
    %61 = vector.broadcast %60 : vector<1x128xf32> to vector<160x128xf32>
    %62 = arith.addf %59, %61 : vector<160x128xf32>
    %c0_53 = arith.constant 0 : index
    %c0_54 = arith.constant 0 : index
    %63 = vector.load %arg5[%c0_53, %c0_54] : memref<160x1xf32, #tpu.memory_space<vmem>>, vector<160x1xf32>
    %64 = vector.broadcast %63 : vector<160x1xf32> to vector<160x128xf32>
    %65 = arith.mulf %62, %64 : vector<160x128xf32>
    %cst_55 = arith.constant dense<0.000000e+00> : vector<128xf32>
    %66 = vector.multi_reduction <add>, %65, %cst_55 [0] : vector<160x128xf32> to vector<128xf32>
    %67 = vector.shape_cast %66 : vector<128xf32> to vector<1x128xf32>
    %68 = arith.mulf %65, %65 : vector<160x128xf32>
    %cst_56 = arith.constant dense<0.000000e+00> : vector<128xf32>
    %69 = vector.multi_reduction <add>, %68, %cst_56 [0] : vector<160x128xf32> to vector<128xf32>
    %70 = vector.shape_cast %69 : vector<128xf32> to vector<1x128xf32>
    %71 = tpu.concatenate %67, %70 in 0 : vector<1x128xf32>, vector<1x128xf32> -> vector<2x128xf32>
    %c0_57 = arith.constant 0 : index
    %c0_58 = arith.constant 0 : index
    %c0_59 = arith.constant 0 : index
    %c0_60 = arith.constant 0 : index
    %72 = vector.load %arg7[%c0_57, %c0_58, %c0_59, %c0_60] : memref<1x1x2x128xf32, #tpu.memory_space<vmem>>, vector<1x1x2x128xf32>
    %73 = vector.shape_cast %72 : vector<1x1x2x128xf32> to vector<2x128xf32>
    %74 = vector.shape_cast %71 : vector<2x128xf32> to vector<1x1x2x128xf32>
    tpu.vector_store %arg7[%c0_57, %c0_58, %c0_59, %c0_60], %74 {strides = array<i32>} : memref<1x1x2x128xf32, #tpu.memory_space<vmem>>, vector<1x1x2x128xf32>,
    %75 = vector.shape_cast %65 : vector<160x128xf32> to vector<1x160x128xf32>
    %76 = arith.truncf %75 : vector<1x160x128xf32> to vector<1x160x128xbf16>
    %c0_61 = arith.constant 0 : index
    %c0_62 = arith.constant 0 : index
    %c0_63 = arith.constant 0 : index
    %77 = vector.load %arg6[%c0_61, %c0_62, %c0_63] : memref<1x160x128xbf16, #tpu.memory_space<vmem>>, vector<1x160x128xbf16>
    tpu.vector_store %arg6[%c0_61, %c0_62, %c0_63], %76 {strides = array<i32>} : memref<1x160x128xbf16, #tpu.memory_space<vmem>>, vector<1x160x128xbf16>,
    return
  }
  func.func @transform_1(%arg0: i32, %arg1: i32) -> (i32, i32, i32) {
    %c0_i32 = arith.constant 0 : i32
    %c0_i32_0 = arith.constant 0 : i32
    %c0_i32_1 = arith.constant 0 : i32
    %c0_i32_2 = arith.constant 0 : i32
    return %c0_i32, %c0_i32_0, %c0_i32_1 : i32, i32, i32
  }
  func.func @transform_2(%arg0: i32, %arg1: i32) -> (i32, i32) {
    %c0_i32 = arith.constant 0 : i32
    %c0_i32_0 = arith.constant 0 : i32
    %c0_i32_1 = arith.constant 0 : i32
    return %c0_i32, %c0_i32_0 : i32, i32
  }
  func.func @transform_3(%arg0: i32, %arg1: i32) -> (i32, i32) {
    %c0_i32 = arith.constant 0 : i32
    %c0_i32_0 = arith.constant 0 : i32
    %c0_i32_1 = arith.constant 0 : i32
    return %c0_i32, %c0_i32_0 : i32, i32
  }
  func.func @transform_4(%arg0: i32, %arg1: i32) -> (i32, i32, i32) {
    %c0_i32 = arith.constant 0 : i32
    %c0_i32_0 = arith.constant 0 : i32
    return %arg0, %arg1, %c0_i32 : i32, i32, i32
  }
  func.func @transform_5(%arg0: i32, %arg1: i32) -> (i32, i32, i32, i32) {
    %c0_i32 = arith.constant 0 : i32
    %c0_i32_0 = arith.constant 0 : i32
    %c0_i32_1 = arith.constant 0 : i32
    return %arg0, %arg1, %c0_i32, %c0_i32_0 : i32, i32, i32, i32
  }
}

module attributes {stable_mosaic.version = 11 : i64} {
  func.func @_affine_kernel(%arg0: i32, %arg1: i32, %arg2: memref<1x160x128xbf16, #tpu.memory_space<vmem>>, %arg3: memref<1x128xf32, #tpu.memory_space<vmem>>, %arg4: memref<1x128xf32, #tpu.memory_space<vmem>>, %arg5: memref<1x160x128xbf16, #tpu.memory_space<vmem>>) attributes {dimension_semantics = [#tpu.dimension_semantics<parallel>, #tpu.dimension_semantics<parallel>], iteration_bounds = array<i64: 2, 2>, scalar_prefetch = 0 : i64, scratch_operands = 0 : i64, tpu.core_type = #tpu.core_type<tc>, window_params = [{transform_indices = @transform_0, window_bounds = array<i64: 1, 160, 128>}, {pipeline_mode = #tpu.pipeline_mode<synchronous>, transform_indices = @transform_1, window_bounds = array<i64: 1, 128>}, {pipeline_mode = #tpu.pipeline_mode<synchronous>, transform_indices = @transform_2, window_bounds = array<i64: 1, 128>}, {transform_indices = @transform_3, window_bounds = array<i64: 1, 160, 128>}]} {
    %c0 = arith.constant 0 : index
    %c0_0 = arith.constant 0 : index
    %c0_1 = arith.constant 0 : index
    %0 = vector.load %arg2[%c0, %c0_0, %c0_1] : memref<1x160x128xbf16, #tpu.memory_space<vmem>>, vector<1x160x128xbf16>
    %1 = arith.extf %0 : vector<1x160x128xbf16> to vector<1x160x128xf32>
    %c0_2 = arith.constant 0 : index
    %c0_3 = arith.constant 0 : index
    %2 = vector.load %arg3[%c0_2, %c0_3] : memref<1x128xf32, #tpu.memory_space<vmem>>, vector<1x128xf32>
    %3 = vector.shape_cast %2 : vector<1x128xf32> to vector<1x1x128xf32>
    %4 = vector.broadcast %3 : vector<1x1x128xf32> to vector<1x160x128xf32>
    %5 = arith.mulf %1, %4 : vector<1x160x128xf32>
    %c0_4 = arith.constant 0 : index
    %c0_5 = arith.constant 0 : index
    %6 = vector.load %arg4[%c0_4, %c0_5] : memref<1x128xf32, #tpu.memory_space<vmem>>, vector<1x128xf32>
    %7 = vector.shape_cast %6 : vector<1x128xf32> to vector<1x1x128xf32>
    %8 = vector.broadcast %7 : vector<1x1x128xf32> to vector<1x160x128xf32>
    %9 = arith.addf %5, %8 : vector<1x160x128xf32>
    %10 = arith.truncf %9 : vector<1x160x128xf32> to vector<1x160x128xbf16>
    %c0_6 = arith.constant 0 : index
    %c0_7 = arith.constant 0 : index
    %c0_8 = arith.constant 0 : index
    %11 = vector.load %arg5[%c0_6, %c0_7, %c0_8] : memref<1x160x128xbf16, #tpu.memory_space<vmem>>, vector<1x160x128xbf16>
    tpu.vector_store %arg5[%c0_6, %c0_7, %c0_8], %10 {strides = array<i32>} : memref<1x160x128xbf16, #tpu.memory_space<vmem>>, vector<1x160x128xbf16>,
    return
  }
  func.func @transform_0(%arg0: i32, %arg1: i32) -> (i32, i32, i32) {
    %c0_i32 = arith.constant 0 : i32
    %c0_i32_0 = arith.constant 0 : i32
    return %arg0, %arg1, %c0_i32 : i32, i32, i32
  }
  func.func @transform_1(%arg0: i32, %arg1: i32) -> (i32, i32) {
    %c0_i32 = arith.constant 0 : i32
    %c0_i32_0 = arith.constant 0 : i32
    %c0_i32_1 = arith.constant 0 : i32
    return %c0_i32, %c0_i32_0 : i32, i32
  }
  func.func @transform_2(%arg0: i32, %arg1: i32) -> (i32, i32) {
    %c0_i32 = arith.constant 0 : i32
    %c0_i32_0 = arith.constant 0 : i32
    %c0_i32_1 = arith.constant 0 : i32
    return %c0_i32, %c0_i32_0 : i32, i32
  }
  func.func @transform_3(%arg0: i32, %arg1: i32) -> (i32, i32, i32) {
    %c0_i32 = arith.constant 0 : i32
    %c0_i32_0 = arith.constant 0 : i32
    return %arg0, %arg1, %c0_i32 : i32, i32, i32
  }
}

module attributes {stable_mosaic.version = 11 : i64} {
  func.func @_conv_stage_kernel(%arg0: i32, %arg1: i32, %arg2: memref<2x400x128xbf16, #tpu.memory_space<any>>, %arg3: memref<9x128x128xbf16, #tpu.memory_space<vmem>>, %arg4: memref<1x128xf32, #tpu.memory_space<vmem>>, %arg5: memref<160x1xf32, #tpu.memory_space<vmem>>, %arg6: memref<1x160x128xf32, #tpu.memory_space<vmem>>, %arg7: memref<1x1x2x128xf32, #tpu.memory_space<vmem>>, %arg8: memref<248x128xbf16, #tpu.memory_space<vmem>>, %arg9: memref<!tpu.dma_semaphore, #tpu.memory_space<semaphore_mem>>) attributes {dimension_semantics = [#tpu.dimension_semantics<parallel>, #tpu.dimension_semantics<parallel>], iteration_bounds = array<i64: 2, 2>, scalar_prefetch = 0 : i64, scratch_operands = 2 : i64, tpu.core_type = #tpu.core_type<tc>, window_params = [{}, {pipeline_mode = #tpu.pipeline_mode<synchronous>, transform_indices = @transform_1, window_bounds = array<i64: 9, 128, 128>}, {pipeline_mode = #tpu.pipeline_mode<synchronous>, transform_indices = @transform_2, window_bounds = array<i64: 1, 128>}, {pipeline_mode = #tpu.pipeline_mode<synchronous>, transform_indices = @transform_3, window_bounds = array<i64: 160, 1>}, {transform_indices = @transform_4, window_bounds = array<i64: 1, 160, 128>}, {transform_indices = @transform_5, window_bounds = array<i64: 1, 1, 2, 128>}]} {
    %cst = arith.constant 0.000000e+00 : bf16
    %0 = vector.broadcast %cst : bf16 to vector<8x128xbf16>
    %c240 = arith.constant 240 : index
    %c0 = arith.constant 0 : index
    %1 = vector.load %arg8[%c240, %c0] : memref<248x128xbf16, #tpu.memory_space<vmem>>, vector<8x128xbf16>
    tpu.vector_store %arg8[%c240, %c0], %0 {strides = array<i32>} : memref<248x128xbf16, #tpu.memory_space<vmem>>, vector<8x128xbf16>,
    %c160_i32 = arith.constant 160 : i32
    %2 = arith.muli %arg1, %c160_i32 : i32
    %3 = tpu.assume_multiple %2, 8 : i32
    %c0_i32 = arith.constant 0 : i32
    %4 = tpu.memref_slice %arg2[%arg0, %3, %c0_i32] : memref<2x400x128xbf16, #tpu.memory_space<any>> -> memref<1x240x128xbf16, #tpu.memory_space<any>>
    %5 = tpu.memref_squeeze %4 : memref<1x240x128xbf16, #tpu.memory_space<any>> -> memref<240x128xbf16, #tpu.memory_space<any>>
    %c0_i32_0 = arith.constant 0 : i32
    %c0_i32_1 = arith.constant 0 : i32
    %6 = tpu.memref_slice %arg8[%c0_i32_0, %c0_i32_1] : memref<248x128xbf16, #tpu.memory_space<vmem>> -> memref<240x128xbf16, #tpu.memory_space<vmem>>
    tpu.enqueue_dma source(%5 : memref<240x128xbf16, #tpu.memory_space<any>>) target(%6 : memref<240x128xbf16, #tpu.memory_space<vmem>>) target_semaphore(%arg9 : memref<!tpu.dma_semaphore, #tpu.memory_space<semaphore_mem>>)
    %c0_i32_2 = arith.constant 0 : i32
    %7 = tpu.memref_slice %arg2[%arg0, %3, %c0_i32_2] : memref<2x400x128xbf16, #tpu.memory_space<any>> -> memref<1x240x128xbf16, #tpu.memory_space<any>>
    %8 = tpu.memref_squeeze %7 : memref<1x240x128xbf16, #tpu.memory_space<any>> -> memref<240x128xbf16, #tpu.memory_space<any>>
    %c0_i32_3 = arith.constant 0 : i32
    %c0_i32_4 = arith.constant 0 : i32
    %9 = tpu.memref_slice %arg8[%c0_i32_3, %c0_i32_4] : memref<248x128xbf16, #tpu.memory_space<vmem>> -> memref<240x128xbf16, #tpu.memory_space<vmem>>
    tpu.wait_dma2 semaphore(%arg9 : memref<!tpu.dma_semaphore, #tpu.memory_space<semaphore_mem>>) src(%8 : memref<240x128xbf16, #tpu.memory_space<any>>) dst(%9 : memref<240x128xbf16, #tpu.memory_space<vmem>>)
    %cst_5 = arith.constant 0.000000e+00 : f32
    %10 = vector.broadcast %cst_5 : f32 to vector<160x128xf32>
    %c0_6 = arith.constant 0 : index
    %c0_7 = arith.constant 0 : index
    %11 = vector.load %arg8[%c0_6, %c0_7] : memref<248x128xbf16, #tpu.memory_space<vmem>>, vector<160x128xbf16>
    %c0_8 = arith.constant 0 : index
    %c0_9 = arith.constant 0 : index
    %c0_10 = arith.constant 0 : index
    %12 = vector.load %arg3[%c0_8, %c0_9, %c0_10] : memref<9x128x128xbf16, #tpu.memory_space<vmem>>, vector<1x128x128xbf16>
    %13 = vector.shape_cast %12 : vector<1x128x128xbf16> to vector<128x128xbf16>
    %cst_11 = arith.constant dense<0.000000e+00> : vector<160x128xf32>
    %14 = tpu.matmul %11, %13, %cst_11 {dimension_numbers = #tpu.dot_dimension_numbers<[1], [0], [0], [1], [0, 0, 1, 1], [], []>} : vector<160x128xbf16>, vector<128x128xbf16>, vector<160x128xf32> -> vector<160x128xf32>
    %15 = arith.addf %10, %14 : vector<160x128xf32>
    %c2 = arith.constant 2 : index
    %c0_12 = arith.constant 0 : index
    %16 = vector.load %arg8[%c2, %c0_12] : memref<248x128xbf16, #tpu.memory_space<vmem>>, vector<160x128xbf16>
    %c1 = arith.constant 1 : index
    %c0_13 = arith.constant 0 : index
    %c0_14 = arith.constant 0 : index
    %17 = vector.load %arg3[%c1, %c0_13, %c0_14] : memref<9x128x128xbf16, #tpu.memory_space<vmem>>, vector<1x128x128xbf16>
    %18 = vector.shape_cast %17 : vector<1x128x128xbf16> to vector<128x128xbf16>
    %cst_15 = arith.constant dense<0.000000e+00> : vector<160x128xf32>
    %19 = tpu.matmul %16, %18, %cst_15 {dimension_numbers = #tpu.dot_dimension_numbers<[1], [0], [0], [1], [0, 0, 1, 1], [], []>} : vector<160x128xbf16>, vector<128x128xbf16>, vector<160x128xf32> -> vector<160x128xf32>
    %20 = arith.addf %15, %19 : vector<160x128xf32>
    %c4 = arith.constant 4 : index
    %c0_16 = arith.constant 0 : index
    %21 = vector.load %arg8[%c4, %c0_16] : memref<248x128xbf16, #tpu.memory_space<vmem>>, vector<160x128xbf16>
    %c2_17 = arith.constant 2 : index
    %c0_18 = arith.constant 0 : index
    %c0_19 = arith.constant 0 : index
    %22 = vector.load %arg3[%c2_17, %c0_18, %c0_19] : memref<9x128x128xbf16, #tpu.memory_space<vmem>>, vector<1x128x128xbf16>
    %23 = vector.shape_cast %22 : vector<1x128x128xbf16> to vector<128x128xbf16>
    %cst_20 = arith.constant dense<0.000000e+00> : vector<160x128xf32>
    %24 = tpu.matmul %21, %23, %cst_20 {dimension_numbers = #tpu.dot_dimension_numbers<[1], [0], [0], [1], [0, 0, 1, 1], [], []>} : vector<160x128xbf16>, vector<128x128xbf16>, vector<160x128xf32> -> vector<160x128xf32>
    %25 = arith.addf %20, %24 : vector<160x128xf32>
    %c40 = arith.constant 40 : index
    %c0_21 = arith.constant 0 : index
    %26 = vector.load %arg8[%c40, %c0_21] : memref<248x128xbf16, #tpu.memory_space<vmem>>, vector<160x128xbf16>
    %c3 = arith.constant 3 : index
    %c0_22 = arith.constant 0 : index
    %c0_23 = arith.constant 0 : index
    %27 = vector.load %arg3[%c3, %c0_22, %c0_23] : memref<9x128x128xbf16, #tpu.memory_space<vmem>>, vector<1x128x128xbf16>
    %28 = vector.shape_cast %27 : vector<1x128x128xbf16> to vector<128x128xbf16>
    %cst_24 = arith.constant dense<0.000000e+00> : vector<160x128xf32>
    %29 = tpu.matmul %26, %28, %cst_24 {dimension_numbers = #tpu.dot_dimension_numbers<[1], [0], [0], [1], [0, 0, 1, 1], [], []>} : vector<160x128xbf16>, vector<128x128xbf16>, vector<160x128xf32> -> vector<160x128xf32>
    %30 = arith.addf %25, %29 : vector<160x128xf32>
    %c42 = arith.constant 42 : index
    %c0_25 = arith.constant 0 : index
    %31 = vector.load %arg8[%c42, %c0_25] : memref<248x128xbf16, #tpu.memory_space<vmem>>, vector<160x128xbf16>
    %c4_26 = arith.constant 4 : index
    %c0_27 = arith.constant 0 : index
    %c0_28 = arith.constant 0 : index
    %32 = vector.load %arg3[%c4_26, %c0_27, %c0_28] : memref<9x128x128xbf16, #tpu.memory_space<vmem>>, vector<1x128x128xbf16>
    %33 = vector.shape_cast %32 : vector<1x128x128xbf16> to vector<128x128xbf16>
    %cst_29 = arith.constant dense<0.000000e+00> : vector<160x128xf32>
    %34 = tpu.matmul %31, %33, %cst_29 {dimension_numbers = #tpu.dot_dimension_numbers<[1], [0], [0], [1], [0, 0, 1, 1], [], []>} : vector<160x128xbf16>, vector<128x128xbf16>, vector<160x128xf32> -> vector<160x128xf32>
    %35 = arith.addf %30, %34 : vector<160x128xf32>
    %c44 = arith.constant 44 : index
    %c0_30 = arith.constant 0 : index
    %36 = vector.load %arg8[%c44, %c0_30] : memref<248x128xbf16, #tpu.memory_space<vmem>>, vector<160x128xbf16>
    %c5 = arith.constant 5 : index
    %c0_31 = arith.constant 0 : index
    %c0_32 = arith.constant 0 : index
    %37 = vector.load %arg3[%c5, %c0_31, %c0_32] : memref<9x128x128xbf16, #tpu.memory_space<vmem>>, vector<1x128x128xbf16>
    %38 = vector.shape_cast %37 : vector<1x128x128xbf16> to vector<128x128xbf16>
    %cst_33 = arith.constant dense<0.000000e+00> : vector<160x128xf32>
    %39 = tpu.matmul %36, %38, %cst_33 {dimension_numbers = #tpu.dot_dimension_numbers<[1], [0], [0], [1], [0, 0, 1, 1], [], []>} : vector<160x128xbf16>, vector<128x128xbf16>, vector<160x128xf32> -> vector<160x128xf32>
    %40 = arith.addf %35, %39 : vector<160x128xf32>
    %c80 = arith.constant 80 : index
    %c0_34 = arith.constant 0 : index
    %41 = vector.load %arg8[%c80, %c0_34] : memref<248x128xbf16, #tpu.memory_space<vmem>>, vector<160x128xbf16>
    %c6 = arith.constant 6 : index
    %c0_35 = arith.constant 0 : index
    %c0_36 = arith.constant 0 : index
    %42 = vector.load %arg3[%c6, %c0_35, %c0_36] : memref<9x128x128xbf16, #tpu.memory_space<vmem>>, vector<1x128x128xbf16>
    %43 = vector.shape_cast %42 : vector<1x128x128xbf16> to vector<128x128xbf16>
    %cst_37 = arith.constant dense<0.000000e+00> : vector<160x128xf32>
    %44 = tpu.matmul %41, %43, %cst_37 {dimension_numbers = #tpu.dot_dimension_numbers<[1], [0], [0], [1], [0, 0, 1, 1], [], []>} : vector<160x128xbf16>, vector<128x128xbf16>, vector<160x128xf32> -> vector<160x128xf32>
    %45 = arith.addf %40, %44 : vector<160x128xf32>
    %c82 = arith.constant 82 : index
    %c0_38 = arith.constant 0 : index
    %46 = vector.load %arg8[%c82, %c0_38] : memref<248x128xbf16, #tpu.memory_space<vmem>>, vector<160x128xbf16>
    %c7 = arith.constant 7 : index
    %c0_39 = arith.constant 0 : index
    %c0_40 = arith.constant 0 : index
    %47 = vector.load %arg3[%c7, %c0_39, %c0_40] : memref<9x128x128xbf16, #tpu.memory_space<vmem>>, vector<1x128x128xbf16>
    %48 = vector.shape_cast %47 : vector<1x128x128xbf16> to vector<128x128xbf16>
    %cst_41 = arith.constant dense<0.000000e+00> : vector<160x128xf32>
    %49 = tpu.matmul %46, %48, %cst_41 {dimension_numbers = #tpu.dot_dimension_numbers<[1], [0], [0], [1], [0, 0, 1, 1], [], []>} : vector<160x128xbf16>, vector<128x128xbf16>, vector<160x128xf32> -> vector<160x128xf32>
    %50 = arith.addf %45, %49 : vector<160x128xf32>
    %c84 = arith.constant 84 : index
    %c0_42 = arith.constant 0 : index
    %51 = vector.load %arg8[%c84, %c0_42] : memref<248x128xbf16, #tpu.memory_space<vmem>>, vector<160x128xbf16>
    %c8 = arith.constant 8 : index
    %c0_43 = arith.constant 0 : index
    %c0_44 = arith.constant 0 : index
    %52 = vector.load %arg3[%c8, %c0_43, %c0_44] : memref<9x128x128xbf16, #tpu.memory_space<vmem>>, vector<1x128x128xbf16>
    %53 = vector.shape_cast %52 : vector<1x128x128xbf16> to vector<128x128xbf16>
    %cst_45 = arith.constant dense<0.000000e+00> : vector<160x128xf32>
    %54 = tpu.matmul %51, %53, %cst_45 {dimension_numbers = #tpu.dot_dimension_numbers<[1], [0], [0], [1], [0, 0, 1, 1], [], []>} : vector<160x128xbf16>, vector<128x128xbf16>, vector<160x128xf32> -> vector<160x128xf32>
    %55 = arith.addf %50, %54 : vector<160x128xf32>
    %c0_46 = arith.constant 0 : index
    %c0_47 = arith.constant 0 : index
    %56 = vector.load %arg4[%c0_46, %c0_47] : memref<1x128xf32, #tpu.memory_space<vmem>>, vector<1x128xf32>
    %57 = vector.broadcast %56 : vector<1x128xf32> to vector<160x128xf32>
    %58 = arith.addf %55, %57 : vector<160x128xf32>
    %c0_48 = arith.constant 0 : index
    %c0_49 = arith.constant 0 : index
    %59 = vector.load %arg5[%c0_48, %c0_49] : memref<160x1xf32, #tpu.memory_space<vmem>>, vector<160x1xf32>
    %60 = vector.broadcast %59 : vector<160x1xf32> to vector<160x128xf32>
    %61 = arith.mulf %58, %60 : vector<160x128xf32>
    %cst_50 = arith.constant dense<0.000000e+00> : vector<128xf32>
    %62 = vector.multi_reduction <add>, %61, %cst_50 [0] : vector<160x128xf32> to vector<128xf32>
    %63 = vector.shape_cast %62 : vector<128xf32> to vector<1x128xf32>
    %64 = arith.mulf %61, %61 : vector<160x128xf32>
    %cst_51 = arith.constant dense<0.000000e+00> : vector<128xf32>
    %65 = vector.multi_reduction <add>, %64, %cst_51 [0] : vector<160x128xf32> to vector<128xf32>
    %66 = vector.shape_cast %65 : vector<128xf32> to vector<1x128xf32>
    %67 = tpu.concatenate %63, %66 in 0 : vector<1x128xf32>, vector<1x128xf32> -> vector<2x128xf32>
    %c0_52 = arith.constant 0 : index
    %c0_53 = arith.constant 0 : index
    %c0_54 = arith.constant 0 : index
    %c0_55 = arith.constant 0 : index
    %68 = vector.load %arg7[%c0_52, %c0_53, %c0_54, %c0_55] : memref<1x1x2x128xf32, #tpu.memory_space<vmem>>, vector<1x1x2x128xf32>
    %69 = vector.shape_cast %68 : vector<1x1x2x128xf32> to vector<2x128xf32>
    %70 = vector.shape_cast %67 : vector<2x128xf32> to vector<1x1x2x128xf32>
    tpu.vector_store %arg7[%c0_52, %c0_53, %c0_54, %c0_55], %70 {strides = array<i32>} : memref<1x1x2x128xf32, #tpu.memory_space<vmem>>, vector<1x1x2x128xf32>,
    %71 = vector.shape_cast %61 : vector<160x128xf32> to vector<1x160x128xf32>
    %c0_56 = arith.constant 0 : index
    %c0_57 = arith.constant 0 : index
    %c0_58 = arith.constant 0 : index
    %72 = vector.load %arg6[%c0_56, %c0_57, %c0_58] : memref<1x160x128xf32, #tpu.memory_space<vmem>>, vector<1x160x128xf32>
    tpu.vector_store %arg6[%c0_56, %c0_57, %c0_58], %71 {strides = array<i32>} : memref<1x160x128xf32, #tpu.memory_space<vmem>>, vector<1x160x128xf32>,
    return
  }
  func.func @transform_1(%arg0: i32, %arg1: i32) -> (i32, i32, i32) {
    %c0_i32 = arith.constant 0 : i32
    %c0_i32_0 = arith.constant 0 : i32
    %c0_i32_1 = arith.constant 0 : i32
    %c0_i32_2 = arith.constant 0 : i32
    return %c0_i32, %c0_i32_0, %c0_i32_1 : i32, i32, i32
  }
  func.func @transform_2(%arg0: i32, %arg1: i32) -> (i32, i32) {
    %c0_i32 = arith.constant 0 : i32
    %c0_i32_0 = arith.constant 0 : i32
    %c0_i32_1 = arith.constant 0 : i32
    return %c0_i32, %c0_i32_0 : i32, i32
  }
  func.func @transform_3(%arg0: i32, %arg1: i32) -> (i32, i32) {
    %c0_i32 = arith.constant 0 : i32
    %c0_i32_0 = arith.constant 0 : i32
    %c0_i32_1 = arith.constant 0 : i32
    return %c0_i32, %c0_i32_0 : i32, i32
  }
  func.func @transform_4(%arg0: i32, %arg1: i32) -> (i32, i32, i32) {
    %c0_i32 = arith.constant 0 : i32
    %c0_i32_0 = arith.constant 0 : i32
    return %arg0, %arg1, %c0_i32 : i32, i32, i32
  }
  func.func @transform_5(%arg0: i32, %arg1: i32) -> (i32, i32, i32, i32) {
    %c0_i32 = arith.constant 0 : i32
    %c0_i32_0 = arith.constant 0 : i32
    %c0_i32_1 = arith.constant 0 : i32
    return %arg0, %arg1, %c0_i32, %c0_i32_0 : i32, i32, i32, i32
  }
}

module attributes {stable_mosaic.version = 11 : i64} {
  func.func @_affine_kernel(%arg0: i32, %arg1: i32, %arg2: memref<1x160x128xf32, #tpu.memory_space<vmem>>, %arg3: memref<1x128xf32, #tpu.memory_space<vmem>>, %arg4: memref<1x128xf32, #tpu.memory_space<vmem>>, %arg5: memref<1x160x128xf32, #tpu.memory_space<vmem>>) attributes {dimension_semantics = [#tpu.dimension_semantics<parallel>, #tpu.dimension_semantics<parallel>], iteration_bounds = array<i64: 2, 2>, scalar_prefetch = 0 : i64, scratch_operands = 0 : i64, tpu.core_type = #tpu.core_type<tc>, window_params = [{transform_indices = @transform_0, window_bounds = array<i64: 1, 160, 128>}, {pipeline_mode = #tpu.pipeline_mode<synchronous>, transform_indices = @transform_1, window_bounds = array<i64: 1, 128>}, {pipeline_mode = #tpu.pipeline_mode<synchronous>, transform_indices = @transform_2, window_bounds = array<i64: 1, 128>}, {transform_indices = @transform_3, window_bounds = array<i64: 1, 160, 128>}]} {
    %c0 = arith.constant 0 : index
    %c0_0 = arith.constant 0 : index
    %c0_1 = arith.constant 0 : index
    %0 = vector.load %arg2[%c0, %c0_0, %c0_1] : memref<1x160x128xf32, #tpu.memory_space<vmem>>, vector<1x160x128xf32>
    %c0_2 = arith.constant 0 : index
    %c0_3 = arith.constant 0 : index
    %1 = vector.load %arg3[%c0_2, %c0_3] : memref<1x128xf32, #tpu.memory_space<vmem>>, vector<1x128xf32>
    %2 = vector.shape_cast %1 : vector<1x128xf32> to vector<1x1x128xf32>
    %3 = vector.broadcast %2 : vector<1x1x128xf32> to vector<1x160x128xf32>
    %4 = arith.mulf %0, %3 : vector<1x160x128xf32>
    %c0_4 = arith.constant 0 : index
    %c0_5 = arith.constant 0 : index
    %5 = vector.load %arg4[%c0_4, %c0_5] : memref<1x128xf32, #tpu.memory_space<vmem>>, vector<1x128xf32>
    %6 = vector.shape_cast %5 : vector<1x128xf32> to vector<1x1x128xf32>
    %7 = vector.broadcast %6 : vector<1x1x128xf32> to vector<1x160x128xf32>
    %8 = arith.addf %4, %7 : vector<1x160x128xf32>
    %c0_6 = arith.constant 0 : index
    %c0_7 = arith.constant 0 : index
    %c0_8 = arith.constant 0 : index
    %9 = vector.load %arg5[%c0_6, %c0_7, %c0_8] : memref<1x160x128xf32, #tpu.memory_space<vmem>>, vector<1x160x128xf32>
    tpu.vector_store %arg5[%c0_6, %c0_7, %c0_8], %8 {strides = array<i32>} : memref<1x160x128xf32, #tpu.memory_space<vmem>>, vector<1x160x128xf32>,
    return
  }
  func.func @transform_0(%arg0: i32, %arg1: i32) -> (i32, i32, i32) {
    %c0_i32 = arith.constant 0 : i32
    %c0_i32_0 = arith.constant 0 : i32
    return %arg0, %arg1, %c0_i32 : i32, i32, i32
  }
  func.func @transform_1(%arg0: i32, %arg1: i32) -> (i32, i32) {
    %c0_i32 = arith.constant 0 : i32
    %c0_i32_0 = arith.constant 0 : i32
    %c0_i32_1 = arith.constant 0 : i32
    return %c0_i32, %c0_i32_0 : i32, i32
  }
  func.func @transform_2(%arg0: i32, %arg1: i32) -> (i32, i32) {
    %c0_i32 = arith.constant 0 : i32
    %c0_i32_0 = arith.constant 0 : i32
    %c0_i32_1 = arith.constant 0 : i32
    return %c0_i32, %c0_i32_0 : i32, i32
  }
  func.func @transform_3(%arg0: i32, %arg1: i32) -> (i32, i32, i32) {
    %c0_i32 = arith.constant 0 : i32
    %c0_i32_0 = arith.constant 0 : i32
    return %arg0, %arg1, %c0_i32 : i32, i32, i32
  }
}

</mosaic_0001>

<bundles_post_ra>
// kernel: dilated_block.5
= control target key start
LH: loop header
LB: loop body
LE: loop exit
PB: predicated region body
PF: predicated region fallthrough
CT: control target
= control target key end

     0   :  { %s648_s12 = smov 0   ;;  %s650_s13 = smov 0   ;;  %s780_s0 = inlined_call_operand.vmem [shape: bf16[2,320,128], index: 0, kind: input, shape index: {}]   ;;  %s781_s1 = inlined_call_operand.vmem [shape: f32[1,128], index: 1, kind: input, shape index: {}]   ;;  %s782_s2 = inlined_call_operand.vmem [shape: f32[1,128], index: 2, kind: input, shape index: {}]   ;;  %s783_s3 = inlined_call_operand.vmem [shape: bf16[2,320,128], index: 3, kind: output, shape index: {}]  }
   0x1   :  { %s652_s14 = smov 0   ;;  %s654_s15 = smov 0  }
   0x2   :  { %s656_s16 = smov 0  }
   0x3 LB: > { %s22_s17 = sadd.s32 1, %s618_s14  ;;  %s25_s18 = sadd.s32 1, %s622_s15  ;;  %s626_s16 = sphi %s656_s16, %s13_s16   ;;  %s622_s15 = sphi %s654_s15, %s787_s15   ;;  %s618_s14 = sphi %s652_s14, %s786_s14   ;;  %s614_s13 = sphi %s650_s13, %s785_s13   ;;  %s610_s12 = sphi %s648_s12, %s784_s12  }
   0x4   : > { %p23_p0 = scmp.ge.s32.totalorder %s22_s17, 2  ;;  %p432_p1 = scmp.ge.s32.totalorder %s626_s16, 1 }
   0x5   : > { %p158_p2 = scmp.lt.s32.totalorder %s626_s16, 5 }
   0x6   : > { %s789_s17 = smov (%p23_p0, %s22_s17), 0  ;;  %s791_s18 = smov (!%p23_p0, %s25_s18), %s622_s15 }
   0x7   : > { %p159_p3 = pnand %p432_p1, %p158_p2  ;;  %p27_p4 = scmp.ge.s32.totalorder %s791_s18, 2 }
   0x8   : > { %s190_s19 = smul.u32 (!%p159_p3), 20, %s610_s12  ;;  %p191_p5 = scmp.lt.s32.totalorder (!%p159_p3), %s614_s13, 1 }
   0x9   : > { %s793_s18 = smov (%p27_p4, %s791_s18), 0  ;;  %162 = sbr.rel (%p159_p3) target bundleno = 44 (0x2c), region = 32 }
   0xa   : > { %p193_p6 = scmp.lt.s32.totalorder (!%p159_p3), %s190_s19, 39 }
   0xe   : > { %s795_s13 = smov (!%p191_p5, %s614_s13), 1  ;;  %s797_s19 = smov (!%p193_p6, %s190_s19), 39  ;;  %v691_v0 = vld [vmem:[%s781_s1] ss:$0 sm:$0xff] }
   0xf   : > { %s545_s20 = smul.u32 40, %s795_s13  ;;  %v699_v6 = vld [vmem:[%s782_s2] ss:$0 sm:$0xff] }
  0x11   : > { %s678_s21 = sadd.s32 %s545_s20, %s797_s19 }
  0x12   : > { %s433_s22 = sshll.u32 %s678_s21, 2 }
  0x13   : > { %s686_s25 = scalar_lea.vmem %s780_s0, %s433_s22  ;;  %s721_s5 = scalar_lea.vmem %s783_s3, %s433_s22 }
  0x14   : > { %v438_v1 = vld [vmem:[%s686_s25] sm:$0xff]   ;;  %v527_v2 = vld [vmem:[%s686_s25 + $0x8] sm:$0xff]   ;;  %v528_v3 = vld [vmem:[%s686_s25 + $0x10] sm:$0xff]  }
  0x15   : > { %v439_v4 = vunpack.c.l.bf16 %v438_v1  ;;  %v440_v5 = vunpack.c.h.bf16 %v438_v1  ;;  %v443_v7 = vunpack.c.l.bf16 %v527_v2  ;;  %v444_v8 = vunpack.c.h.bf16 %v527_v2  ;;  %v529_v9 = vld [vmem:[%s686_s25 + $0x18] sm:$0xff]   ;;  %v530_v22 = vld [vmem:[%s686_s25 + $0x20] sm:$0xff]   ;;  %v531_v27 = vld [vmem:[%s686_s25 + $0x28] sm:$0xff]  }
  0x16   : > { %v447_v10 = vunpack.c.l.bf16 %v528_v3  ;;  %v448_v11 = vunpack.c.h.bf16 %v528_v3  ;;  %v451_v12 = vunpack.c.l.bf16 %v529_v9  ;;  %v452_v13 = vunpack.c.h.bf16 %v529_v9  ;;  %v532_v32 = vld [vmem:[%s686_s25 + $0x30] sm:$0xff]   ;;  %v533_v37 = vld [vmem:[%s686_s25 + $0x38] sm:$0xff]   ;;  %v534_v50 = vld [vmem:[%s686_s25 + $0x40] sm:$0xff]  }
  0x17   : > { %v254_v14 = vmul.f32 %v691_v0, %v439_v4  ;;  %v255_v15 = vmul.f32 %v691_v0, %v440_v5  ;;  %v256_v16 = vmul.f32 %v691_v0, %v443_v7  ;;  %v257_v17 = vmul.f32 %v691_v0, %v444_v8  ;;  %v535_v59 = vld [vmem:[%s686_s25 + $0x48] sm:$0xff]  }
  0x18   : > { %v258_v18 = vmul.f32 %v691_v0, %v447_v10  ;;  %v259_v19 = vmul.f32 %v691_v0, %v448_v11  ;;  %v260_v20 = vmul.f32 %v691_v0, %v451_v12  ;;  %v261_v21 = vmul.f32 %v691_v0, %v452_v13 }
  0x19   : > { %v278_v23 = vadd.f32 %v699_v6, %v254_v14  ;;  %v279_v24 = vadd.f32 %v699_v6, %v255_v15  ;;  %v280_v25 = vadd.f32 %v699_v6, %v256_v16  ;;  %v281_v26 = vadd.f32 %v699_v6, %v257_v17 }
  0x1a   : > { %v282_v28 = vadd.f32 %v699_v6, %v258_v18  ;;  %v283_v29 = vadd.f32 %v699_v6, %v259_v19  ;;  %v284_v30 = vadd.f32 %v699_v6, %v260_v20  ;;  %v285_v31 = vadd.f32 %v699_v6, %v261_v21 }
  0x1b   : > { %v480_v33 = vpack.c.bf16 %v279_v24, %v278_v23  ;;  %v485_v34 = vpack.c.bf16 %v281_v26, %v280_v25  ;;  %v455_v35 = vunpack.c.l.bf16 %v530_v22  ;;  %v456_v36 = vunpack.c.h.bf16 %v530_v22 }
  0x1c   : > { %v490_v38 = vpack.c.bf16 %v283_v29, %v282_v28  ;;  %v495_v39 = vpack.c.bf16 %v285_v31, %v284_v30  ;;  %v459_v40 = vunpack.c.l.bf16 %v531_v27  ;;  %v460_v41 = vunpack.c.h.bf16 %v531_v27 }
  0x1d   : > { %481 = vst [vmem:[%s721_s5] sm:$0xff] %v480_v33   ;;  %v262_v42 = vmul.f32 %v691_v0, %v455_v35  ;;  %v263_v43 = vmul.f32 %v691_v0, %v456_v36  ;;  %v463_v44 = vunpack.c.l.bf16 %v532_v32  ;;  %v464_v45 = vunpack.c.h.bf16 %v532_v32 }
  0x1e   : > { %536 = vst [vmem:[%s721_s5 + $0x8] sm:$0xff] %v485_v34   ;;  %v264_v46 = vmul.f32 %v691_v0, %v459_v40  ;;  %v265_v47 = vmul.f32 %v691_v0, %v460_v41  ;;  %v467_v48 = vunpack.c.l.bf16 %v533_v37  ;;  %v468_v49 = vunpack.c.h.bf16 %v533_v37 }
  0x1f   : > { %537 = vst [vmem:[%s721_s5 + $0x10] sm:$0xff] %v490_v38   ;;  %v286_v51 = vadd.f32 %v699_v6, %v262_v42  ;;  %v287_v52 = vadd.f32 %v699_v6, %v263_v43  ;;  %v266_v53 = vmul.f32 %v691_v0, %v463_v44  ;;  %v267_v54 = vmul.f32 %v691_v0, %v464_v45 }
  0x20   : > { %538 = vst [vmem:[%s721_s5 + $0x18] sm:$0xff] %v495_v39   ;;  %v288_v55 = vadd.f32 %v699_v6, %v264_v46  ;;  %v289_v56 = vadd.f32 %v699_v6, %v265_v47  ;;  %v268_v57 = vmul.f32 %v691_v0, %v467_v48  ;;  %v269_v58 = vmul.f32 %v691_v0, %v468_v49 }
  0x21   : > { %v500_v60 = vpack.c.bf16 %v287_v52, %v286_v51  ;;  %v290_v61 = vadd.f32 %v699_v6, %v266_v53  ;;  %v291_v62 = vadd.f32 %v699_v6, %v267_v54  ;;  %v471_v63 = vunpack.c.l.bf16 %v534_v50 }
  0x22   : > { %v505_v1 = vpack.c.bf16 %v289_v56, %v288_v55  ;;  %v292_v2 = vadd.f32 %v699_v6, %v268_v57  ;;  %v293_v3 = vadd.f32 %v699_v6, %v269_v58  ;;  %v472_v4 = vunpack.c.h.bf16 %v534_v50 }
  0x23   : > { %539 = vst [vmem:[%s721_s5 + $0x20] sm:$0xff] %v500_v60   ;;  %v510_v5 = vpack.c.bf16 %v291_v62, %v290_v61  ;;  %v270_v7 = vmul.f32 %v691_v0, %v471_v63  ;;  %v475_v8 = vunpack.c.l.bf16 %v535_v59  ;;  %v476_v9 = vunpack.c.h.bf16 %v535_v59 }
  0x24   : > { %540 = vst [vmem:[%s721_s5 + $0x28] sm:$0xff] %v505_v1   ;;  %v515_v10 = vpack.c.bf16 %v293_v3, %v292_v2  ;;  %v271_v11 = vmul.f32 %v691_v0, %v472_v4 }
  0x25   : > { %541 = vst [vmem:[%s721_s5 + $0x30] sm:$0xff] %v510_v5   ;;  %v294_v12 = vadd.f32 %v699_v6, %v270_v7  ;;  %v272_v13 = vmul.f32 %v691_v0, %v475_v8  ;;  %v273_v14 = vmul.f32 %v691_v0, %v476_v9 }
  0x26   : > { %542 = vst [vmem:[%s721_s5 + $0x38] sm:$0xff] %v515_v10   ;;  %v295_v15 = vadd.f32 %v699_v6, %v271_v11 }
  0x27   : > { %v296_v16 = vadd.f32 %v699_v6, %v272_v13  ;;  %v297_v17 = vadd.f32 %v699_v6, %v273_v14 }
  0x28   : > { %v520_v18 = vpack.c.bf16 %v295_v15, %v294_v12 }
  0x29   : > { %v525_v19 = vpack.c.bf16 %v297_v17, %v296_v16 }
  0x2a   : > { %543 = vst [vmem:[%s721_s5 + $0x40] sm:$0xff] %v520_v18  }
  0x2b   : > { %544 = vst [vmem:[%s721_s5 + $0x48] sm:$0xff] %v525_v19  }
  0x2c PF: > { %s13_s16 = sadd.s32 1, %s626_s16   ;;  %s784_s12 = smov %s618_s14 }
  0x2d   : > { %p10_p7 = scmp.ge.s32.totalorder %s13_s16, 6   ;;  %s785_s13 = smov %s622_s15 }
  0x2e   : > { %s786_s14 = smov %s789_s17  ;;  %s787_s15 = smov %s793_s18 }
  0x2f   :  { %12 = sbr.rel (!%p10_p7) target bundleno = 3 (0x3), region = 62 }

// kernel: dilated_block.7
= control target key start
LH: loop header
LB: loop body
LE: loop exit
PB: predicated region body
PF: predicated region fallthrough
CT: control target
= control target key end

     0   :  { %s500_s12 = smov 0   ;;  %s502_s13 = smov 0   ;;  %s645_s0 = inlined_call_operand.vmem [shape: f32[2,320,128], index: 0, kind: input, shape index: {}]   ;;  %s646_s1 = inlined_call_operand.vmem [shape: f32[1,128], index: 1, kind: input, shape index: {}]   ;;  %s647_s2 = inlined_call_operand.vmem [shape: f32[1,128], index: 2, kind: input, shape index: {}]   ;;  %s648_s3 = inlined_call_operand.vmem [shape: f32[2,320,128], index: 3, kind: output, shape index: {}]  }
   0x1   :  { %s504_s14 = smov 0   ;;  %s506_s15 = smov 0  }
   0x2   :  { %s508_s16 = smov 0  }
   0x3 LB: > { %s22_s17 = sadd.s32 1, %s470_s14  ;;  %s25_s18 = sadd.s32 1, %s474_s15  ;;  %s478_s16 = sphi %s508_s16, %s13_s16   ;;  %s474_s15 = sphi %s506_s15, %s652_s15   ;;  %s470_s14 = sphi %s504_s14, %s651_s14   ;;  %s466_s13 = sphi %s502_s13, %s650_s13   ;;  %s462_s12 = sphi %s500_s12, %s649_s12  }
   0x4   : > { %p23_p0 = scmp.ge.s32.totalorder %s22_s17, 2  ;;  %p392_p1 = scmp.ge.s32.totalorder %s478_s16, 1 }
   0x5   : > { %p158_p2 = scmp.lt.s32.totalorder %s478_s16, 5 }
   0x6   : > { %s654_s17 = smov (%p23_p0, %s22_s17), 0  ;;  %s656_s18 = smov (!%p23_p0, %s25_s18), %s474_s15 }
   0x7   : > { %p159_p3 = pnand %p392_p1, %p158_p2  ;;  %p27_p4 = scmp.ge.s32.totalorder %s656_s18, 2 }
   0x8   : > { %s190_s19 = smul.u32 (!%p159_p3), 20, %s462_s12  ;;  %p191_p5 = scmp.lt.s32.totalorder (!%p159_p3), %s466_s13, 1 }
   0x9   : > { %s658_s18 = smov (%p27_p4, %s656_s18), 0  ;;  %162 = sbr.rel (%p159_p3) target bundleno = 45 (0x2d), region = 32 }
   0xa   : > { %p193_p6 = scmp.lt.s32.totalorder (!%p159_p3), %s190_s19, 39 }
   0xe   : > { %s660_s13 = smov (!%p191_p5, %s466_s13), 1  ;;  %s662_s19 = smov (!%p193_p6, %s190_s19), 39  ;;  %v533_v0 = vld [vmem:[%s646_s1] ss:$0 sm:$0xff] }
   0xf   : > { %s397_s20 = smul.u32 40, %s660_s13  ;;  %v543_v1 = vld [vmem:[%s647_s2] ss:$0 sm:$0xff] }
  0x11   : > { %s196_s21 = sadd.s32 %s397_s20, %s662_s19 }
  0x12   : > { %s393_s24 = sshll.u32 %s196_s21, 3 }
  0x13   : > { %s538_s27 = scalar_lea.vmem %s645_s0, %s393_s24  ;;  %s557_s5 = scalar_lea.vmem %s648_s3, %s393_s24 }
  0x14   : > { %v210_v2 = vld [vmem:[%s538_s27] sm:$0xff]  ;;  %v211_v3 = vld [vmem:[%s538_s27 + $0x8] sm:$0xff]  ;;  %v212_v4 = vld [vmem:[%s538_s27 + $0x10] sm:$0xff] }
  0x15   : > { %v234_v5 = vmul.f32 %v533_v0, %v210_v2  ;;  %v235_v6 = vmul.f32 %v533_v0, %v211_v3  ;;  %v236_v7 = vmul.f32 %v533_v0, %v212_v4  ;;  %v213_v8 = vld [vmem:[%s538_s27 + $0x18] sm:$0xff]  ;;  %v214_v9 = vld [vmem:[%s538_s27 + $0x20] sm:$0xff]  ;;  %v215_v10 = vld [vmem:[%s538_s27 + $0x28] sm:$0xff] }
  0x16   : > { %v237_v11 = vmul.f32 %v533_v0, %v213_v8  ;;  %v238_v12 = vmul.f32 %v533_v0, %v214_v9  ;;  %v239_v13 = vmul.f32 %v533_v0, %v215_v10  ;;  %v216_v14 = vld [vmem:[%s538_s27 + $0x30] sm:$0xff]  ;;  %v217_v15 = vld [vmem:[%s538_s27 + $0x38] sm:$0xff]  ;;  %v218_v16 = vld [vmem:[%s538_s27 + $0x40] sm:$0xff] }
  0x17   : > { %v258_v17 = vadd.f32 %v543_v1, %v234_v5  ;;  %v259_v18 = vadd.f32 %v543_v1, %v235_v6  ;;  %v260_v19 = vadd.f32 %v543_v1, %v236_v7  ;;  %v240_v20 = vmul.f32 %v533_v0, %v216_v14  ;;  %v219_v21 = vld [vmem:[%s538_s27 + $0x48] sm:$0xff]  ;;  %v220_v24 = vld [vmem:[%s538_s27 + $0x50] sm:$0xff]  ;;  %v221_v27 = vld [vmem:[%s538_s27 + $0x58] sm:$0xff] }
  0x18   : > { %v261_v22 = vadd.f32 %v543_v1, %v237_v11  ;;  %v241_v23 = vmul.f32 %v533_v0, %v217_v15  ;;  %v262_v25 = vadd.f32 %v543_v1, %v238_v12  ;;  %v242_v26 = vmul.f32 %v533_v0, %v218_v16  ;;  %v222_v30 = vld [vmem:[%s538_s27 + $0x60] sm:$0xff]  ;;  %v223_v33 = vld [vmem:[%s538_s27 + $0x68] sm:$0xff]  ;;  %v224_v36 = vld [vmem:[%s538_s27 + $0x70] sm:$0xff] }
  0x19   : > { %278 = vst [vmem:[%s557_s5] sm:$0xff] %v258_v17  ;;  %v263_v28 = vadd.f32 %v543_v1, %v239_v13  ;;  %v243_v29 = vmul.f32 %v533_v0, %v219_v21  ;;  %v264_v31 = vadd.f32 %v543_v1, %v240_v20  ;;  %v244_v32 = vmul.f32 %v533_v0, %v220_v24  ;;  %v225_v39 = vld [vmem:[%s538_s27 + $0x78] sm:$0xff]  ;;  %v226_v42 = vld [vmem:[%s538_s27 + $0x80] sm:$0xff]  ;;  %v227_v45 = vld [vmem:[%s538_s27 + $0x88] sm:$0xff] }
  0x1a   : > { %279 = vst [vmem:[%s557_s5 + $0x8] sm:$0xff] %v259_v18  ;;  %v265_v34 = vadd.f32 %v543_v1, %v241_v23  ;;  %v245_v35 = vmul.f32 %v533_v0, %v221_v27  ;;  %v266_v37 = vadd.f32 %v543_v1, %v242_v26  ;;  %v246_v38 = vmul.f32 %v533_v0, %v222_v30  ;;  %v228_v48 = vld [vmem:[%s538_s27 + $0x90] sm:$0xff]  ;;  %v229_v51 = vld [vmem:[%s538_s27 + $0x98] sm:$0xff] }
  0x1b   : > { %280 = vst [vmem:[%s557_s5 + $0x10] sm:$0xff] %v260_v19  ;;  %v267_v40 = vadd.f32 %v543_v1, %v243_v29  ;;  %v247_v41 = vmul.f32 %v533_v0, %v223_v33  ;;  %v268_v43 = vadd.f32 %v543_v1, %v244_v32  ;;  %v248_v44 = vmul.f32 %v533_v0, %v224_v36 }
  0x1c   : > { %281 = vst [vmem:[%s557_s5 + $0x18] sm:$0xff] %v261_v22  ;;  %v269_v46 = vadd.f32 %v543_v1, %v245_v35  ;;  %v249_v47 = vmul.f32 %v533_v0, %v225_v39  ;;  %v270_v49 = vadd.f32 %v543_v1, %v246_v38  ;;  %v250_v50 = vmul.f32 %v533_v0, %v226_v42 }
  0x1d   : > { %282 = vst [vmem:[%s557_s5 + $0x20] sm:$0xff] %v262_v25  ;;  %v271_v52 = vadd.f32 %v543_v1, %v247_v41  ;;  %v251_v53 = vmul.f32 %v533_v0, %v227_v45  ;;  %v272_v54 = vadd.f32 %v543_v1, %v248_v44  ;;  %v252_v55 = vmul.f32 %v533_v0, %v228_v48 }
  0x1e   : > { %283 = vst [vmem:[%s557_s5 + $0x28] sm:$0xff] %v263_v28  ;;  %v273_v56 = vadd.f32 %v543_v1, %v249_v47  ;;  %v253_v57 = vmul.f32 %v533_v0, %v229_v51  ;;  %v274_v58 = vadd.f32 %v543_v1, %v250_v50 }
  0x1f   : > { %284 = vst [vmem:[%s557_s5 + $0x30] sm:$0xff] %v264_v31  ;;  %v275_v59 = vadd.f32 %v543_v1, %v251_v53  ;;  %v276_v60 = vadd.f32 %v543_v1, %v252_v55 }
  0x20   : > { %285 = vst [vmem:[%s557_s5 + $0x38] sm:$0xff] %v265_v34  ;;  %v277_v61 = vadd.f32 %v543_v1, %v253_v57 }
  0x21   : > { %286 = vst [vmem:[%s557_s5 + $0x40] sm:$0xff] %v266_v37 }
  0x22   : > { %287 = vst [vmem:[%s557_s5 + $0x48] sm:$0xff] %v267_v40 }
  0x23   : > { %288 = vst [vmem:[%s557_s5 + $0x50] sm:$0xff] %v268_v43 }
  0x24   : > { %289 = vst [vmem:[%s557_s5 + $0x58] sm:$0xff] %v269_v46 }
  0x25   : > { %290 = vst [vmem:[%s557_s5 + $0x60] sm:$0xff] %v270_v49 }
  0x26   : > { %291 = vst [vmem:[%s557_s5 + $0x68] sm:$0xff] %v271_v52 }
  0x27   : > { %292 = vst [vmem:[%s557_s5 + $0x70] sm:$0xff] %v272_v54 }
  0x28   : > { %293 = vst [vmem:[%s557_s5 + $0x78] sm:$0xff] %v273_v56 }
  0x29   : > { %294 = vst [vmem:[%s557_s5 + $0x80] sm:$0xff] %v274_v58 }
  0x2a   : > { %295 = vst [vmem:[%s557_s5 + $0x88] sm:$0xff] %v275_v59 }
  0x2b   : > { %296 = vst [vmem:[%s557_s5 + $0x90] sm:$0xff] %v276_v60 }
  0x2c   : > { %297 = vst [vmem:[%s557_s5 + $0x98] sm:$0xff] %v277_v61 }
  0x2d PF: > { %s13_s16 = sadd.s32 1, %s478_s16   ;;  %s649_s12 = smov %s470_s14 }
  0x2e   : > { %p10_p7 = scmp.ge.s32.totalorder %s13_s16, 6   ;;  %s650_s13 = smov %s474_s15 }
  0x2f   : > { %s651_s14 = smov %s654_s17  ;;  %s652_s15 = smov %s658_s18 }
  0x30   :  { %12 = sbr.rel (!%p10_p7) target bundleno = 3 (0x3), region = 62 }

// kernel: dilated_block.4
= control target key start
LH: loop header
LB: loop body
LE: loop exit
PB: predicated region body
PF: predicated region fallthrough
CT: control target
= control target key end

     0   :  { %s3813_s18 = smov 0   ;;  %s3815_s19 = smov 0   ;;  %s4513_s0 = inlined_call_operand.vmem [shape: bf16[2,400,128], index: 0, kind: input, shape index: {}]   ;;  %s4514_s1 = inlined_call_operand.vmem [shape: bf16[9,128,128], index: 1, kind: input, shape index: {}]   ;;  %s4515_s2 = inlined_call_operand.vmem [shape: f32[1,128], index: 2, kind: input, shape index: {}]   ;;  %s4516_s3 = inlined_call_operand.vmem [shape: f32[160,1], index: 3, kind: input, shape index: {}]   ;;  %s4517_s4 = inlined_call_operand.vmem [shape: bf16[2,320,128], index: 4, kind: output, shape index: {0}]   ;;  %s4518_s5 = inlined_call_operand.vmem [shape: f32[2,2,2,128], index: 5, kind: output, shape index: {1}]  }
   0x1   :  { %s3817_s20 = smov 0   ;;  %s3819_s21 = smov 0  }
   0x2   :  { %s3821_s22 = smov 0  }
   0x3 LB: > { %s25_s23 = sadd.s32 1, %s3772_s20  ;;  %s28_s24 = sadd.s32 1, %s3776_s21  ;;  %s3780_s22 = sphi %s3821_s22, %s16_s22   ;;  %s3776_s21 = sphi %s3819_s21, %s4524_s21   ;;  %s3772_s20 = sphi %s3817_s20, %s4523_s20   ;;  %s3768_s19 = sphi %s3815_s19, %s4522_s19   ;;  %s3764_s18 = sphi %s3813_s18, %s4521_s18  }
   0x4   : > { %p26_p0 = scmp.ge.s32.totalorder %s25_s23, 2  ;;  %p2713_p1 = scmp.ge.s32.totalorder %s3780_s22, 1 }
   0x5   : > { %p172_p2 = scmp.lt.s32.totalorder %s3780_s22, 5 }
   0x6   : > { %s4526_s23 = smov (%p26_p0, %s25_s23), 0  ;;  %s4528_s24 = smov (!%p26_p0, %s28_s24), %s3776_s21 }
   0x7   : > { %p173_p3 = pnand %p2713_p1, %p172_p2  ;;  %p30_p4 = scmp.ge.s32.totalorder %s4528_s24, 2 }
   0x8   : > { %s205_s25 = smul.u32 (!%p173_p3), 20, %s3764_s18  ;;  %p206_p5 = scmp.lt.s32.totalorder (!%p173_p3), %s3768_s19, 1 }
   0x9   : > { %s4530_s24 = smov (%p30_p4, %s4528_s24), 0  ;;  %176 = sbr.rel (%p173_p3) target bundleno = 589 (0x24d), region = 32 }
   0xa   : > { %4519 = sst [smem:[#allocation6_spill]] %s4530_s24  ;;  %p217_p6 = scmp.lt.s32.totalorder (!%p173_p3), %s3764_s18, 1 }
   0xb   : > { %s225_s26 = smul.u32 (!%p173_p3), 160, %s3764_s18  ;;  %p208_p7 = scmp.lt.s32.totalorder (!%p173_p3), %s205_s25, 39 }
   0xc   : > { %s228_s7 = smul.u32 (!%p173_p3), 50, %s3768_s19 }
   0xd   : > { %s226_s28 = sshra.s32 (!%p173_p3), %s225_s26, 3 }
   0xe   : > { %v3782_v0 = vmov 0   ;;  %s207_s27 = scalar_select %p206_p5, %s3768_s19, 1 }
   0xf   : > { %224 = vst [vmem:[#allocation2 + $0x78] sm:$0xf] %v3782_v0  ;;  %s4532_s25 = smov (!%p208_p7, %s205_s25), 39  ;;  %s4534_s18 = smov (!%p217_p6, %s3764_s18), 1 }
  0x10   : > { %s3694_s29 = smul.u32 40, %s207_s27  ;;  %s2715_s30 = sshll.u32 %s207_s27, 1 }
  0x11   : > { %s220_s9 = sadd.s32 %s2715_s30, %s4534_s18  ;;  %s229_s17 = sadd.s32 %s228_s7, %s226_s28 }
  0x12   : > { %s211_s6 = sadd.s32 %s3694_s29, %s4532_s25  ;;  %s2716_s13 = sshll.u32 %s220_s9, 1 }
  0x13   : > { %s2714_s8 = sshll.u32 %s211_s6, 2  ;;  %s3856_s16 = scalar_lea.vmem %s4518_s5, %s2716_s13 }
  0x14   : > { %s3851_s12 = scalar_lea.vmem %s4517_s4, %s2714_s8  ;;  %s2717_s26 = sshll.u32 %s229_s17, 2 }
  0x15   : > { %s231_s25 = scalar_lea.vmem %s4513_s0, %s2717_s26 }
  0x16   : > { %v242_v1 = vld [vmem:[%s231_s25] sm:$0xff]  ;;  %v244_v2 = vld [vmem:[%s231_s25 + $0x8] sm:$0xff]  ;;  %v246_v3 = vld [vmem:[%s231_s25 + $0x10] sm:$0xff] }
  0x17   : > { %243 = vst [vmem:[#allocation2] sm:$0xff] %v242_v1  ;;  %v248_v4 = vld [vmem:[%s231_s25 + $0x18] sm:$0xff]  ;;  %v250_v5 = vld [vmem:[%s231_s25 + $0x20] sm:$0xff]  ;;  %v252_v6 = vld [vmem:[%s231_s25 + $0x28] sm:$0xff] }
  0x18   : > { %245 = vst [vmem:[#allocation2 + $0x8] sm:$0xff] %v244_v2  ;;  %v254_v7 = vld [vmem:[%s231_s25 + $0x30] sm:$0xff]  ;;  %v256_v8 = vld [vmem:[%s231_s25 + $0x38] sm:$0xff]  ;;  %v258_v9 = vld [vmem:[%s231_s25 + $0x40] sm:$0xff] }
  0x19   : > { %247 = vst [vmem:[#allocation2 + $0x10] sm:$0xff] %v246_v3  ;;  %v260_v10 = vld [vmem:[%s231_s25 + $0x48] sm:$0xff]  ;;  %v262_v11 = vld [vmem:[%s231_s25 + $0x50] sm:$0xff]  ;;  %v264_v12 = vld [vmem:[%s231_s25 + $0x58] sm:$0xff] }
  0x1a   : > { %249 = vst [vmem:[#allocation2 + $0x18] sm:$0xff] %v248_v4  ;;  %v266_v13 = vld [vmem:[%s231_s25 + $0x60] sm:$0xff]  ;;  %v268_v14 = vld [vmem:[%s231_s25 + $0x68] sm:$0xff]  ;;  %v270_v15 = vld [vmem:[%s231_s25 + $0x70] sm:$0xff] }
  0x1b   : > { %251 = vst [vmem:[#allocation2 + $0x20] sm:$0xff] %v250_v5 }
  0x1c   : > { %253 = vst [vmem:[#allocation2 + $0x28] sm:$0xff] %v252_v6 }
  0x1d   : > { %255 = vst [vmem:[#allocation2 + $0x30] sm:$0xff] %v254_v7 }
  0x1e   : > { %257 = vst [vmem:[#allocation2 + $0x38] sm:$0xff] %v256_v8 }
  0x1f   : > { %259 = vst [vmem:[#allocation2 + $0x40] sm:$0xff] %v258_v9 }
  0x20   : > { %261 = vst [vmem:[#allocation2 + $0x48] sm:$0xff] %v260_v10 }
  0x21   : > { %263 = vst [vmem:[#allocation2 + $0x50] sm:$0xff] %v262_v11 }
  0x22   : > { %265 = vst [vmem:[#allocation2 + $0x58] sm:$0xff] %v264_v12 }
  0x23   : > { %267 = vst [vmem:[#allocation2 + $0x60] sm:$0xff] %v266_v13 }
  0x24   : > { %269 = vst [vmem:[#allocation2 + $0x68] sm:$0xff] %v268_v14 }
  0x25   : > { %271 = vst [vmem:[#allocation2 + $0x70] sm:$0xff] %v270_v15 }
  0x26   : > { %277 = vsyncadd [#allocation3], 1920 }
  0x27   : > { %3760 = dma.done.wait [#allocation3], 1920 }
  0x28   : > { %3761 = vsyncadd [#allocation3], 4294965376  ;;  %3736 = vset.pattern.permute.xlu0 %v3782_v0  ;;  %3737 = vset.pattern.permute.xlu1 %v3782_v0  ;;  %v3349_v16 = vld [vmem:[%s4514_s1 + $0x78] sm:$0xff]  ;;  %v3348_v17 = vld [vmem:[%s4514_s1 + $0x70] sm:$0xff]  ;;  %vm545_vm0 = vcmask 1046528   ;;  %vm829_vm1 = vcmask 1045504  }
  0x29   : > { %3738 = vset.pattern.permute.xlu2 %v3782_v0  ;;  %625 = vmatpush.bf16.msra.mxu0 %v3349_v16  ;;  %v3445_v18 = vld [vmem:[#allocation2] sm:$0xff]   ;;  %v3633_v21 = vld [vmem:[#allocation2 + $0x8] sm:$0xff]   ;;  %v3635_v22 = vld [vmem:[#allocation2 + $0x18] sm:$0xff]   ;;  %vm2534_vm2 = vcmask 1040384  }
  0x2a   : > { %3670 = vmatpush.bf16.msra.mxu1 %v3349_v16  ;;  %3671 = vmatpush.bf16.msra.mxu2 %v3349_v16  ;;  %v3446_v19 = vunpack.c.l.bf16 %v3445_v18  ;;  %v3447_v20 = vunpack.c.h.bf16 %v3445_v18  ;;  %v3636_v23 = vld [vmem:[#allocation2 + $0x20] sm:$0xff]   ;;  %v3450_v24 = vunpack.c.l.bf16 %v3633_v21  ;;  %v3451_v25 = vunpack.c.h.bf16 %v3633_v21  ;;  %v3638_v28 = vld [vmem:[#allocation2 + $0x30] sm:$0xff]   ;;  %v3639_v33 = vld [vmem:[#allocation2 + $0x38] sm:$0xff]  }
  0x2b   : > { %3672 = vmatpush.bf16.msra.mxu3 %v3349_v16  ;;  %v3458_v26 = vunpack.c.l.bf16 %v3635_v22  ;;  %v3459_v27 = vunpack.c.h.bf16 %v3635_v22  ;;  %v3462_v31 = vunpack.c.l.bf16 %v3636_v23  ;;  %v3463_v32 = vunpack.c.h.bf16 %v3636_v23  ;;  %v3347_v34 = vld [vmem:[%s4514_s1 + $0x68] sm:$0xff]  ;;  %v3640_v43 = vld [vmem:[#allocation2 + $0x40] sm:$0xff]   ;;  %v3634_v52 = vld [vmem:[#allocation2 + $0x10] sm:$0xff]  }
  0x2c   : > { %v344_v29 = vmax.f32 %v3446_v19, 0.0  ;;  %v345_v30 = vmax.f32 %v3447_v20, 0.0  ;;  %v346_v35 = vmax.f32 %v3450_v24, 0.0  ;;  %v347_v36 = vmax.f32 %v3451_v25, 0.0  ;;  %v3641_v48 = vld [vmem:[#allocation2 + $0x48] sm:$0xff]   ;;  %v3346_v53 = vld [vmem:[%s4514_s1 + $0x60] sm:$0xff] }
  0x2d   : > { %626 = vmatpush.bf16.msra.mxu0 %v3348_v17  ;;  %v350_v37 = vmax.f32 %v3458_v26, 0.0  ;;  %v351_v38 = vmax.f32 %v3459_v27, 0.0  ;;  %v352_v40 = vmax.f32 %v3462_v31, 0.0  ;;  %v353_v41 = vmax.f32 %v3463_v32, 0.0  ;;  %v3637_v62 = vld [vmem:[#allocation2 + $0x28] sm:$0xff]   ;;  %v3642_v3 = vld [vmem:[#allocation2 + $0x50] sm:$0xff]  }
  0x2e   : > { %3673 = vmatpush.bf16.msra.mxu1 %v3348_v17  ;;  %3674 = vmatpush.bf16.msra.mxu2 %v3348_v17  ;;  %v3870_v39 = vpack.c.bf16 %v345_v30, %v344_v29  ;;  %v3470_v42 = vunpack.c.l.bf16 %v3638_v28  ;;  %v3512_v44 = vpack.c.bf16 %v347_v36, %v346_v35  ;;  %v3471_v46 = vunpack.c.h.bf16 %v3638_v28  ;;  %v3345_v8 = vld [vmem:[%s4514_s1 + $0x58] sm:$0xff]  ;;  %v3344_v22 = vld [vmem:[%s4514_s1 + $0x50] sm:$0xff]  ;;  %v3343_v27 = vld [vmem:[%s4514_s1 + $0x48] sm:$0xff] }
  0x2f   : > { %3675 = vmatpush.bf16.msra.mxu3 %v3348_v17  ;;  %v3522_v45 = vpack.c.bf16 %v351_v38, %v350_v37  ;;  %v3474_v47 = vunpack.c.l.bf16 %v3639_v33  ;;  %v3527_v49 = vpack.c.bf16 %v353_v41, %v352_v40  ;;  %v3475_v50 = vunpack.c.h.bf16 %v3639_v33  ;;  %v3342_v36 = vld [vmem:[%s4514_s1 + $0x40] sm:$0xff] }
  0x30   : > { %3508 = vst [vmem:[#allocation2] sm:$0xff] %v3870_v39   ;;  %v356_v51 = vmax.f32 %v3470_v42, 0.0  ;;  %v357_v54 = vmax.f32 %v3471_v46, 0.0  ;;  %v3478_v56 = vunpack.c.l.bf16 %v3640_v43  ;;  %v3479_v57 = vunpack.c.h.bf16 %v3640_v43  ;;  %v3341_v42 = vld [vmem:[%s4514_s1 + $0x38] sm:$0xff] }
  0x31   : > { %627 = vmatpush.bf16.msra.mxu0 %v3347_v34  ;;  %3647 = vst [vmem:[#allocation2 + $0x8] sm:$0xff] %v3512_v44   ;;  %v358_v55 = vmax.f32 %v3474_v47, 0.0  ;;  %v359_v58 = vmax.f32 %v3475_v50, 0.0  ;;  %v3482_v59 = vunpack.c.l.bf16 %v3641_v48  ;;  %v3483_v60 = vunpack.c.h.bf16 %v3641_v48  ;;  %v3392_v50 = vld [vmem:[%s4514_s1 + $0x138] sm:$0xff] }
  0x32   : > { %3676 = vmatpush.bf16.msra.mxu1 %v3347_v34  ;;  %3677 = vmatpush.bf16.msra.mxu2 %v3347_v34  ;;  %3649 = vst [vmem:[#allocation2 + $0x18] sm:$0xff] %v3522_v45   ;;  %v3454_v61 = vunpack.c.l.bf16 %v3634_v52  ;;  %v3537_v63 = vpack.c.bf16 %v357_v54, %v356_v51  ;;  %v360_v0 = vmax.f32 %v3478_v56, 0.0  ;;  %v361_v1 = vmax.f32 %v3479_v57, 0.0  ;;  %v3357_v45 = vld [vmem:[%s4514_s1 + $0xb8] sm:$0xff]  ;;  %v3391_v57 = vld [vmem:[%s4514_s1 + $0x130] sm:$0xff] }
  0x33   : > { %3678 = vmatpush.bf16.msra.mxu3 %v3347_v34  ;;  %3650 = vst [vmem:[#allocation2 + $0x20] sm:$0xff] %v3527_v49   ;;  %v3455_v2 = vunpack.c.h.bf16 %v3634_v52  ;;  %v3542_v4 = vpack.c.bf16 %v359_v58, %v358_v55  ;;  %v362_v5 = vmax.f32 %v3482_v59, 0.0  ;;  %v363_v6 = vmax.f32 %v3483_v60, 0.0  ;;  %v3340_v52 = vld [vmem:[%s4514_s1 + $0x30] sm:$0xff]  ;;  %v3375_v54 = vld [vmem:[%s4514_s1 + $0xf8] sm:$0xff]  ;;  %v3339_v58 = vld [vmem:[%s4514_s1 + $0x28] sm:$0xff] }
  0x34   : > { %v348_v7 = vmax.f32 %v3454_v61, 0.0  ;;  %3652 = vst [vmem:[#allocation2 + $0x30] sm:$0xff] %v3537_v63   ;;  %v3547_v9 = vpack.c.bf16 %v361_v1, %v360_v0  ;;  %v3466_v11 = vunpack.c.l.bf16 %v3637_v62  ;;  %v3467_v12 = vunpack.c.h.bf16 %v3637_v62  ;;  %v3356_v55 = vld [vmem:[%s4514_s1 + $0xb0] sm:$0xff]  ;;  %v3355_v60 = vld [vmem:[%s4514_s1 + $0xa8] sm:$0xff]  ;;  %v3338_v1 = vld [vmem:[%s4514_s1 + $0x20] sm:$0xff] }
  0x35   : > { %628 = vmatpush.bf16.msra.mxu0 %v3346_v53  ;;  %v349_v10 = vmax.f32 %v3455_v2, 0.0  ;;  %3653 = vst [vmem:[#allocation2 + $0x38] sm:$0xff] %v3542_v4   ;;  %v3552_v13 = vpack.c.bf16 %v363_v6, %v362_v5  ;;  %v3486_v14 = vunpack.c.l.bf16 %v3642_v3  ;;  %v3487_v15 = vunpack.c.h.bf16 %v3642_v3  ;;  %v3374_v59 = vld [vmem:[%s4514_s1 + $0xf0] sm:$0xff]  ;;  %v3390_v0 = vld [vmem:[%s4514_s1 + $0x128] sm:$0xff]  ;;  %v3354_v3 = vld [vmem:[%s4514_s1 + $0xa0] sm:$0xff] }
  0x36   : > { %3679 = vmatpush.bf16.msra.mxu1 %v3346_v53  ;;  %3680 = vmatpush.bf16.msra.mxu2 %v3346_v53  ;;  %3654 = vst [vmem:[#allocation2 + $0x40] sm:$0xff] %v3547_v9   ;;  %v354_v18 = vmax.f32 %v3466_v11, 0.0  ;;  %v355_v19 = vmax.f32 %v3467_v12, 0.0  ;;  %v3582_v23 = vunpack.c.h.b16 %v3870_v39  ;;  %v3373_v2 = vld [vmem:[%s4514_s1 + $0xe8] sm:$0xff]  ;;  %v3372_v9 = vld [vmem:[%s4514_s1 + $0xe0] sm:$0xff] }
  0x37   : > { %3681 = vmatpush.bf16.msra.mxu3 %v3346_v53  ;;  %v473_v16 = vld [vmem:[#allocation2] sm:$0xe]  ;;  %v3517_v17 = vpack.c.bf16 %v349_v10, %v348_v7  ;;  %3655 = vst [vmem:[#allocation2 + $0x48] sm:$0xff] %v3552_v13   ;;  %v364_v20 = vmax.f32 %v3486_v14, 0.0  ;;  %v365_v21 = vmax.f32 %v3487_v15, 0.0  ;;  %v3353_v10 = vld [vmem:[%s4514_s1 + $0x98] sm:$0xff] }
  0x38   : > { %v513_v24 = vunpack.c.l.b16 %v473_v16  ;;  %v3532_v25 = vpack.c.bf16 %v355_v19, %v354_v18  ;;  %v3886_v28 = vld [vmem:[#allocation2 + $0x8] sm:$0xff]  ;;  %v3389_v7 = vld [vmem:[%s4514_s1 + $0x120] sm:$0xff]  ;;  %v3388_v14 = vld [vmem:[%s4514_s1 + $0x118] sm:$0xff] }
  0x39   : > { %629 = vmatpush.bf16.msra.mxu0 %v3345_v8  ;;  %3648 = vst [vmem:[#allocation2 + $0x10] sm:$0xff] %v3517_v17   ;;  %v3557_v26 = vpack.c.bf16 %v365_v21, %v364_v20  ;;  %v3890_v30 = vld [vmem:[#allocation2 + $0x18] sm:$0xff]  ;;  %v547_v38 = vrot.slane %v3886_v28, 1  ;;  %v3336_v16 = vld [vmem:[%s4514_s1 + $0x10] sm:$0xff]  ;;  %v804_v20 = vld [vmem:[#allocation2] sm:$0xc] }
  0x3a   : > { %3682 = vmatpush.bf16.msra.mxu1 %v3345_v8  ;;  %3683 = vmatpush.bf16.msra.mxu2 %v3345_v8  ;;  %3651 = vst [vmem:[#allocation2 + $0x28] sm:$0xff] %v3532_v25   ;;  %v534_v29 = vpack.c.b16 %v3582_v23, %v513_v24  ;;  %v3892_v31 = vld [vmem:[#allocation2 + $0x20] sm:$0xff]  ;;  %v551_v40 = vrot.slane %v3890_v30, 1  ;;  %v3371_v18 = vld [vmem:[%s4514_s1 + $0xd8] sm:$0xff]  ;;  %v3352_v19 = vld [vmem:[%s4514_s1 + $0x90] sm:$0xff]  ;;  %v825_v24 = vunpack.c.l.b16 %v804_v20 }
  0x3b   : > { %3684 = vmatpush.bf16.msra.mxu3 %v3345_v8  ;;  %3656 = vst [vmem:[#allocation2 + $0x50] sm:$0xff] %v3557_v26   ;;  %v3894_v32 = vld [vmem:[#allocation2 + $0x30] sm:$0xff]  ;;  %v553_v41 = vrot.slane %v3892_v31, 1  ;;  %v3337_v8 = vld [vmem:[%s4514_s1 + $0x18] sm:$0xff]  ;;  %v3351_v26 = vld [vmem:[%s4514_s1 + $0x88] sm:$0xff] }
  0x3c   : > { %v3896_v33 = vld [vmem:[#allocation2 + $0x38] sm:$0xff]  ;;  %v546_v37 = vrot.slane %v534_v29, 1  ;;  %v557_v43 = vrot.slane %v3894_v32, 1  ;;  %v3387_v21 = vld [vmem:[%s4514_s1 + $0x110] sm:$0xff]  ;;  %v827_v29 = vpack.c.b16 %v3582_v23, %v825_v24 }
  0x3d   : > { %630 = vmatpush.bf16.msra.mxu0 %v3344_v22  ;;  %v3898_v34 = vld [vmem:[#allocation2 + $0x40] sm:$0xff]  ;;  %v559_v44 = vrot.slane %v3896_v33, 1  ;;  %v554_v49 = vsel %vm545_vm0, %v551_v40, %v553_v41  ;;  %v3370_v25 = vld [vmem:[%s4514_s1 + $0xd0] sm:$0xff]  ;;  %v3400_v23 = vld [vmem:[%s4514_s1 + $0x178] sm:$0xff] }
  0x3e   : > { %3685 = vmatpush.bf16.msra.mxu1 %v3344_v22  ;;  %3686 = vmatpush.bf16.msra.mxu2 %v3344_v22  ;;  %v3900_v35 = vld [vmem:[#allocation2 + $0x48] sm:$0xff]  ;;  %v561_v46 = vrot.slane %v3898_v34, 1  ;;  %v548_v48 = vsel %vm545_vm0, %v546_v37, %v547_v38  ;;  %v3414_v24 = vld [vmem:[%s4514_s1 + $0x198] sm:$0xff] }
  0x3f   : > { %3687 = vmatpush.bf16.msra.mxu3 %v3344_v22  ;;  %v563_v47 = vrot.slane %v3900_v35, 1  ;;  %v560_v51 = vsel %vm545_vm0, %v557_v43, %v559_v44  ;;  %v3335_v22 = vld [vmem:[%s4514_s1 + $0x8] sm:$0xff] }
  0x40   : > { %v3952_v62 = vld [vmem:[#allocation2 + $0x10] sm:$0xff]  ;;  %v562_v15 = vsel %vm545_vm0, %v559_v44, %v561_v46  ;;  %v3369_v37 = vld [vmem:[%s4514_s1 + $0xc8] sm:$0xff]  ;;  %v830_v44 = vrot.slane %v827_v29, 2  ;;  %v3431_v29 = vld [vmem:[%s4514_s1 + $0x1d8] sm:$0xff] }
  0x41   : > { %631 = vmatpush.bf16.msra.mxu0 %v3343_v27  ;;  %v564_v53 = vsel %vm545_vm0, %v561_v46, %v563_v47  ;;  %v3954_v63 = vld [vmem:[#allocation2 + $0x28] sm:$0xff]  ;;  %v549_v5 = vrot.slane %v3952_v62, 1  ;;  %v3443_v46 = vld [vmem:[%s4514_s1 + $0x238] sm:$0xff] }
  0x42   : > { %3688 = vmatpush.bf16.msra.mxu1 %v3343_v27  ;;  %3689 = vmatpush.bf16.msra.mxu2 %v3343_v27  ;;  %v474_v56 = vld [vmem:[#allocation2 + $0x50] sm:$0x1]  ;;  %v555_v6 = vrot.slane %v3954_v63, 1 }
  0x43   : > { %3690 = vmatpush.bf16.msra.mxu3 %v3343_v27  ;;  %v533_v61 = vunpack.c.l.b16 %v474_v56  ;;  %v550_v12 = vsel %vm545_vm0, %v547_v38, %v549_v5  ;;  %v3386_v27 = vld [vmem:[%s4514_s1 + $0x108] sm:$0xff]  ;;  %v3350_v38 = vld [vmem:[%s4514_s1 + $0x80] sm:$0xff]  ;;  %v3434_v56 = vld [vmem:[%s4514_s1 + $0x1f0] sm:$0xff] }
  0x44   : > { %v556_v13 = vsel %vm545_vm0, %v553_v41, %v555_v6  ;;  %v3418_v41 = vld [vmem:[%s4514_s1 + $0x1b8] sm:$0xff] }
  0x45   : > { %632 = vmatpush.bf16.msra.mxu0 %v3342_v36  ;;  %v544_v4 = vpack.c.b16 %v533_v61, %v533_v61 }
  0x46   : > { %3691 = vmatpush.bf16.msra.mxu1 %v3342_v36  ;;  %3692 = vmatpush.bf16.msra.mxu2 %v3342_v36 }
  0x47   : > { %3693 = vmatpush.bf16.msra.mxu3 %v3342_v36  ;;  %v565_v11 = vrot.slane %v544_v4, 1  ;;  %v3334_v36 = vld [vmem:[%s4514_s1] sm:$0xff] }
  0x48   : > { %633 = vmatmul.bf16.vlgmr.msra.gmra.mxu0 %v548_v48  ;;  %v552_v48 = vsel %vm545_vm0, %v549_v5, %v551_v40  ;;  %v3417_v40 = vld [vmem:[%s4514_s1 + $0x1b0] sm:$0xff]  ;;  %v3359_v4 = vld [vmem:[#allocation2 + $0x1c] sm:$0xff]  ;;  %v3416_v5 = vld [vmem:[%s4514_s1 + $0x1a8] sm:$0xff] }
  0x49   : > { %648 = vmatmul.bf16.vlgmr.msra.gmra.mxu1 %v554_v49  ;;  %663 = vmatmul.bf16.vlgmr.msra.gmra.mxu2 %v560_v51  ;;  %v566_v17 = vsel %vm545_vm0, %v563_v47, %v565_v11  ;;  %v3368_v47 = vld [vmem:[%s4514_s1 + $0xc0] sm:$0xff]  ;;  %v558_v49 = vsel %vm545_vm0, %v555_v6, %v557_v43  ;;  %v3433_v6 = vld [vmem:[%s4514_s1 + $0x1e8] sm:$0xff] }
  0x4a   : > { %745 = vmatpush.bf16.msrb.mxu1 %v3341_v42  ;;  %909 = vmatpush.bf16.msrb.mxu2 %v3357_v45  ;;  %v3385_v42 = vld [vmem:[%s4514_s1 + $0x100] sm:$0xff]  ;;  %v831_v45 = vrot.slane %v3886_v28, 2 }
  0x4b   : > { %1382 = vmatpush.bf16.msrb.mxu0 %v3392_v50  ;;  %673 = vmatmul.bf16.vlgmr.msra.gmra.mxu3 %v564_v53  ;;  %v3435_v50 = vld [vmem:[%s4514_s1 + $0x1f8] sm:$0xff]  ;;  %v1212_v53 = vld [vmem:[#allocation2 + $0x14] sm:$0xe] }
  0x4c   : > { %1133 = vmatpush.bf16.msrb.mxu3 %v3375_v54  ;;  %v832_v51 = vsel %vm829_vm1, %v830_v44, %v831_v45  ;;  %v4052_v54 = vld [vmem:[#allocation2 + $0x18] sm:$0xf]  ;;  %v1271_v43 = vunpack.c.l.b16 %v1212_v53  ;;  %v841_v44 = vrot.slane %v3894_v32, 2 }
  0x4e   : > { %746 = vmatpush.bf16.msrb.mxu1 %v3340_v52  ;;  %910 = vmatpush.bf16.msrb.mxu2 %v3356_v55  ;;  %v3358_v52 = vld [vmem:[#allocation2 + $0x14] sm:$0xff]  ;;  %v1272_v55 = vunpack.c.l.b16 %v4052_v54 }
  0x4f   : > { %1383 = vmatpush.bf16.msrb.mxu0 %v3391_v57  ;;  %v3399_v57 = vld [vmem:[%s4514_s1 + $0x170] sm:$0xff] }
  0x50   : > { %1134 = vmatpush.bf16.msrb.mxu3 %v3374_v59  ;;  %v4067_v59 = vld [vmem:[#allocation2 + $0x1c] sm:$0xff] }
  0x52   : > { %747 = vmatpush.bf16.msrb.mxu1 %v3339_v58  ;;  %911 = vmatpush.bf16.msrb.mxu2 %v3355_v60  ;;  %v3442_v58 = vld [vmem:[%s4514_s1 + $0x230] sm:$0xff]  ;;  %v1292_v60 = vpack.c.b16 %v1272_v55, %v1271_v43 }
  0x53   : > { %1384 = vmatpush.bf16.msrb.mxu0 %v3390_v0  ;;  %v1304_v0 = vrot.slane %v4067_v59, 1 }
  0x54   : > { %1135 = vmatpush.bf16.msrb.mxu3 %v3373_v2  ;;  %v1303_v61 = vrot.slane %v1292_v60, 1 }
  0x56   : > { %748 = vmatpush.bf16.msrb.mxu1 %v3338_v1  ;;  %912 = vmatpush.bf16.msrb.mxu2 %v3354_v3  ;;  %v833_v1 = vrot.slane %v3952_v62, 2  ;;  %v1305_v2 = vsel %vm545_vm0, %v1303_v61, %v1304_v0 }
  0x57   : > { %1385 = vmatpush.bf16.msrb.mxu0 %v3389_v7  ;;  %v3398_v7 = vld [vmem:[%s4514_s1 + $0x168] sm:$0xff] }
  0x58   : > { %1136 = vmatpush.bf16.msrb.mxu3 %v3372_v9  ;;  %638 = vmatmul.bf16.gmra.mxu0 %v550_v12  ;;  %v834_v3 = vsel %vm829_vm1, %v831_v45, %v833_v1  ;;  %v3643_v45 = vld [vmem:[#allocation2 + $0x58] sm:$0xff]  }
  0x59   : > { %653 = vmatmul.bf16.gmra.mxu1 %v556_v13  ;;  %668 = vmatmul.bf16.gmra.mxu2 %v562_v15  ;;  %v3360_v13 = vld [vmem:[#allocation2 + $0x24] sm:$0xff] }
  0x5a   : > { %749 = vmatpush.bf16.msrb.mxu1 %v3337_v8  ;;  %913 = vmatpush.bf16.msrb.mxu2 %v3353_v10  ;;  %v3441_v8 = vld [vmem:[%s4514_s1 + $0x228] sm:$0xff]  ;;  %v835_v10 = vrot.slane %v3890_v30, 2  ;;  %v3432_v15 = vld [vmem:[%s4514_s1 + $0x1e0] sm:$0xff] }
  0x5b   : > { %1386 = vmatpush.bf16.msrb.mxu0 %v3388_v14  ;;  %678 = vmatmul.bf16.gmra.mxu3 %v566_v17  ;;  %v3415_v14 = vld [vmem:[%s4514_s1 + $0x1a0] sm:$0xff]  ;;  %v4104_v17 = vld [vmem:[#allocation2 + $0x2c] sm:$0xff] }
  0x5c   : > { %1137 = vmatpush.bf16.msrb.mxu3 %v3371_v18  ;;  %v836_v12 = vsel %vm829_vm1, %v833_v1, %v835_v10  ;;  %v837_v18 = vrot.slane %v3892_v31, 2  ;;  %v3644_v1 = vld [vmem:[#allocation2 + $0x60] sm:$0xff]  }
  0x5e   : > { %750 = vmatpush.bf16.msrb.mxu1 %v3336_v16  ;;  %914 = vmatpush.bf16.msrb.mxu2 %v3352_v19  ;;  %v3397_v16 = vld [vmem:[%s4514_s1 + $0x160] sm:$0xff]  ;;  %v838_v20 = vsel %vm829_vm1, %v835_v10, %v837_v18 }
  0x5f   : > { %1387 = vmatpush.bf16.msrb.mxu0 %v3387_v21  ;;  %v3361_v21 = vld [vmem:[#allocation2 + $0x2c] sm:$0xff] }
  0x60   : > { %1138 = vmatpush.bf16.msrb.mxu3 %v3370_v25  ;;  %v4117_v25 = vld [vmem:[#allocation2 + $0x34] sm:$0xff] }
  0x62   : > { %751 = vmatpush.bf16.msrb.mxu1 %v3335_v22  ;;  %915 = vmatpush.bf16.msrb.mxu2 %v3351_v26  ;;  %v3440_v22 = vld [vmem:[%s4514_s1 + $0x220] sm:$0xff]  ;;  %v1310_v26 = vrot.slane %v4117_v25, 1 }
  0x63   : > { %1388 = vmatpush.bf16.msrb.mxu0 %v3386_v27  ;;  %v839_v27 = vrot.slane %v3954_v63, 2 }
  0x64   : > { %1139 = vmatpush.bf16.msrb.mxu3 %v3369_v37  ;;  %v3362_v37 = vld [vmem:[#allocation2 + $0x34] sm:$0xff] }
  0x66   : > { %752 = vmatpush.bf16.msrb.mxu1 %v3334_v36  ;;  %916 = vmatpush.bf16.msrb.mxu2 %v3350_v38  ;;  %v840_v36 = vsel %vm829_vm1, %v837_v18, %v839_v27  ;;  %v3396_v38 = vld [vmem:[%s4514_s1 + $0x158] sm:$0xff] }
  0x67   : > { %1389 = vmatpush.bf16.msrb.mxu0 %v3385_v42 }
  0x68   : > { %1140 = vmatpush.bf16.msrb.mxu3 %v3368_v47  ;;  %643 = vmatmul.bf16.gmra.mxu0 %v552_v48  ;;  %v3363_v47 = vld [vmem:[#allocation2 + $0x3c] sm:$0xff]  ;;  %v3490_v48 = vunpack.c.l.bf16 %v3643_v45 }
  0x69   : > { %658 = vmatmul.bf16.gmra.mxu1 %v558_v49  ;;  %917 = vmatmul.bf16.vlgmr.msrb.gmra.mxu2 %v832_v51  ;;  %v3491_v49 = vunpack.c.h.bf16 %v3643_v45  ;;  %v3430_v51 = vld [vmem:[%s4514_s1 + $0x1d0] sm:$0xff]  ;;  %v3393_v45 = vld [vmem:[%s4514_s1 + $0x140] sm:$0xff] }
  0x6a   : > { %1789 = vmatpush.bf16.msra.mxu2 %v3418_v41  ;;  %1565 = vmatpush.bf16.msra.mxu1 %v3400_v23  ;;  %v4130_v41 = vld [vmem:[#allocation2 + $0x3c] sm:$0xff] }
  0x6b   : > { %2221 = vmatpush.bf16.msra.mxu0 %v3443_v46  ;;  %1141 = vmatmul.bf16.vlgmr.msrb.gmra.mxu3 %v3358_v52  ;;  %v3439_v23 = vld [vmem:[%s4514_s1 + $0x218] sm:$0xff]  ;;  %v1312_v42 = vrot.slane %v4130_v41, 1  ;;  %v842_v46 = vsel %vm829_vm1, %v839_v27, %v841_v44  ;;  %v366_v52 = vmax.f32 %v3490_v48, 0.0  ;;  %v367_v53 = vmax.f32 %v3491_v49, 0.0 }
  0x6c   : > { %2038 = vmatpush.bf16.msra.mxu3 %v3435_v50  ;;  %v3413_v50 = vld [vmem:[%s4514_s1 + $0x190] sm:$0xff] }
  0x6d   : > { %v3562_v43 = vpack.c.bf16 %v367_v53, %v366_v52  ;;  %v805_v52 = vld [vmem:[#allocation2 + $0x50] sm:$0x3] }
  0x6e   : > { %1790 = vmatpush.bf16.msra.mxu2 %v3417_v40  ;;  %1566 = vmatpush.bf16.msra.mxu1 %v3399_v57  ;;  %v3395_v40 = vld [vmem:[%s4514_s1 + $0x150] sm:$0xff]  ;;  %v826_v53 = vunpack.c.l.b16 %v805_v52 }
  0x6f   : > { %2222 = vmatpush.bf16.msra.mxu0 %v3442_v58  ;;  %3657 = vst [vmem:[#allocation2 + $0x58] sm:$0xff] %v3562_v43   ;;  %v843_v58 = vrot.slane %v3896_v33, 2  ;;  %v3436_v43 = vld [vmem:[%s4514_s1 + $0x200] sm:$0xff] }
  0x70   : > { %2039 = vmatpush.bf16.msra.mxu3 %v3434_v56  ;;  %v3438_v56 = vld [vmem:[%s4514_s1 + $0x210] sm:$0xff] }
  0x72   : > { %1791 = vmatpush.bf16.msra.mxu2 %v3416_v5  ;;  %1567 = vmatpush.bf16.msra.mxu1 %v3398_v7  ;;  %v3495_v5 = vunpack.c.h.bf16 %v3644_v1 }
  0x73   : > { %2223 = vmatpush.bf16.msra.mxu0 %v3441_v8  ;;  %v3412_v8 = vld [vmem:[%s4514_s1 + $0x188] sm:$0xff] }
  0x74   : > { %2040 = vmatpush.bf16.msra.mxu3 %v3433_v6  ;;  %v369_v7 = vmax.f32 %v3495_v5, 0.0 }
  0x76   : > { %1792 = vmatpush.bf16.msra.mxu2 %v3415_v14  ;;  %1568 = vmatpush.bf16.msra.mxu1 %v3397_v16  ;;  %v3394_v14 = vld [vmem:[%s4514_s1 + $0x148] sm:$0xff] }
  0x77   : > { %2224 = vmatpush.bf16.msra.mxu0 %v3440_v22 }
  0x78   : > { %1390 = vmatmul.bf16.vlgmr.msrb.gmra.mxu0 %v1305_v2  ;;  %2041 = vmatpush.bf16.msra.mxu3 %v3432_v15  ;;  %v844_v2 = vsel %vm829_vm1, %v841_v44, %v843_v58  ;;  %v3411_v44 = vld [vmem:[%s4514_s1 + $0x180] sm:$0xff] }
  0x79   : > { %753 = vmatmul.bf16.vlgmr.msrb.gmra.mxu1 %v3870_v39  ;;  %922 = vmatmul.bf16.gmra.mxu2 %v834_v3  ;;  %v4088_v39 = vld [vmem:[#allocation2 + $0x24] sm:$0xff] }
  0x7a   : > { %v1306_v9 = vrot.slane %v4088_v39, 1  ;;  %1793 = vmatpush.bf16.msra.mxu2 %v3414_v24  ;;  %1569 = vmatpush.bf16.msra.mxu1 %v3396_v38  ;;  %v3364_v3 = vld [vmem:[#allocation2 + $0x44] sm:$0xff] }
  0x7b   : > { %1146 = vmatmul.bf16.gmra.mxu3 %v3359_v4  ;;  %2225 = vmatpush.bf16.msra.mxu0 %v3439_v23  ;;  %v3494_v4 = vunpack.c.l.bf16 %v3644_v1  ;;  %v847_v23 = vrot.slane %v3900_v35, 2  ;;  %v828_v1 = vpack.c.b16 %v826_v53, %v826_v53 }
  0x7c   : > { %v1307_v11 = vsel %vm545_vm0, %v1304_v0, %v1306_v9  ;;  %2042 = vmatpush.bf16.msra.mxu3 %v3431_v29 }
  0x7d   : > { %v368_v6 = vmax.f32 %v3494_v4, 0.0 }
  0x7e   : > { %1794 = vmatpush.bf16.msra.mxu2 %v3413_v50  ;;  %1570 = vmatpush.bf16.msra.mxu1 %v3395_v40 }
  0x7f   : > { %2226 = vmatpush.bf16.msra.mxu0 %v3438_v56 }
  0x80   : > { %2043 = vmatpush.bf16.msra.mxu3 %v3430_v51  ;;  %v3366_v51 = vld [vmem:[#allocation2 + $0x54] sm:$0xff] }
  0x82   : > { %1795 = vmatpush.bf16.msra.mxu2 %v3412_v8  ;;  %1571 = vmatpush.bf16.msra.mxu1 %v3394_v14 }
  0x86   : > { %1796 = vmatpush.bf16.msra.mxu2 %v3411_v44  ;;  %1572 = vmatpush.bf16.msra.mxu1 %v3393_v45 }
  0x88   : > { %1395 = vmatmul.bf16.gmra.mxu0 %v1307_v11 }
  0x89   : > { %758 = vmatmul.bf16.gmra.mxu1 %v3886_v28  ;;  %927 = vmatmul.bf16.gmra.mxu2 %v836_v12  ;;  %v1308_v28 = vrot.slane %v4104_v17, 1 }
  0x8b   : > { %1151 = vmatmul.bf16.gmra.mxu3 %v3360_v13  ;;  %v1309_v19 = vsel %vm545_vm0, %v1306_v9, %v1308_v28  ;;  %v3567_v9 = vpack.c.bf16 %v369_v7, %v368_v6  ;;  %v4172_v13 = vld [vmem:[#allocation2 + $0x4c] sm:$0xff] }
  0x8c   : > { %v1316_v16 = vrot.slane %v4172_v13, 1 }
  0x8d   : > { %3658 = vst [vmem:[#allocation2 + $0x60] sm:$0xff] %v3567_v9  }
  0x94   : > { %v1232_v14 = vld [vmem:[#allocation2 + $0x64] sm:$0x1] }
  0x98   : > { %1400 = vmatmul.bf16.gmra.mxu0 %v1309_v19 }
  0x99   : > { %763 = vmatmul.bf16.gmra.mxu1 %v3952_v62  ;;  %932 = vmatmul.bf16.gmra.mxu2 %v838_v20  ;;  %v1311_v62 = vsel %vm545_vm0, %v1308_v28, %v1310_v26  ;;  %v845_v28 = vrot.slane %v3898_v34, 2 }
  0x9b   : > { %1156 = vmatmul.bf16.gmra.mxu3 %v3361_v21  ;;  %v846_v24 = vsel %vm829_vm1, %v843_v58, %v845_v28  ;;  %v848_v50 = vsel %vm829_vm1, %v845_v28, %v847_v23  ;;  %v4237_v58 = vld [vmem:[#allocation2 + $0x5c] sm:$0xff]  ;;  %v1868_v28 = vld [vmem:[#allocation2 + $0x28] sm:$0xe] }
  0xa8   : > { %1405 = vmatmul.bf16.gmra.mxu0 %v1311_v62  ;;  %v3437_v62 = vld [vmem:[%s4514_s1 + $0x208] sm:$0xff] }
  0xa9   : > { %768 = vmatmul.bf16.gmra.mxu1 %v3890_v30  ;;  %937 = vmatmul.bf16.gmra.mxu2 %v840_v36  ;;  %v1313_v30 = vsel %vm545_vm0, %v1310_v26, %v1312_v42  ;;  %v3365_v26 = vld [vmem:[#allocation2 + $0x4c] sm:$0xff] }
  0xaa   : > { %2227 = vmatpush.bf16.msra.mxu0 %v3437_v62  ;;  %v1927_v62 = vunpack.c.l.b16 %v1868_v28 }
  0xab   : > { %1161 = vmatmul.bf16.gmra.mxu3 %v3362_v37  ;;  %v4204_v37 = vld [vmem:[#allocation2 + $0x54] sm:$0xff] }
  0xae   : > { %2228 = vmatpush.bf16.msra.mxu0 %v3436_v43 }
  0xb8   : > { %1410 = vmatmul.bf16.gmra.mxu0 %v1313_v30  ;;  %v3428_v30 = vld [vmem:[%s4514_s1 + $0x1c0] sm:$0xff] }
  0xb9   : > { %773 = vmatmul.bf16.gmra.mxu1 %v3892_v31  ;;  %942 = vmatmul.bf16.gmra.mxu2 %v842_v46  ;;  %v4149_v31 = vld [vmem:[#allocation2 + $0x44] sm:$0xff] }
  0xba   : > { %v1314_v57 = vrot.slane %v4149_v31, 1 }
  0xbb   : > { %1166 = vmatmul.bf16.gmra.mxu3 %v3363_v47 }
  0xbc   : > { %v1315_v0 = vsel %vm545_vm0, %v1312_v42, %v1314_v57  ;;  %v1317_v21 = vsel %vm545_vm0, %v1314_v57, %v1316_v16 }
  0xc5   : > { %v4156_v60 = vpop.f32.mrf.mxu0 }
  0xc6   : > { %v4158_v61 = vpop.f32.mrf.mxu1 }
  0xc8   : > { %1415 = vmatmul.bf16.gmra.mxu0 %v1315_v0 }
  0xc9   : > { %778 = vmatmul.bf16.gmra.mxu1 %v3954_v63  ;;  %947 = vmatmul.bf16.gmra.mxu2 %v844_v2  ;;  %v3429_v63 = vld [vmem:[%s4514_s1 + $0x1c8] sm:$0xff]  ;;  %v849_v2 = vrot.slane %v828_v1, 2 }
  0xca   : > { %2044 = vmatpush.bf16.msra.mxu3 %v3429_v63  ;;  %v3367_v63 = vld [vmem:[#allocation2 + $0x5c] sm:$0xff] }
  0xcb   : > { %1171 = vmatmul.bf16.gmra.mxu3 %v3364_v3  ;;  %v850_v9 = vsel %vm829_vm1, %v847_v23, %v849_v2 }
  0xcc   : > { %v4166_v10 = vpop.f32.mrf.mxu2 }
  0xcd   : > { %v4168_v11 = vpop.f32.mrf.mxu0 }
  0xce   : > { %v4170_v12 = vpop.f32.mrf.mxu1  ;;  %v4180_v15 = vpop.f32.mrf.mxu3  ;;  %2045 = vmatpush.bf16.msra.mxu3 %v3428_v30 }
  0xd4   : > { %v4184_v18 = vpop.f32.mrf.mxu2 }
  0xd5   : > { %v4186_v19 = vpop.f32.mrf.mxu0 }
  0xd6   : > { %v4188_v20 = vpop.f32.mrf.mxu1  ;;  %v4191_v22 = vpop.f32.mrf.mxu3 }
  0xd8   : > { %1420 = vmatmul.bf16.gmra.mxu0 %v1317_v21  ;;  %v1869_v21 = vld [vmem:[#allocation2 + $0x2c] sm:$0xf] }
  0xd9   : > { %783 = vmatmul.bf16.gmra.mxu1 %v3894_v32  ;;  %952 = vmatmul.bf16.gmra.mxu2 %v846_v24  ;;  %v1318_v32 = vrot.slane %v4204_v37, 1  ;;  %v1291_v24 = vunpack.c.l.b16 %v1232_v14  ;;  %v1928_v44 = vunpack.c.l.b16 %v1869_v21  ;;  %v2117_v14 = vld [vmem:[#allocation2 + $0x28] sm:$0xc] }
  0xda   : > { %v2138_v28 = vunpack.c.l.b16 %v2117_v14 }
  0xdb   : > { %1176 = vmatmul.bf16.gmra.mxu3 %v3365_v26  ;;  %v1319_v48 = vsel %vm545_vm0, %v1316_v16, %v1318_v32  ;;  %v1302_v23 = vpack.c.b16 %v1291_v24, %v1291_v24 }
  0xdc   : > { %v4195_v27 = vpop.f32.mrf.mxu2 }
  0xdd   : > { %v4200_v29 = vpop.f32.mrf.mxu0  ;;  %v1322_v53 = vrot.slane %v1302_v23, 1  ;;  %v4264_v23 = vld [vmem:[#allocation2 + $0x38] sm:$0xff] }
  0xde   : > { %v4202_v36 = vpop.f32.mrf.mxu1  ;;  %v4206_v38 = vpop.f32.mrf.mxu3 }
  0xe4   : > { %v4210_v42 = vpop.f32.mrf.mxu2 }
  0xe5   : > { %v4221_v46 = vpop.f32.mrf.mxu0 }
  0xe6   : > { %v4223_v47 = vpop.f32.mrf.mxu1  ;;  %v4226_v49 = vpop.f32.mrf.mxu3 }
  0xe8   : > { %1425 = vmatmul.bf16.gmra.mxu0 %v1319_v48 }
  0xe9   : > { %788 = vmatmul.bf16.gmra.mxu1 %v3896_v33  ;;  %957 = vmatmul.bf16.gmra.mxu2 %v848_v50  ;;  %v1320_v33 = vrot.slane %v4237_v58, 1 }
  0xeb   : > { %1181 = vmatmul.bf16.gmra.mxu3 %v3366_v51  ;;  %v1321_v6 = vsel %vm545_vm0, %v1318_v32, %v1320_v33  ;;  %v4247_v51 = vld [vmem:[#allocation2 + $0x30] sm:$0xff] }
  0xec   : > { %v918_v40 = vpop.f32.mrf.mxu2 }
  0xed   : > { %v4233_v56 = vpop.f32.mrf.mxu0 }
  0xee   : > { %v4235_v57 = vpop.f32.mrf.mxu1  ;;  %v1142_v0 = vpop.f32.mrf.mxu3 }
  0xf4   : > { %v920_v3 = vpop.f32.mrf.mxu2 }
  0xf5   : > { %v1391_v5 = vpop.f32.mrf.mxu0 }
  0xf6   : > { %v754_v4 = vpop.f32.mrf.mxu1  ;;  %v1144_v8 = vpop.f32.mrf.mxu3 }
  0xf7   : > { %v755_v7 = vadd.f32 %v754_v4, %v4156_v60 }
  0xf8   : > { %1430 = vmatmul.bf16.gmra.mxu0 %v1321_v6  ;;  %v1323_v6 = vsel %vm545_vm0, %v1320_v33, %v1322_v53  ;;  %v2143_v53 = vrot.slane %v4247_v51, 2 }
  0xf9   : > { %v968_v16 = vadd.f32 %v918_v40, %v755_v7  ;;  %793 = vmatmul.bf16.gmra.mxu1 %v3898_v34  ;;  %962 = vmatmul.bf16.gmra.mxu2 %v850_v9  ;;  %v1948_v34 = vpack.c.b16 %v1928_v44, %v1927_v62  ;;  %v3401_v7 = vld [vmem:[#allocation2 + $0x28] sm:$0xff] }
  0xfb   : > { %v1192_v26 = vadd.f32 %v1142_v0, %v968_v16  ;;  %1186 = vmatmul.bf16.gmra.mxu3 %v3367_v63  ;;  %v1959_v43 = vrot.slane %v1948_v34, 1  ;;  %v1960_v0 = vrot.slane %v4247_v51, 1  ;;  %v1461_v63 = vld [vmem:[#allocation2 + $0x14] sm:$0xc]  ;;  %v1487_v34 = vrot.slane %v4067_v59, 2 }
  0xfc   : > { %v923_v60 = vpop.f32.mrf.mxu2  ;;  %v3402_v59 = vld [vmem:[#allocation2 + $0x30] sm:$0xff] }
  0xfd   : > { %v4244_v32 = vadd.f32 %v1391_v5, %v1192_v26  ;;  %v1393_v45 = vpop.f32.mrf.mxu0 }
  0xfe   : > { %v756_v30 = vpop.f32.mrf.mxu1  ;;  %v1147_v50 = vpop.f32.mrf.mxu3 }
  0xff   : > { %v757_v48 = vadd.f32 %v756_v30, %v4168_v11  ;;  %v2140_v30 = vpack.c.b16 %v1928_v44, %v2138_v28 }
 0x101   : > { %v969_v52 = vadd.f32 %v920_v3, %v757_v48  ;;  %v1961_v3 = vsel %vm545_vm0, %v1959_v43, %v1960_v0  ;;  %v1962_v43 = vrot.slane %v4264_v23, 1 }
 0x103   : > { %v1193_v40 = vadd.f32 %v1144_v8, %v969_v52  ;;  %v1482_v8 = vunpack.c.l.b16 %v1461_v63  ;;  %v2142_v52 = vrot.slane %v2140_v30, 2 }
 0x104   : > { %v925_v2 = vpop.f32.mrf.mxu2 }
 0x105   : > { %v4250_v1 = vadd.f32 %v1393_v45, %v1193_v40  ;;  %v1396_v5 = vpop.f32.mrf.mxu0 }
 0x106   : > { %v759_v4 = vpop.f32.mrf.mxu1  ;;  %v1149_v9 = vpop.f32.mrf.mxu3 }
 0x107   : > { %v760_v11 = vadd.f32 %v759_v4, %v4186_v19  ;;  %v2324_v19 = vld [vmem:[%s4516_s3] sm:$0xff] }
 0x108   : > { %1435 = vmatmul.bf16.gmra.mxu0 %v1323_v6  ;;  %2346 = vperm.xlu0 %3736, %v2324_v19   ;;  %v2145_v19 = vrot.slane %v4264_v23, 2 }
 0x109   : > { %v970_v16 = vadd.f32 %v923_v60, %v760_v11  ;;  %798 = vmatmul.bf16.gmra.mxu1 %v3900_v35  ;;  %1797 = vmatmul.bf16.vlgmr.msra.gmra.mxu2 %v3401_v7  ;;  %v1484_v60 = vpack.c.b16 %v1272_v55, %v1482_v8  ;;  %v2325_v55 = vld [vmem:[%s4516_s3 + $0x8] sm:$0xff]  ;;  %v1963_v7 = vsel %vm545_vm0, %v1960_v0, %v1962_v43  ;;  %v4284_v0 = vld [vmem:[#allocation2 + $0x40] sm:$0xff] }
 0x10b   : > { %v1194_v21 = vadd.f32 %v1147_v50, %v970_v16  ;;  %2046 = vmatmul.bf16.vlgmr.msra.gmra.mxu3 %v1961_v3  ;;  %v1486_v50 = vrot.slane %v1484_v60, 2  ;;  %v2326_v3 = vld [vmem:[%s4516_s3 + $0x10] sm:$0xff] }
 0x10c   : > { %v928_v33 = vpop.f32.mrf.mxu2  ;;  %2356 = vperm.xlu1 %3737, %v2326_v3  }
 0x10d   : > { %v4256_v24 = vadd.f32 %v1396_v5, %v1194_v21  ;;  %v1398_v62 = vpop.f32.mrf.mxu0  ;;  %v2144_v5 = vsel %vm829_vm1, %v2142_v52, %v2143_v53  ;;  %v3403_v52 = vld [vmem:[#allocation2 + $0x38] sm:$0xff] }
 0x10e   : > { %v761_v26 = vpop.f32.mrf.mxu1  ;;  %v1152_v45 = vpop.f32.mrf.mxu3 }
 0x10f   : > { %v762_v35 = vadd.f32 %v761_v26, %v4200_v29 }
 0x110   : > { %2351 = vperm.xlu0 %3736, %v2325_v55  }
 0x111   : > { %v971_v48 = vadd.f32 %v925_v2, %v762_v35  ;;  %v1488_v2 = vsel %vm829_vm1, %v1486_v50, %v1487_v34  ;;  %v2327_v35 = vld [vmem:[%s4516_s3 + $0x18] sm:$0xff]  ;;  %v2146_v50 = vsel %vm829_vm1, %v2143_v53, %v2145_v19 }
 0x113   : > { %v1195_v40 = vadd.f32 %v1149_v9, %v971_v48 }
 0x114   : > { %v930_v54 = vpop.f32.mrf.mxu2  ;;  %2361 = vperm.xlu1 %3737, %v2327_v35  }
 0x115   : > { %v4269_v4 = vadd.f32 %v1398_v62, %v1195_v40  ;;  %v1401_v44 = vpop.f32.mrf.mxu0  ;;  %v1964_v62 = vrot.slane %v4284_v0, 1 }
 0x116   : > { %v764_v29 = vpop.f32.mrf.mxu1  ;;  %v1154_v6 = vpop.f32.mrf.mxu3 }
 0x117   : > { %v765_v51 = vadd.f32 %v764_v29, %v4221_v46  ;;  %v1965_v40 = vsel %vm545_vm0, %v1962_v43, %v1964_v62  ;;  %v2147_v43 = vrot.slane %v4284_v0, 2 }
 0x118   : > { %2229 = vmatmul.bf16.vlgmr.msra.gmra.mxu0 %v2144_v5 }
 0x119   : > { %v972_v11 = vadd.f32 %v928_v33, %v765_v51  ;;  %1573 = vmatmul.bf16.vlgmr.msra.gmra.mxu1 %v1488_v2  ;;  %1802 = vmatmul.bf16.gmra.mxu2 %v3402_v59  ;;  %v1489_v33 = vrot.slane %v4088_v39, 2  ;;  %v4301_v59 = vld [vmem:[#allocation2 + $0x48] sm:$0xff]  ;;  %v1491_v51 = vrot.slane %v4104_v17, 2 }
 0x11b   : > { %v1196_v9 = vadd.f32 %v1152_v45, %v972_v11  ;;  %2051 = vmatmul.bf16.gmra.mxu3 %v1963_v7  ;;  %v1490_v48 = vsel %vm829_vm1, %v1487_v34, %v1489_v33  ;;  %v1966_v7 = vrot.slane %v4301_v59, 1 }
 0x11c   : > { %v933_v14 = vpop.f32.mrf.mxu2 }
 0x11d   : > { %v4278_v63 = vadd.f32 %v1401_v44, %v1196_v9  ;;  %v1403_v8 = vpop.f32.mrf.mxu0  ;;  %v1967_v17 = vsel %vm545_vm0, %v1964_v62, %v1966_v7  ;;  %v4318_v62 = vld [vmem:[#allocation2 + $0x50] sm:$0xff] }
 0x11e   : > { %v766_v16 = vpop.f32.mrf.mxu1  ;;  %v1157_v28 = vpop.f32.mrf.mxu3 }
 0x11f   : > { %v767_v46 = vadd.f32 %v766_v16, %v4233_v56  ;;  %v1492_v16 = vsel %vm829_vm1, %v1489_v33, %v1491_v51  ;;  %v2330_v33 = vld [vmem:[%s4516_s3 + $0x30] sm:$0xff] }
 0x120   : > { %2376 = vperm.xlu0 %3736, %v2330_v33   ;;  %v2151_v33 = vrot.slane %v4318_v62, 2 }
 0x121   : > { %v973_v21 = vadd.f32 %v930_v54, %v767_v46 }
 0x123   : > { %v1197_v26 = vadd.f32 %v1154_v6, %v973_v21 }
 0x124   : > { %v935_v30 = vpop.f32.mrf.mxu2 }
 0x125   : > { %v4289_v60 = vadd.f32 %v1403_v8, %v1197_v26  ;;  %v1406_v56 = vpop.f32.mrf.mxu0  ;;  %v3404_v8 = vld [vmem:[#allocation2 + $0x40] sm:$0xff] }
 0x126   : > { %v769_v45 = vpop.f32.mrf.mxu1  ;;  %v1159_v23 = vpop.f32.mrf.mxu3 }
 0x127   : > { %v770_v39 = vadd.f32 %v769_v45, %v4158_v61 }
 0x128   : > { %2234 = vmatmul.bf16.gmra.mxu0 %v2146_v50  ;;  %v2149_v50 = vrot.slane %v4301_v59, 2 }
 0x129   : > { %v974_v54 = vadd.f32 %v933_v14, %v770_v39  ;;  %1578 = vmatmul.bf16.gmra.mxu1 %v1490_v48  ;;  %1807 = vmatmul.bf16.gmra.mxu2 %v3403_v52  ;;  %v1493_v48 = vrot.slane %v4117_v25, 2  ;;  %v1968_v39 = vrot.slane %v4318_v62, 1 }
 0x12b   : > { %v1198_v55 = vadd.f32 %v1157_v28, %v974_v54  ;;  %2056 = vmatmul.bf16.gmra.mxu3 %v1965_v40  ;;  %v2328_v54 = vld [vmem:[%s4516_s3 + $0x20] sm:$0xff]  ;;  %v1494_v25 = vsel %vm829_vm1, %v1491_v51, %v1493_v48  ;;  %v1969_v59 = vsel %vm545_vm0, %v1966_v7, %v1968_v39 }
 0x12c   : > { %v938_v44 = vpop.f32.mrf.mxu2  ;;  %2366 = vperm.xlu2 %3738, %v2328_v54   ;;  %v2152_v54 = vsel %vm829_vm1, %v2149_v50, %v2151_v33 }
 0x12d   : > { %v4298_v29 = vadd.f32 %v1406_v56, %v1198_v55  ;;  %v1408_v34 = vpop.f32.mrf.mxu0 }
 0x12e   : > { %v771_v2 = vpop.f32.mrf.mxu1  ;;  %v1162_v5 = vpop.f32.mrf.mxu3 }
 0x12f   : > { %v772_v53 = vadd.f32 %v771_v2, %v4170_v12  ;;  %v2148_v12 = vsel %vm829_vm1, %v2145_v19, %v2147_v43  ;;  %v2150_v2 = vsel %vm829_vm1, %v2147_v43, %v2149_v50  ;;  %v2329_v43 = vld [vmem:[%s4516_s3 + $0x28] sm:$0xff] }
 0x131   : > { %v975_v61 = vadd.f32 %v935_v30, %v772_v53 }
 0x133   : > { %v1199_v6 = vadd.f32 %v1159_v23, %v975_v61 }
 0x134   : > { %v940_v9 = vpop.f32.mrf.mxu2  ;;  %2371 = vperm.xlu2 %3738, %v2329_v43  }
 0x135   : > { %v4306_v11 = vadd.f32 %v1408_v34, %v1199_v6  ;;  %v1411_v3 = vpop.f32.mrf.mxu0  ;;  %v3405_v34 = vld [vmem:[#allocation2 + $0x48] sm:$0xff] }
 0x136   : > { %v774_v14 = vpop.f32.mrf.mxu1  ;;  %v1164_v28 = vpop.f32.mrf.mxu3 }
 0x137   : > { %v775_v46 = vadd.f32 %v774_v14, %v4188_v20 }
 0x138   : > { %2239 = vmatmul.bf16.gmra.mxu0 %v2148_v12 }
 0x139   : > { %v976_v21 = vadd.f32 %v938_v44, %v775_v46  ;;  %1583 = vmatmul.bf16.gmra.mxu1 %v1492_v16  ;;  %1812 = vmatmul.bf16.gmra.mxu2 %v3404_v8 }
 0x13b   : > { %v1200_v0 = vadd.f32 %v1162_v5, %v976_v21  ;;  %2061 = vmatmul.bf16.gmra.mxu3 %v1967_v17  ;;  %v4341_v17 = vld [vmem:[#allocation2 + $0x58] sm:$0xff] }
 0x13c   : > { %v943_v30 = vpop.f32.mrf.mxu2 }
 0x13d   : > { %v4312_v26 = vadd.f32 %v1411_v3, %v1200_v0  ;;  %v1413_v35 = vpop.f32.mrf.mxu0 }
 0x13e   : > { %v776_v19 = vpop.f32.mrf.mxu1  ;;  %v1167_v45 = vpop.f32.mrf.mxu3 }
 0x13f   : > { %v777_v20 = vadd.f32 %v776_v19, %v4202_v36  ;;  %v2331_v36 = vld [vmem:[%s4516_s3 + $0x38] sm:$0xff] }
 0x140   : > { %2381 = vperm.xlu1 %3737, %v2331_v36  }
 0x141   : > { %v977_v56 = vadd.f32 %v940_v9, %v777_v20  ;;  %v3645_v9 = vld [vmem:[#allocation2 + $0x68] sm:$0xff]  }
 0x142   : > { %v3498_v3 = vunpack.c.l.bf16 %v3645_v9  ;;  %v3499_v16 = vunpack.c.h.bf16 %v3645_v9 }
 0x143   : > { %v1201_v52 = vadd.f32 %v1164_v28, %v977_v56 }
 0x144   : > { %v945_v40 = vpop.f32.mrf.mxu2  ;;  %v370_v46 = vmax.f32 %v3498_v3, 0.0  ;;  %v371_v28 = vmax.f32 %v3499_v16, 0.0  ;;  %v1497_v16 = vrot.slane %v4149_v31, 2  ;;  %v2337_v31 = vld [vmem:[%s4516_s3 + $0x68] sm:$0xff] }
 0x145   : > { %v4323_v23 = vadd.f32 %v1413_v35, %v1201_v52  ;;  %v1416_v44 = vpop.f32.mrf.mxu0  ;;  %v1970_v35 = vrot.slane %v4341_v17, 1 }
 0x146   : > { %v779_v55 = vpop.f32.mrf.mxu1  ;;  %v1169_v5 = vpop.f32.mrf.mxu3  ;;  %v3572_v0 = vpack.c.bf16 %v371_v28, %v370_v46  ;;  %v2332_v28 = vld [vmem:[%s4516_s3 + $0x40] sm:$0xff] }
 0x147   : > { %v780_v53 = vadd.f32 %v779_v55, %v4223_v47  ;;  %v1971_v55 = vsel %vm545_vm0, %v1968_v39, %v1970_v35  ;;  %2386 = vperm.xlu2 %3738, %v2332_v28  }
 0x148   : > { %2244 = vmatmul.bf16.gmra.mxu0 %v2150_v2  ;;  %3659 = vst [vmem:[#allocation2 + $0x68] sm:$0xff] %v3572_v0   ;;  %v3646_v2 = vld [vmem:[#allocation2 + $0x70] sm:$0xff]  }
 0x149   : > { %v978_v61 = vadd.f32 %v943_v30, %v780_v53  ;;  %1588 = vmatmul.bf16.gmra.mxu1 %v1494_v25  ;;  %1817 = vmatmul.bf16.gmra.mxu2 %v3405_v34  ;;  %v1495_v30 = vrot.slane %v4130_v41, 2  ;;  %v3406_v41 = vld [vmem:[#allocation2 + $0x50] sm:$0xff]  ;;  %v3502_v50 = vunpack.c.l.bf16 %v3646_v2 }
 0x14b   : > { %v1202_v6 = vadd.f32 %v1167_v45, %v978_v61  ;;  %2066 = vmatmul.bf16.gmra.mxu3 %v1969_v59  ;;  %v1498_v0 = vsel %vm829_vm1, %v1495_v30, %v1497_v16 }
 0x14c   : > { %v948_v51 = vpop.f32.mrf.mxu2 }
 0x14d   : > { %v4335_v14 = vadd.f32 %v1416_v44, %v1202_v6  ;;  %v1418_v12 = vpop.f32.mrf.mxu0  ;;  %v372_v6 = vmax.f32 %v3502_v50, 0.0 }
 0x14e   : > { %v781_v47 = vpop.f32.mrf.mxu1  ;;  %v1172_v8 = vpop.f32.mrf.mxu3 }
 0x14f   : > { %v782_v7 = vadd.f32 %v781_v47, %v4235_v57  ;;  %v2333_v57 = vld [vmem:[%s4516_s3 + $0x48] sm:$0xff]  ;;  %v2153_v47 = vrot.slane %v4341_v17, 2 }
 0x150   : > { %2391 = vperm.xlu0 %3736, %v2333_v57  }
 0x151   : > { %v979_v21 = vadd.f32 %v945_v40, %v782_v7  ;;  %v1496_v40 = vsel %vm829_vm1, %v1493_v48, %v1495_v30  ;;  %v2334_v48 = vld [vmem:[%s4516_s3 + $0x50] sm:$0xff]  ;;  %v2336_v7 = vld [vmem:[%s4516_s3 + $0x60] sm:$0xff]  ;;  %v2339_v30 = vld [vmem:[%s4516_s3 + $0x78] sm:$0xff] }
 0x152   : > { %2396 = vperm.xlu1 %3737, %v2334_v48   ;;  %v4390_v48 = vld [vmem:[#allocation2 + $0x68] sm:$0xff] }
 0x153   : > { %v1203_v19 = vadd.f32 %v1169_v5, %v979_v21  ;;  %v3503_v5 = vunpack.c.h.bf16 %v3646_v2 }
 0x154   : > { %v950_v45 = vpop.f32.mrf.mxu2 }
 0x155   : > { %v4346_v20 = vadd.f32 %v1418_v12, %v1203_v19  ;;  %v1421_v52 = vpop.f32.mrf.mxu0  ;;  %v373_v9 = vmax.f32 %v3503_v5, 0.0  ;;  %v2154_v19 = vsel %vm829_vm1, %v2151_v33, %v2153_v47  ;;  %v1499_v5 = vrot.slane %v4172_v13, 2 }
 0x156   : > { %v784_v56 = vpop.f32.mrf.mxu1  ;;  %v1174_v36 = vpop.f32.mrf.mxu3 }
 0x157   : > { %v785_v62 = vadd.f32 %v784_v56, %v4166_v10  ;;  %v3577_v3 = vpack.c.bf16 %v373_v9, %v372_v6  ;;  %v2343_v9 = vld [vmem:[%s4516_s3 + $0x98] sm:$0xff]  ;;  %v1500_v13 = vsel %vm829_vm1, %v1497_v16, %v1499_v5 }
 0x158   : > { %2249 = vmatmul.bf16.gmra.mxu0 %v2152_v54  ;;  %2406 = vperm.xlu0 %3736, %v2336_v7   ;;  %v312_v54 = vld [vmem:[#allocation2 + $0x78] sm:$0xf] }
 0x159   : > { %v980_v44 = vadd.f32 %v948_v51, %v785_v62  ;;  %1593 = vmatmul.bf16.gmra.mxu1 %v1496_v40  ;;  %1822 = vmatmul.bf16.gmra.mxu2 %v3406_v41  ;;  %v4361_v51 = vld [vmem:[#allocation2 + $0x60] sm:$0xff]  ;;  %3660 = vst [vmem:[#allocation2 + $0x70] sm:$0xff] %v3577_v3   ;;  %v343_v41 = vunpack.c.l.bf16 %v312_v54  ;;  %v2335_v16 = vld [vmem:[%s4516_s3 + $0x58] sm:$0xff] }
 0x15a   : > { %2411 = vperm.xlu1 %3737, %v2337_v31   ;;  %2401 = vperm.xlu2 %3738, %v2335_v16  }
 0x15b   : > { %v1204_v25 = vadd.f32 %v1172_v8, %v980_v44  ;;  %2071 = vmatmul.bf16.gmra.mxu3 %v1971_v55  ;;  %v1972_v8 = vrot.slane %v4361_v51, 1  ;;  %v374_v33 = vmax.f32 %v343_v41, 0.0 }
 0x15c   : > { %v953_v53 = vpop.f32.mrf.mxu2 }
 0x15d   : > { %v4355_v34 = vadd.f32 %v1421_v52, %v1204_v25  ;;  %v1423_v59 = vpop.f32.mrf.mxu0  ;;  %v1973_v52 = vsel %vm545_vm0, %v1970_v35, %v1972_v8  ;;  %v2340_v35 = vld [vmem:[%s4516_s3 + $0x80] sm:$0xff]  ;;  %v405_v25 = vpack.c.bf16 %v374_v33, %v374_v33 }
 0x15e   : > { %v786_v10 = vpop.f32.mrf.mxu1  ;;  %v1177_v61 = vpop.f32.mrf.mxu3 }
 0x15f   : > { %v787_v39 = vadd.f32 %v786_v10, %v4184_v18  ;;  %436 = vst [vmem:[#allocation2 + $0x78] sm:$0xf] %v405_v25  ;;  %v2155_v10 = vrot.slane %v4361_v51, 2 }
 0x160   : > { %2421 = vperm.xlu0 %3736, %v2339_v30  }
 0x161   : > { %v981_v43 = vadd.f32 %v950_v45, %v787_v39  ;;  %v3407_v45 = vld [vmem:[#allocation2 + $0x58] sm:$0xff]  ;;  %v2342_v39 = vld [vmem:[%s4516_s3 + $0x90] sm:$0xff]  ;;  %v2156_v51 = vsel %vm829_vm1, %v2153_v47, %v2155_v10 }
 0x162   : > { %2426 = vperm.xlu1 %3737, %v2340_v35   ;;  %v3409_v35 = vld [vmem:[#allocation2 + $0x68] sm:$0xff] }
 0x163   : > { %v1205_v12 = vadd.f32 %v1174_v36, %v981_v43 }
 0x164   : > { %v955_v46 = vpop.f32.mrf.mxu2 }
 0x165   : > { %v4369_v18 = vadd.f32 %v1423_v59, %v1205_v12  ;;  %v1426_v21 = vpop.f32.mrf.mxu0  ;;  %v3408_v12 = vld [vmem:[#allocation2 + $0x60] sm:$0xff] }
 0x166   : > { %v789_v17 = vpop.f32.mrf.mxu1  ;;  %v1179_v56 = vpop.f32.mrf.mxu3 }
 0x167   : > { %v790_v57 = vadd.f32 %v789_v17, %v4195_v27 }
 0x168   : > { %2254 = vmatmul.bf16.gmra.mxu0 %v2154_v19  ;;  %2436 = vperm.xlu0 %3736, %v2342_v39  }
 0x169   : > { %v982_v40 = vadd.f32 %v953_v53, %v790_v57  ;;  %1598 = vmatmul.bf16.gmra.mxu1 %v1498_v0  ;;  %1827 = vmatmul.bf16.gmra.mxu2 %v3407_v45 }
 0x16a   : > { %2441 = vperm.xlu1 %3737, %v2343_v9  }
 0x16b   : > { %v1206_v62 = vadd.f32 %v1177_v61, %v982_v40  ;;  %2076 = vmatmul.bf16.gmra.mxu3 %v1973_v52  ;;  %v1974_v61 = vrot.slane %v4390_v48, 1  ;;  %v2157_v52 = vrot.slane %v4390_v48, 2 }
 0x16c   : > { %v958_v27 = vpop.f32.mrf.mxu2 }
 0x16d   : > { %v4384_v36 = vadd.f32 %v1426_v21, %v1206_v62  ;;  %v1428_v44 = vpop.f32.mrf.mxu0  ;;  %v1975_v28 = vsel %vm545_vm0, %v1972_v8, %v1974_v61  ;;  %v4413_v8 = vld [vmem:[#allocation2 + $0x70] sm:$0xff] }
 0x16e   : > { %v791_v55 = vpop.f32.mrf.mxu1  ;;  %v1182_v53 = vpop.f32.mrf.mxu3  ;;  %v1976_v54 = vrot.slane %v4413_v8, 1 }
 0x16f   : > { %v792_v2 = vadd.f32 %v791_v55, %v4210_v42 }
 0x171   : > { %v983_v50 = vadd.f32 %v955_v46, %v792_v2  ;;  %v1888_v2 = vld [vmem:[#allocation2 + $0x78] sm:$0x1] }
 0x173   : > { %v1207_v59 = vadd.f32 %v1179_v56, %v983_v50  ;;  %v1501_v56 = vrot.slane %v4204_v37, 2  ;;  %v1977_v37 = vsel %vm545_vm0, %v1974_v61, %v1976_v54  ;;  %v1947_v50 = vunpack.c.l.b16 %v1888_v2 }
 0x174   : > { %v960_v42 = vpop.f32.mrf.mxu2 }
 0x175   : > { %v4398_v6 = vadd.f32 %v1428_v44, %v1207_v59  ;;  %v1431_v3 = vpop.f32.mrf.mxu0 }
 0x176   : > { %v794_v43 = vpop.f32.mrf.mxu1  ;;  %v1184_v46 = vpop.f32.mrf.mxu3 }
 0x177   : > { %v795_v7 = vadd.f32 %v794_v43, %v4180_v15  ;;  %v2341_v43 = vld [vmem:[%s4516_s3 + $0x88] sm:$0xff] }
 0x178   : > { %2259 = vmatmul.bf16.gmra.mxu0 %v2156_v51 }
 0x179   : > { %v984_v31 = vadd.f32 %v958_v27, %v795_v7  ;;  %1603 = vmatmul.bf16.gmra.mxu1 %v1500_v13  ;;  %1832 = vmatmul.bf16.gmra.mxu2 %v3408_v12  ;;  %v1502_v27 = vsel %vm829_vm1, %v1499_v5, %v1501_v56  ;;  %v2159_v13 = vrot.slane %v4413_v8, 2 }
 0x17b   : > { %v1208_v17 = vadd.f32 %v1182_v53, %v984_v31  ;;  %2081 = vmatmul.bf16.gmra.mxu3 %v1975_v28  ;;  %v2338_v53 = vld [vmem:[%s4516_s3 + $0x70] sm:$0xff] }
 0x17c   : > { %v963_v0 = vpop.f32.mrf.mxu2  ;;  %2416 = vperm.xlu2 %3738, %v2338_v53  }
 0x17d   : > { %v4407_v21 = vadd.f32 %v1431_v3, %v1208_v17  ;;  %v1433_v19 = vpop.f32.mrf.mxu0  ;;  %v1503_v3 = vrot.slane %v4237_v58, 2  ;;  %v2160_v17 = vsel %vm829_vm1, %v2157_v52, %v2159_v13  ;;  %v2118_v58 = vld [vmem:[#allocation2 + $0x78] sm:$0x3] }
 0x17e   : > { %v796_v47 = vpop.f32.mrf.mxu1  ;;  %v1187_v45 = vpop.f32.mrf.mxu3 }
 0x17f   : > { %v797_v15 = vadd.f32 %v796_v47, %v4191_v22  ;;  %v2158_v22 = vsel %vm829_vm1, %v2155_v10, %v2157_v52 }
 0x181   : > { %v985_v57 = vadd.f32 %v960_v42, %v797_v15  ;;  %v1958_v42 = vpack.c.b16 %v1947_v50, %v1947_v50 }
 0x183   : > { %v1209_v40 = vadd.f32 %v1184_v46, %v985_v57  ;;  %v1978_v12 = vrot.slane %v1958_v42, 1  ;;  %v2139_v57 = vunpack.c.l.b16 %v2118_v58 }
 0x184   : > { %v965_v62 = vpop.f32.mrf.mxu2  ;;  %2431 = vperm.xlu2 %3738, %v2341_v43  }
 0x185   : > { %v4418_v41 = vadd.f32 %v1433_v19, %v1209_v40  ;;  %v1436_v33 = vpop.f32.mrf.mxu0  ;;  %v1462_v19 = vld [vmem:[#allocation2 + $0x64] sm:$0x3]  ;;  %v1979_v15 = vsel %vm545_vm0, %v1976_v54, %v1978_v12  ;;  %v2141_v54 = vpack.c.b16 %v2139_v57, %v2139_v57 }
 0x186   : > { %v799_v30 = vpop.f32.mrf.mxu1  ;;  %v1189_v44 = vpop.f32.mrf.mxu3  ;;  %v1483_v8 = vunpack.c.l.b16 %v1462_v19 }
 0x187   : > { %v800_v55 = vadd.f32 %v799_v30, %v4206_v38 }
 0x188   : > { %2264 = vmatmul.bf16.gmra.mxu0 %v2158_v22 }
 0x189   : > { %v986_v25 = vadd.f32 %v963_v0, %v800_v55  ;;  %1608 = vmatmul.bf16.gmra.mxu1 %v1502_v27  ;;  %1837 = vmatmul.bf16.gmra.mxu2 %v3409_v35  ;;  %v3410_v0 = vld [vmem:[#allocation2 + $0x70] sm:$0xff]  ;;  %v1485_v27 = vpack.c.b16 %v1483_v8, %v1483_v8 }
 0x18b   : > { %v1210_v48 = vadd.f32 %v1187_v45, %v986_v25  ;;  %2086 = vmatmul.bf16.gmra.mxu3 %v1977_v37  ;;  %v1505_v37 = vrot.slane %v1485_v27, 2  ;;  %v2161_v25 = vrot.slane %v2141_v54, 2 }
 0x18c   : > { %v1798_v10 = vpop.f32.mrf.mxu2 }
 0x18d   : > { %v4427_v5 = vadd.f32 %v1436_v33, %v1210_v48  ;;  %v1438_v59 = vpop.f32.mrf.mxu0 }
 0x18e   : > { %v801_v38 = vpop.f32.mrf.mxu1  ;;  %v2047_v61 = vpop.f32.mrf.mxu3 }
 0x18f   : > { %v802_v39 = vadd.f32 %v801_v38, %v4226_v49  ;;  %v1504_v49 = vsel %vm829_vm1, %v1501_v56, %v1503_v3 }
 0x191   : > { %v987_v9 = vadd.f32 %v965_v62, %v802_v39  ;;  %v2347_v62 = vpop.permute.xlu0 %2346  ;;  %v1506_v39 = vsel %vm829_vm1, %v1503_v3, %v1505_v37 }
 0x193   : > { %v1211_v51 = vadd.f32 %v1189_v44, %v987_v9 }
 0x194   : > { %v1800_v46 = vpop.f32.mrf.mxu2 }
 0x195   : > { %v4435_v7 = vadd.f32 %v1438_v59, %v1211_v51  ;;  %v2230_v31 = vpop.f32.mrf.mxu0 }
 0x196   : > { %v1574_v28 = vpop.f32.mrf.mxu1  ;;  %v2049_v47 = vpop.f32.mrf.mxu3 }
 0x197   : > { %v1624_v16 = vadd.f32 %v1574_v28, %v4244_v32  ;;  %v4444_v32 = vld [vmem:[%s4515_s2] ss:$0 sm:$0xff] }
 0x198   : > { %2269 = vmatmul.bf16.gmra.mxu0 %v2160_v17  ;;  %v2357_v17 = vpop.permute.xlu1 %2356 }
 0x199   : > { %v1848_v45 = vadd.f32 %v1798_v10, %v1624_v16  ;;  %1613 = vmatmul.bf16.gmra.mxu1 %v1504_v49  ;;  %1842 = vmatmul.bf16.gmra.mxu2 %v3410_v0  ;;  %v2352_v48 = vpop.permute.xlu0 %2351 }
 0x19b   : > { %v2097_v40 = vadd.f32 %v2047_v61, %v1848_v45  ;;  %2091 = vmatmul.bf16.gmra.mxu3 %v1979_v15  ;;  %v2162_v61 = vsel %vm829_vm1, %v2159_v13, %v2161_v25 }
 0x19c   : > { %v1803_v56 = vpop.f32.mrf.mxu2 }
 0x19d   : > { %v2280_v30 = vadd.f32 %v2230_v31, %v2097_v40  ;;  %v2232_v33 = vpop.f32.mrf.mxu0 }
 0x19e   : > { %v1576_v52 = vpop.f32.mrf.mxu1  ;;  %v2052_v35 = vpop.f32.mrf.mxu3 }
 0x19f   : > { %v1625_v22 = vadd.f32 %v1576_v52, %v4250_v1  ;;  %v2304_v44 = vadd.f32 %v4444_v32, %v2280_v30 }
 0x1a0   : > { %v2362_v30 = vpop.permute.xlu1 %2361 }
 0x1a1   : > { %v1849_v55 = vadd.f32 %v1800_v46, %v1625_v22  ;;  %v2444_v10 = vmul.f32 %v2347_v62, %v2304_v44 }
 0x1a3   : > { %v2098_v2 = vadd.f32 %v2049_v47, %v1849_v55  ;;  %v2489_v12 = vmul.f32 %v2444_v10, %v2444_v10 }
 0x1a4   : > { %v1805_v50 = vpop.f32.mrf.mxu2 }
 0x1a5   : > { %v2281_v53 = vadd.f32 %v2232_v33, %v2098_v2  ;;  %v2235_v59 = vpop.f32.mrf.mxu0 }
 0x1a6   : > { %v1579_v38 = vpop.f32.mrf.mxu1  ;;  %v2054_v9 = vpop.f32.mrf.mxu3 }
 0x1a7   : > { %v1626_v1 = vadd.f32 %v1579_v38, %v4256_v24  ;;  %v2305_v42 = vadd.f32 %v4444_v32, %v2281_v53  ;;  %v2367_v53 = vpop.permute.xlu2 %2366 }
 0x1a8   : > { %2274 = vmatmul.bf16.gmra.mxu0 %v2162_v61 }
 0x1a9   : > { %v1850_v43 = vadd.f32 %v1803_v56, %v1626_v1  ;;  %v2445_v51 = vmul.f32 %v2352_v48, %v2305_v42  ;;  %1618 = vmatmul.bf16.gmra.mxu1 %v1506_v39 }
 0x1ab   : > { %v2099_v46 = vadd.f32 %v2052_v35, %v1850_v43  ;;  %v2464_v28 = vadd.f32 %v2445_v51, %v2444_v10  ;;  %v2490_v31 = vmul.f32 %v2445_v51, %v2445_v51  ;;  %v3586_v49 = vpack.c.bf16 %v2445_v51, %v2444_v10 }
 0x1ac   : > { %v1808_v13 = vpop.f32.mrf.mxu2 }
 0x1ad   : > { %v2282_v0 = vadd.f32 %v2235_v59, %v2099_v46  ;;  %v2509_v3 = vadd.f32 %v2490_v31, %v2489_v12  ;;  %3587 = vst [vmem:[%s3851_s12] sm:$0xff] %v3586_v49   ;;  %v2237_v47 = vpop.f32.mrf.mxu0 }
 0x1ae   : > { %v1581_v16 = vpop.f32.mrf.mxu1  ;;  %v2057_v58 = vpop.f32.mrf.mxu3 }
 0x1af   : > { %v1627_v24 = vadd.f32 %v1581_v16, %v4269_v4  ;;  %v2306_v19 = vadd.f32 %v4444_v32, %v2282_v0 }
 0x1b1   : > { %v1851_v15 = vadd.f32 %v1805_v50, %v1627_v24  ;;  %v2446_v45 = vmul.f32 %v2357_v17, %v2306_v19 }
 0x1b3   : > { %v2100_v8 = vadd.f32 %v2054_v9, %v1851_v15  ;;  %v2465_v57 = vadd.f32 %v2464_v28, %v2446_v45  ;;  %v2491_v40 = vmul.f32 %v2446_v45, %v2446_v45  ;;  %v2372_v28 = vpop.permute.xlu2 %2371 }
 0x1b4   : > { %v1810_v52 = vpop.f32.mrf.mxu2 }
 0x1b5   : > { %v2283_v62 = vadd.f32 %v2237_v47, %v2100_v8  ;;  %v2510_v56 = vadd.f32 %v2509_v3, %v2491_v40  ;;  %v2240_v27 = vpop.f32.mrf.mxu0  ;;  %v2377_v8 = vpop.permute.xlu0 %2376 }
 0x1b6   : > { %v1584_v33 = vpop.f32.mrf.mxu1  ;;  %v2059_v4 = vpop.f32.mrf.mxu3 }
 0x1b7   : > { %v1628_v54 = vadd.f32 %v1584_v33, %v4278_v63  ;;  %v2307_v22 = vadd.f32 %v4444_v32, %v2283_v62 }
 0x1b9   : > { %v1852_v35 = vadd.f32 %v1808_v13, %v1628_v54  ;;  %v2447_v55 = vmul.f32 %v2362_v30, %v2307_v22 }
 0x1bb   : > { %v2101_v44 = vadd.f32 %v2057_v58, %v1852_v35  ;;  %v2466_v37 = vadd.f32 %v2465_v57, %v2447_v55  ;;  %v2492_v25 = vmul.f32 %v2447_v55, %v2447_v55  ;;  %v3591_v2 = vpack.c.bf16 %v2447_v55, %v2446_v45  ;;  %v2382_v55 = vpop.permute.xlu1 %2381 }
 0x1bc   : > { %v1813_v10 = vpop.f32.mrf.mxu2 }
 0x1bd   : > { %v2284_v48 = vadd.f32 %v2240_v27, %v2101_v44  ;;  %v2511_v50 = vadd.f32 %v2510_v56, %v2492_v25  ;;  %3661 = vst [vmem:[%s3851_s12 + $0x8] sm:$0xff] %v3591_v2   ;;  %v2242_v59 = vpop.f32.mrf.mxu0 }
 0x1be   : > { %v1586_v38 = vpop.f32.mrf.mxu1  ;;  %v2062_v61 = vpop.f32.mrf.mxu3 }
 0x1bf   : > { %v1629_v39 = vadd.f32 %v1586_v38, %v4289_v60  ;;  %v2308_v63 = vadd.f32 %v4444_v32, %v2284_v48 }
 0x1c1   : > { %v1853_v1 = vadd.f32 %v1810_v52, %v1629_v39  ;;  %v2448_v42 = vmul.f32 %v2367_v53, %v2308_v63 }
 0x1c3   : > { %v2102_v9 = vadd.f32 %v2059_v4, %v1853_v1  ;;  %v2467_v43 = vadd.f32 %v2466_v37, %v2448_v42  ;;  %v2493_v51 = vmul.f32 %v2448_v42, %v2448_v42  ;;  %v2387_v1 = vpop.permute.xlu2 %2386 }
 0x1c4   : > { %v1815_v31 = vpop.f32.mrf.mxu2 }
 0x1c5   : > { %v2285_v12 = vadd.f32 %v2242_v59, %v2102_v9  ;;  %v2512_v46 = vadd.f32 %v2511_v50, %v2493_v51  ;;  %v2245_v17 = vpop.f32.mrf.mxu0 }
 0x1c6   : > { %v1589_v49 = vpop.f32.mrf.mxu1  ;;  %v2064_v60 = vpop.f32.mrf.mxu3 }
 0x1c7   : > { %v1630_v0 = vadd.f32 %v1589_v49, %v4298_v29  ;;  %v2309_v3 = vadd.f32 %v4444_v32, %v2285_v12 }
 0x1c9   : > { %v1854_v13 = vadd.f32 %v1813_v10, %v1630_v0  ;;  %v2449_v16 = vmul.f32 %v2372_v28, %v2309_v3 }
 0x1cb   : > { %v2103_v47 = vadd.f32 %v2062_v61, %v1854_v13  ;;  %v2468_v24 = vadd.f32 %v2467_v43, %v2449_v16  ;;  %v2494_v19 = vmul.f32 %v2449_v16, %v2449_v16  ;;  %v3596_v58 = vpack.c.bf16 %v2449_v16, %v2448_v42 }
 0x1cc   : > { %v1818_v57 = vpop.f32.mrf.mxu2 }
 0x1cd   : > { %v2286_v15 = vadd.f32 %v2245_v17, %v2103_v47  ;;  %v2513_v45 = vadd.f32 %v2512_v46, %v2494_v19  ;;  %3662 = vst [vmem:[%s3851_s12 + $0x10] sm:$0xff] %v3596_v58   ;;  %v2247_v62 = vpop.f32.mrf.mxu0 }
 0x1ce   : > { %v1591_v40 = vpop.f32.mrf.mxu1  ;;  %v2067_v30 = vpop.f32.mrf.mxu3 }
 0x1cf   : > { %v1631_v56 = vadd.f32 %v1591_v40, %v4306_v11  ;;  %v2310_v29 = vadd.f32 %v4444_v32, %v2286_v15 }
 0x1d1   : > { %v1855_v52 = vadd.f32 %v1815_v31, %v1631_v56  ;;  %v2450_v33 = vmul.f32 %v2377_v8, %v2310_v29  ;;  %v2397_v29 = vpop.permute.xlu1 %2396 }
 0x1d3   : > { %v2104_v27 = vadd.f32 %v2064_v60, %v1855_v52  ;;  %v2469_v54 = vadd.f32 %v2468_v24, %v2450_v33  ;;  %v2495_v22 = vmul.f32 %v2450_v33, %v2450_v33  ;;  %v2392_v60 = vpop.permute.xlu0 %2391 }
 0x1d4   : > { %v1820_v44 = vpop.f32.mrf.mxu2 }
 0x1d5   : > { %v2287_v4 = vadd.f32 %v2247_v62, %v2104_v27  ;;  %v2514_v35 = vadd.f32 %v2513_v45, %v2495_v22  ;;  %v2250_v25 = vpop.f32.mrf.mxu0 }
 0x1d6   : > { %v1594_v37 = vpop.f32.mrf.mxu1  ;;  %v2069_v11 = vpop.f32.mrf.mxu3 }
 0x1d7   : > { %v1632_v2 = vadd.f32 %v1594_v37, %v4312_v26  ;;  %v2311_v53 = vadd.f32 %v4444_v32, %v2287_v4 }
 0x1d9   : > { %v1856_v48 = vadd.f32 %v1818_v57, %v1632_v2  ;;  %v2451_v50 = vmul.f32 %v2382_v55, %v2311_v53  ;;  %v2402_v2 = vpop.permute.xlu2 %2401 }
 0x1db   : > { %v2105_v10 = vadd.f32 %v2067_v30, %v1856_v48  ;;  %v2470_v38 = vadd.f32 %v2469_v54, %v2451_v50  ;;  %v2496_v59 = vmul.f32 %v2451_v50, %v2451_v50  ;;  %v3601_v39 = vpack.c.bf16 %v2451_v50, %v2450_v33 }
 0x1dc   : > { %v1823_v42 = vpop.f32.mrf.mxu2 }
 0x1dd   : > { %v2288_v63 = vadd.f32 %v2250_v25, %v2105_v10  ;;  %v2515_v61 = vadd.f32 %v2514_v35, %v2496_v59  ;;  %3663 = vst [vmem:[%s3851_s12 + $0x18] sm:$0xff] %v3601_v39   ;;  %v2252_v43 = vpop.f32.mrf.mxu0 }
 0x1de   : > { %v1596_v9 = vpop.f32.mrf.mxu1  ;;  %v2072_v12 = vpop.f32.mrf.mxu3 }
 0x1df   : > { %v1633_v51 = vadd.f32 %v1596_v9, %v4323_v23  ;;  %v2312_v26 = vadd.f32 %v4444_v32, %v2288_v63 }
 0x1e1   : > { %v1857_v46 = vadd.f32 %v1820_v44, %v1633_v51  ;;  %v2452_v28 = vmul.f32 %v2387_v1, %v2312_v26 }
 0x1e3   : > { %v2106_v31 = vadd.f32 %v2069_v11, %v1857_v46  ;;  %v2471_v49 = vadd.f32 %v2470_v38, %v2452_v28  ;;  %v2497_v17 = vmul.f32 %v2452_v28, %v2452_v28 }
 0x1e4   : > { %v1825_v13 = vpop.f32.mrf.mxu2 }
 0x1e5   : > { %v2289_v0 = vadd.f32 %v2252_v43, %v2106_v31  ;;  %v2516_v3 = vadd.f32 %v2515_v61, %v2497_v17  ;;  %v2255_v47 = vpop.f32.mrf.mxu0 }
 0x1e6   : > { %v1599_v16 = vpop.f32.mrf.mxu1  ;;  %v2074_v23 = vpop.f32.mrf.mxu3 }
 0x1e7   : > { %v1634_v24 = vadd.f32 %v1599_v16, %v4335_v14  ;;  %v2313_v19 = vadd.f32 %v4444_v32, %v2289_v0 }
 0x1e9   : > { %v1858_v58 = vadd.f32 %v1823_v42, %v1634_v24  ;;  %v2453_v15 = vmul.f32 %v2392_v60, %v2313_v19 }
 0x1eb   : > { %v2107_v45 = vadd.f32 %v2072_v12, %v1858_v58  ;;  %v2472_v8 = vadd.f32 %v2471_v49, %v2453_v15  ;;  %v2498_v57 = vmul.f32 %v2453_v15, %v2453_v15  ;;  %v3606_v40 = vpack.c.bf16 %v2453_v15, %v2452_v28 }
 0x1ec   : > { %v1828_v30 = vpop.f32.mrf.mxu2 }
 0x1ed   : > { %v2290_v62 = vadd.f32 %v2255_v47, %v2107_v45  ;;  %v2517_v56 = vadd.f32 %v2516_v3, %v2498_v57  ;;  %3664 = vst [vmem:[%s3851_s12 + $0x20] sm:$0xff] %v3606_v40   ;;  %v2257_v33 = vpop.f32.mrf.mxu0 }
 0x1ee   : > { %v1601_v52 = vpop.f32.mrf.mxu1  ;;  %v2077_v54 = vpop.f32.mrf.mxu3 }
 0x1ef   : > { %v1635_v27 = vadd.f32 %v1601_v52, %v4346_v20  ;;  %v2314_v14 = vadd.f32 %v4444_v32, %v2290_v62 }
 0x1f1   : > { %v1859_v22 = vadd.f32 %v1825_v13, %v1635_v27  ;;  %v2454_v4 = vmul.f32 %v2397_v29, %v2314_v14  ;;  %v2417_v14 = vpop.permute.xlu2 %2416 }
 0x1f3   : > { %v2108_v35 = vadd.f32 %v2074_v23, %v1859_v22  ;;  %v2473_v55 = vadd.f32 %v2472_v8, %v2454_v4  ;;  %v2499_v44 = vmul.f32 %v2454_v4, %v2454_v4  ;;  %v2412_v23 = vpop.permute.xlu1 %2411 }
 0x1f4   : > { %v1830_v53 = vpop.f32.mrf.mxu2 }
 0x1f5   : > { %v2291_v37 = vadd.f32 %v2257_v33, %v2108_v35  ;;  %v2518_v25 = vadd.f32 %v2517_v56, %v2499_v44  ;;  %v2260_v48 = vpop.f32.mrf.mxu0 }
 0x1f6   : > { %v1604_v11 = vpop.f32.mrf.mxu1  ;;  %v2079_v20 = vpop.f32.mrf.mxu3 }
 0x1f7   : > { %v1636_v50 = vadd.f32 %v1604_v11, %v4355_v34  ;;  %v2315_v10 = vadd.f32 %v4444_v32, %v2291_v37  ;;  %v2407_v34 = vpop.permute.xlu0 %2406 }
 0x1f9   : > { %v1860_v38 = vadd.f32 %v1828_v30, %v1636_v50  ;;  %v2455_v59 = vmul.f32 %v2402_v2, %v2315_v10 }
 0x1fb   : > { %v2109_v39 = vadd.f32 %v2077_v54, %v1860_v38  ;;  %v2474_v63 = vadd.f32 %v2473_v55, %v2455_v59  ;;  %v2500_v61 = vmul.f32 %v2455_v59, %v2455_v59  ;;  %v3611_v1 = vpack.c.bf16 %v2455_v59, %v2454_v4 }
 0x1fc   : > { %v1833_v43 = vpop.f32.mrf.mxu2 }
 0x1fd   : > { %v2292_v42 = vadd.f32 %v2260_v48, %v2109_v39  ;;  %v2519_v9 = vadd.f32 %v2518_v25, %v2500_v61  ;;  %3665 = vst [vmem:[%s3851_s12 + $0x28] sm:$0xff] %v3611_v1   ;;  %v2262_v26 = vpop.f32.mrf.mxu0 }
 0x1fe   : > { %v1606_v51 = vpop.f32.mrf.mxu1  ;;  %v2082_v28 = vpop.f32.mrf.mxu3 }
 0x1ff   : > { %v2316_v12 = vadd.f32 %v4444_v32, %v2292_v42  ;;  %v1637_v46 = vadd.f32 %v1606_v51, %v4369_v18  ;;  %v2422_v50 = vpop.permute.xlu0 %2421 }
 0x201   : > { %v2456_v31 = vmul.f32 %v2407_v34, %v2316_v12  ;;  %v1861_v49 = vadd.f32 %v1830_v53, %v1637_v46 }
 0x203   : > { %v2501_v17 = vmul.f32 %v2456_v31, %v2456_v31  ;;  %v2475_v0 = vadd.f32 %v2474_v63, %v2456_v31  ;;  %v2110_v3 = vadd.f32 %v2079_v20, %v1861_v49 }
 0x204   : > { %v1835_v58 = vpop.f32.mrf.mxu2 }
 0x205   : > { %v2520_v60 = vadd.f32 %v2519_v9, %v2501_v17  ;;  %v2293_v13 = vadd.f32 %v2262_v26, %v2110_v3  ;;  %v2265_v47 = vpop.f32.mrf.mxu0  ;;  %v2427_v26 = vpop.permute.xlu1 %2426 }
 0x206   : > { %v1609_v16 = vpop.f32.mrf.mxu1  ;;  %v2084_v45 = vpop.f32.mrf.mxu3 }
 0x207   : > { %v2317_v24 = vadd.f32 %v4444_v32, %v2293_v13  ;;  %v1638_v19 = vadd.f32 %v1609_v16, %v4384_v36  ;;  %v2432_v16 = vpop.permute.xlu2 %2431 }
 0x209   : > { %v2457_v15 = vmul.f32 %v2412_v23, %v2317_v24  ;;  %v1862_v18 = vadd.f32 %v1833_v43, %v1638_v19 }
 0x20b   : > { %v2476_v8 = vadd.f32 %v2475_v0, %v2457_v15  ;;  %v2502_v57 = vmul.f32 %v2457_v15, %v2457_v15  ;;  %v3616_v40 = vpack.c.bf16 %v2457_v15, %v2456_v31  ;;  %v2111_v62 = vadd.f32 %v2082_v28, %v1862_v18 }
 0x20c   : > { %v1838_v22 = vpop.f32.mrf.mxu2 }
 0x20d   : > { %v2521_v56 = vadd.f32 %v2520_v60, %v2502_v57  ;;  %3666 = vst [vmem:[%s3851_s12 + $0x30] sm:$0xff] %v3616_v40   ;;  %v2294_v29 = vadd.f32 %v2265_v47, %v2111_v62  ;;  %v2267_v52 = vpop.f32.mrf.mxu0 }
 0x20e   : > { %v1611_v30 = vpop.f32.mrf.mxu1  ;;  %v2087_v44 = vpop.f32.mrf.mxu3 }
 0x20f   : > { %v2318_v33 = vadd.f32 %v4444_v32, %v2294_v29  ;;  %v1639_v27 = vadd.f32 %v1611_v30, %v4398_v6 }
 0x211   : > { %v2458_v36 = vmul.f32 %v2417_v14, %v2318_v33  ;;  %v1863_v54 = vadd.f32 %v1835_v58, %v1639_v27 }
 0x213   : > { %v2477_v4 = vadd.f32 %v2476_v8, %v2458_v36  ;;  %v2503_v35 = vmul.f32 %v2458_v36, %v2458_v36  ;;  %v2112_v55 = vadd.f32 %v2084_v45, %v1863_v54 }
 0x214   : > { %v1840_v63 = vpop.f32.mrf.mxu2 }
 0x215   : > { %v2522_v37 = vadd.f32 %v2521_v56, %v2503_v35  ;;  %v2295_v25 = vadd.f32 %v2267_v52, %v2112_v55  ;;  %v2270_v53 = vpop.f32.mrf.mxu0  ;;  %v2437_v56 = vpop.permute.xlu0 %2436 }
 0x216   : > { %v1614_v2 = vpop.f32.mrf.mxu1  ;;  %v2089_v42 = vpop.f32.mrf.mxu3 }
 0x217   : > { %v2319_v11 = vadd.f32 %v4444_v32, %v2295_v25  ;;  %v1640_v48 = vadd.f32 %v1614_v2, %v4407_v21  ;;  %v2442_v35 = vpop.permute.xlu1 %2441 }
 0x219   : > { %v2459_v10 = vmul.f32 %v2422_v50, %v2319_v11  ;;  %v1864_v6 = vadd.f32 %v1838_v22, %v1640_v48 }
 0x21b   : > { %v2478_v20 = vadd.f32 %v2477_v4, %v2459_v10  ;;  %v2504_v38 = vmul.f32 %v2459_v10, %v2459_v10  ;;  %v3621_v59 = vpack.c.bf16 %v2459_v10, %v2458_v36  ;;  %v2113_v39 = vadd.f32 %v2087_v44, %v1864_v6 }
 0x21c   : > { %v1843_v0 = vpop.f32.mrf.mxu2 }
 0x21d   : > { %v2523_v61 = vadd.f32 %v2522_v37, %v2504_v38  ;;  %3667 = vst [vmem:[%s3851_s12 + $0x38] sm:$0xff] %v3621_v59   ;;  %v2296_v1 = vadd.f32 %v2270_v53, %v2113_v39  ;;  %v2272_v12 = vpop.f32.mrf.mxu0 }
 0x21e   : > { %v1616_v9 = vpop.f32.mrf.mxu1  ;;  %v2092_v47 = vpop.f32.mrf.mxu3 }
 0x21f   : > { %v2320_v43 = vadd.f32 %v4444_v32, %v2296_v1  ;;  %v1641_v51 = vadd.f32 %v1616_v9, %v4418_v41 }
 0x221   : > { %v2460_v21 = vmul.f32 %v2427_v26, %v2320_v43  ;;  %v1865_v46 = vadd.f32 %v1840_v63, %v1641_v51 }
 0x223   : > { %v2479_v34 = vadd.f32 %v2478_v20, %v2460_v21  ;;  %v2505_v28 = vmul.f32 %v2460_v21, %v2460_v21  ;;  %v2114_v31 = vadd.f32 %v2089_v42, %v1865_v46 }
 0x224   : > { %v1845_v29 = vpop.f32.mrf.mxu2 }
 0x225   : > { %v2524_v49 = vadd.f32 %v2523_v61, %v2505_v28  ;;  %v2297_v17 = vadd.f32 %v2272_v12, %v2114_v31  ;;  %v2275_v19 = vpop.f32.mrf.mxu0 }
 0x226   : > { %v1619_v3 = vpop.f32.mrf.mxu1  ;;  %v2094_v52 = vpop.f32.mrf.mxu3 }
 0x227   : > { %v2321_v60 = vadd.f32 %v4444_v32, %v2297_v17  ;;  %v1642_v13 = vadd.f32 %v1619_v3, %v4427_v5 }
 0x229   : > { %v2461_v24 = vmul.f32 %v2432_v16, %v2321_v60  ;;  %v1866_v41 = vadd.f32 %v1843_v0, %v1642_v13 }
 0x22b   : > { %v2480_v23 = vadd.f32 %v2479_v34, %v2461_v24  ;;  %v2506_v58 = vmul.f32 %v2461_v24, %v2461_v24  ;;  %v3626_v15 = vpack.c.bf16 %v2461_v24, %v2460_v21  ;;  %v2115_v18 = vadd.f32 %v2092_v47, %v1866_v41 }
 0x22d   : > { %v2525_v45 = vadd.f32 %v2524_v49, %v2506_v58  ;;  %3668 = vst [vmem:[%s3851_s12 + $0x40] sm:$0xff] %v3626_v15   ;;  %v2298_v8 = vadd.f32 %v2275_v19, %v2115_v18  ;;  %v2277_v36 = vpop.f32.mrf.mxu0 }
 0x22e   : > { %v1621_v57 = vpop.f32.mrf.mxu1 }
 0x22f   : > { %v2322_v40 = vadd.f32 %v4444_v32, %v2298_v8  ;;  %v1643_v62 = vadd.f32 %v1621_v57, %v4435_v7 }
 0x231   : > { %v2462_v5 = vmul.f32 %v2437_v56, %v2322_v40  ;;  %v1867_v30 = vadd.f32 %v1845_v29, %v1643_v62 }
 0x233   : > { %v2481_v33 = vadd.f32 %v2480_v23, %v2462_v5  ;;  %v2507_v27 = vmul.f32 %v2462_v5, %v2462_v5  ;;  %v2116_v14 = vadd.f32 %v2094_v52, %v1867_v30 }
 0x235   : > { %v2526_v54 = vadd.f32 %v2525_v45, %v2507_v27  ;;  %v2299_v22 = vadd.f32 %v2277_v36, %v2116_v14 }
 0x237   : > { %v2323_v4 = vadd.f32 %v4444_v32, %v2299_v22 }
 0x239   : > { %v2463_v55 = vmul.f32 %v2442_v35, %v2323_v4 }
 0x23b   : > { %v2482_v44 = vadd.f32 %v2481_v33, %v2463_v55  ;;  %v2508_v37 = vmul.f32 %v2463_v55, %v2463_v55  ;;  %v3631_v25 = vpack.c.bf16 %v2463_v55, %v2462_v5 }
 0x23d   : > { %v2483_v7 = vrot.slane %v2482_v44, 4  ;;  %v2527_v2 = vadd.f32 %v2526_v54, %v2508_v37  ;;  %3669 = vst [vmem:[%s3851_s12 + $0x48] sm:$0xff] %v3631_v25  }
 0x23f   : > { %v2484_v53 = vadd.f32 %v2483_v7, %v2482_v44  ;;  %v2528_v11 = vrot.slane %v2527_v2, 4 }
 0x241   : > { %v2485_v48 = vrot.slane %v2484_v53, 2  ;;  %v2529_v50 = vadd.f32 %v2528_v11, %v2527_v2 }
 0x243   : > { %v2486_v10 = vadd.f32 %v2485_v48, %v2484_v53  ;;  %v2530_v6 = vrot.slane %v2529_v50, 2 }
 0x245   : > { %v2487_v20 = vrot.slane %v2486_v10, 1  ;;  %v2531_v38 = vadd.f32 %v2530_v6, %v2529_v50 }
 0x247   : > { %v2532_v59 = vrot.slane %v2531_v38, 1  ;;  %v2488_v32 = vadd.f32 %v2487_v20, %v2486_v10 }
 0x249   : > { %v2533_v39 = vadd.f32 %v2532_v59, %v2531_v38 }
 0x24b   : > { %v2535_v63 = vsel %vm2534_vm2, %v2488_v32, %v2533_v39 }
 0x24c   : > { %2536 = vst [vmem:[%s3856_s16] sm:$0x3] %v2535_v63 }
 0x24d PF: > { %s16_s22 = sadd.s32 1, %s3780_s22   ;;  %s4520_s12 = sld [smem:[#allocation6_spill]] }
 0x24e   : > { %p13_p8 = scmp.ge.s32.totalorder %s16_s22, 6   ;;  %s4521_s18 = smov %s3772_s20 }
 0x24f   : > { %s4522_s19 = smov %s3776_s21  ;;  %s4523_s20 = smov %s4526_s23 }
 0x250   :  { %15 = sbr.rel (!%p13_p8) target bundleno = 3 (0x3), region = 103 }
 0x253   : > { %s4524_s21 = smov %s4520_s12 }
 0x255   :  { %2629 = vsyncmov [#allocation3] }
 0x258   :  { %s2630_s16 = vpop.sfrf %2629 }
 0x259   :  { %p3324_p9 = scmp.ne.s32.totalorder %s2630_s16, 0 }
 0x25b   :  { %2634 = shalt.err (%p3324_p9)  }

// kernel: dilated_block.6
= control target key start
LH: loop header
LB: loop body
LE: loop exit
PB: predicated region body
PF: predicated region fallthrough
CT: control target
= control target key end

     0   :  { %s3416_s18 = smov 0   ;;  %s3418_s19 = smov 0   ;;  %s4125_s0 = inlined_call_operand.vmem [shape: bf16[2,400,128], index: 0, kind: input, shape index: {}]   ;;  %s4126_s1 = inlined_call_operand.vmem [shape: bf16[9,128,128], index: 1, kind: input, shape index: {}]   ;;  %s4127_s2 = inlined_call_operand.vmem [shape: f32[1,128], index: 2, kind: input, shape index: {}]   ;;  %s4128_s3 = inlined_call_operand.vmem [shape: f32[160,1], index: 3, kind: input, shape index: {}]   ;;  %s4129_s4 = inlined_call_operand.vmem [shape: f32[2,320,128], index: 4, kind: output, shape index: {0}]   ;;  %s4130_s5 = inlined_call_operand.vmem [shape: f32[2,2,2,128], index: 5, kind: output, shape index: {1}]  }
   0x1   :  { %s3420_s20 = smov 0   ;;  %s3422_s21 = smov 0  }
   0x2   :  { %s3424_s22 = smov 0  }
   0x3 LB: > { %s25_s23 = sadd.s32 1, %s3375_s20  ;;  %s28_s24 = sadd.s32 1, %s3379_s21  ;;  %s3383_s22 = sphi %s3424_s22, %s16_s22   ;;  %s3379_s21 = sphi %s3422_s21, %s4136_s21   ;;  %s3375_s20 = sphi %s3420_s20, %s4135_s20   ;;  %s3371_s19 = sphi %s3418_s19, %s4134_s19   ;;  %s3367_s18 = sphi %s3416_s18, %s4133_s18  }
   0x4   : > { %p26_p0 = scmp.ge.s32.totalorder %s25_s23, 2  ;;  %p2538_p1 = scmp.ge.s32.totalorder %s3383_s22, 1 }
   0x5   : > { %p172_p2 = scmp.lt.s32.totalorder %s3383_s22, 5 }
   0x6   : > { %s4138_s23 = smov (%p26_p0, %s25_s23), 0  ;;  %s4140_s24 = smov (!%p26_p0, %s28_s24), %s3379_s21 }
   0x7   : > { %p173_p3 = pnand %p2538_p1, %p172_p2  ;;  %p30_p4 = scmp.ge.s32.totalorder %s4140_s24, 2 }
   0x8   : > { %s205_s25 = smul.u32 (!%p173_p3), 20, %s3367_s18  ;;  %p206_p5 = scmp.lt.s32.totalorder (!%p173_p3), %s3371_s19, 1 }
   0x9   : > { %s4142_s24 = smov (%p30_p4, %s4140_s24), 0  ;;  %176 = sbr.rel (%p173_p3) target bundleno = 589 (0x24d), region = 32 }
   0xa   : > { %4131 = sst [smem:[#allocation6_spill]] %s4142_s24  ;;  %p217_p6 = scmp.lt.s32.totalorder (!%p173_p3), %s3367_s18, 1 }
   0xb   : > { %s225_s26 = smul.u32 (!%p173_p3), 160, %s3367_s18  ;;  %p208_p7 = scmp.lt.s32.totalorder (!%p173_p3), %s205_s25, 39 }
   0xc   : > { %s228_s7 = smul.u32 (!%p173_p3), 50, %s3371_s19 }
   0xd   : > { %s226_s28 = sshra.s32 (!%p173_p3), %s225_s26, 3 }
   0xe   : > { %v3385_v0 = vmov 0   ;;  %s207_s27 = scalar_select %p206_p5, %s3371_s19, 1 }
   0xf   : > { %224 = vst [vmem:[#allocation2 + $0x78] sm:$0xf] %v3385_v0  ;;  %s4144_s25 = smov (!%p208_p7, %s205_s25), 39  ;;  %s4146_s18 = smov (!%p217_p6, %s3367_s18), 1 }
  0x10   : > { %s3297_s29 = smul.u32 40, %s207_s27  ;;  %s2540_s30 = sshll.u32 %s207_s27, 1 }
  0x11   : > { %s220_s9 = sadd.s32 %s2540_s30, %s4146_s18  ;;  %s229_s17 = sadd.s32 %s228_s7, %s226_s28 }
  0x12   : > { %s211_s6 = sadd.s32 %s3297_s29, %s4144_s25  ;;  %s2541_s13 = sshll.u32 %s220_s9, 1 }
  0x13   : > { %s2539_s8 = sshll.u32 %s211_s6, 3  ;;  %s3459_s16 = scalar_lea.vmem %s4130_s5, %s2541_s13 }
  0x14   : > { %s3454_s12 = scalar_lea.vmem %s4129_s4, %s2539_s8  ;;  %s2542_s26 = sshll.u32 %s229_s17, 2 }
  0x15   : > { %s231_s25 = scalar_lea.vmem %s4125_s0, %s2542_s26 }
  0x16   : > { %v242_v1 = vld [vmem:[%s231_s25] sm:$0xff]  ;;  %v244_v2 = vld [vmem:[%s231_s25 + $0x8] sm:$0xff]  ;;  %v246_v3 = vld [vmem:[%s231_s25 + $0x10] sm:$0xff] }
  0x17   : > { %243 = vst [vmem:[#allocation2] sm:$0xff] %v242_v1  ;;  %v248_v4 = vld [vmem:[%s231_s25 + $0x18] sm:$0xff]  ;;  %v250_v5 = vld [vmem:[%s231_s25 + $0x20] sm:$0xff]  ;;  %v252_v6 = vld [vmem:[%s231_s25 + $0x28] sm:$0xff] }
  0x18   : > { %245 = vst [vmem:[#allocation2 + $0x8] sm:$0xff] %v244_v2  ;;  %v254_v7 = vld [vmem:[%s231_s25 + $0x30] sm:$0xff]  ;;  %v256_v8 = vld [vmem:[%s231_s25 + $0x38] sm:$0xff]  ;;  %v258_v9 = vld [vmem:[%s231_s25 + $0x40] sm:$0xff] }
  0x19   : > { %247 = vst [vmem:[#allocation2 + $0x10] sm:$0xff] %v246_v3  ;;  %v260_v10 = vld [vmem:[%s231_s25 + $0x48] sm:$0xff]  ;;  %v262_v11 = vld [vmem:[%s231_s25 + $0x50] sm:$0xff]  ;;  %v264_v12 = vld [vmem:[%s231_s25 + $0x58] sm:$0xff] }
  0x1a   : > { %249 = vst [vmem:[#allocation2 + $0x18] sm:$0xff] %v248_v4  ;;  %v266_v13 = vld [vmem:[%s231_s25 + $0x60] sm:$0xff]  ;;  %v268_v14 = vld [vmem:[%s231_s25 + $0x68] sm:$0xff]  ;;  %v270_v15 = vld [vmem:[%s231_s25 + $0x70] sm:$0xff] }
  0x1b   : > { %251 = vst [vmem:[#allocation2 + $0x20] sm:$0xff] %v250_v5 }
  0x1c   : > { %253 = vst [vmem:[#allocation2 + $0x28] sm:$0xff] %v252_v6 }
  0x1d   : > { %255 = vst [vmem:[#allocation2 + $0x30] sm:$0xff] %v254_v7 }
  0x1e   : > { %257 = vst [vmem:[#allocation2 + $0x38] sm:$0xff] %v256_v8 }
  0x1f   : > { %259 = vst [vmem:[#allocation2 + $0x40] sm:$0xff] %v258_v9 }
  0x20   : > { %261 = vst [vmem:[#allocation2 + $0x48] sm:$0xff] %v260_v10 }
  0x21   : > { %263 = vst [vmem:[#allocation2 + $0x50] sm:$0xff] %v262_v11 }
  0x22   : > { %265 = vst [vmem:[#allocation2 + $0x58] sm:$0xff] %v264_v12 }
  0x23   : > { %267 = vst [vmem:[#allocation2 + $0x60] sm:$0xff] %v266_v13 }
  0x24   : > { %269 = vst [vmem:[#allocation2 + $0x68] sm:$0xff] %v268_v14 }
  0x25   : > { %271 = vst [vmem:[#allocation2 + $0x70] sm:$0xff] %v270_v15 }
  0x26   : > { %277 = vsyncadd [#allocation3], 1920 }
  0x27   : > { %3363 = dma.done.wait [#allocation3], 1920 }
  0x28   : > { %3364 = vsyncadd [#allocation3], 4294965376  ;;  %3339 = vset.pattern.permute.xlu0 %v3385_v0  ;;  %3340 = vset.pattern.permute.xlu1 %v3385_v0  ;;  %v3174_v16 = vld [vmem:[%s4126_s1 + $0x78] sm:$0xff]  ;;  %v3173_v17 = vld [vmem:[%s4126_s1 + $0x70] sm:$0xff]  ;;  %vm390_vm0 = vcmask 1046528   ;;  %vm674_vm1 = vcmask 1045504  }
  0x29   : > { %3341 = vset.pattern.permute.xlu2 %v3385_v0  ;;  %470 = vmatpush.bf16.msra.mxu0 %v3174_v16  ;;  %v3172_v18 = vld [vmem:[%s4126_s1 + $0x68] sm:$0xff]  ;;  %v3171_v19 = vld [vmem:[%s4126_s1 + $0x60] sm:$0xff]  ;;  %v3170_v20 = vld [vmem:[%s4126_s1 + $0x58] sm:$0xff]  ;;  %vm2379_vm2 = vcmask 1040384  }
  0x2a   : > { %3273 = vmatpush.bf16.msra.mxu1 %v3174_v16  ;;  %3274 = vmatpush.bf16.msra.mxu2 %v3174_v16  ;;  %v3479_v21 = vld [vmem:[#allocation2] sm:$0xff]   ;;  %v3169_v23 = vld [vmem:[%s4126_s1 + $0x50] sm:$0xff]  ;;  %v3168_v26 = vld [vmem:[%s4126_s1 + $0x48] sm:$0xff] }
  0x2b   : > { %3275 = vmatpush.bf16.msra.mxu3 %v3174_v16  ;;  %v318_v22 = vld [vmem:[#allocation2] sm:$0xe]  ;;  %v3272_v24 = vunpack.c.h.b16 %v3479_v21  ;;  %v3488_v27 = vld [vmem:[#allocation2 + $0x8] sm:$0xff]  ;;  %v3492_v29 = vld [vmem:[#allocation2 + $0x18] sm:$0xff] }
  0x2c   : > { %v358_v25 = vunpack.c.l.b16 %v318_v22  ;;  %v3494_v30 = vld [vmem:[#allocation2 + $0x20] sm:$0xff]  ;;  %v3496_v31 = vld [vmem:[#allocation2 + $0x30] sm:$0xff]  ;;  %v3498_v32 = vld [vmem:[#allocation2 + $0x38] sm:$0xff]  ;;  %v392_v37 = vrot.slane %v3488_v27, 1  ;;  %v396_v38 = vrot.slane %v3492_v29, 1 }
  0x2d   : > { %471 = vmatpush.bf16.msra.mxu0 %v3173_v17  ;;  %v3500_v33 = vld [vmem:[#allocation2 + $0x40] sm:$0xff]  ;;  %v3502_v34 = vld [vmem:[#allocation2 + $0x48] sm:$0xff]  ;;  %v398_v39 = vrot.slane %v3494_v30, 1  ;;  %v3166_v40 = vld [vmem:[%s4126_s1 + $0x38] sm:$0xff]  ;;  %v402_v41 = vrot.slane %v3496_v31, 1  ;;  %v404_v42 = vrot.slane %v3498_v32, 1 }
  0x2e   : > { %3276 = vmatpush.bf16.msra.mxu1 %v3173_v17  ;;  %3277 = vmatpush.bf16.msra.mxu2 %v3173_v17  ;;  %v379_v28 = vpack.c.b16 %v3272_v24, %v358_v25  ;;  %v3167_v35 = vld [vmem:[%s4126_s1 + $0x40] sm:$0xff]  ;;  %v3182_v43 = vld [vmem:[%s4126_s1 + $0xb8] sm:$0xff]  ;;  %v406_v44 = vrot.slane %v3500_v33, 1  ;;  %v408_v45 = vrot.slane %v3502_v34, 1  ;;  %v3165_v50 = vld [vmem:[%s4126_s1 + $0x30] sm:$0xff] }
  0x2f   : > { %3278 = vmatpush.bf16.msra.mxu3 %v3173_v17  ;;  %v399_v47 = vsel %vm390_vm0, %v396_v38, %v398_v39  ;;  %v3217_v48 = vld [vmem:[%s4126_s1 + $0x138] sm:$0xff]  ;;  %v405_v49 = vsel %vm390_vm0, %v402_v41, %v404_v42  ;;  %v3181_v53 = vld [vmem:[%s4126_s1 + $0xb0] sm:$0xff]  ;;  %v3164_v56 = vld [vmem:[%s4126_s1 + $0x28] sm:$0xff] }
  0x30   : > { %v391_v36 = vrot.slane %v379_v28, 1  ;;  %v409_v51 = vsel %vm390_vm0, %v406_v44, %v408_v45  ;;  %v3200_v52 = vld [vmem:[%s4126_s1 + $0xf8] sm:$0xff]  ;;  %v319_v54 = vld [vmem:[#allocation2 + $0x50] sm:$0x1]  ;;  %v3180_v58 = vld [vmem:[%s4126_s1 + $0xa8] sm:$0xff]  ;;  %v407_v13 = vsel %vm390_vm0, %v404_v42, %v406_v44 }
  0x31   : > { %472 = vmatpush.bf16.msra.mxu0 %v3172_v18  ;;  %v3216_v55 = vld [vmem:[%s4126_s1 + $0x130] sm:$0xff]  ;;  %v378_v59 = vunpack.c.l.b16 %v319_v54  ;;  %v3556_v61 = vld [vmem:[#allocation2 + $0x28] sm:$0xff]  ;;  %v3163_v63 = vld [vmem:[%s4126_s1 + $0x20] sm:$0xff] }
  0x32   : > { %3279 = vmatpush.bf16.msra.mxu1 %v3172_v18  ;;  %3280 = vmatpush.bf16.msra.mxu2 %v3172_v18  ;;  %v393_v46 = vsel %vm390_vm0, %v391_v36, %v392_v37  ;;  %v3199_v57 = vld [vmem:[%s4126_s1 + $0xf0] sm:$0xff]  ;;  %v3215_v62 = vld [vmem:[%s4126_s1 + $0x128] sm:$0xff]  ;;  %v3179_v1 = vld [vmem:[%s4126_s1 + $0xa0] sm:$0xff]  ;;  %v400_v4 = vrot.slane %v3556_v61, 1 }
  0x33   : > { %3281 = vmatpush.bf16.msra.mxu3 %v3172_v18  ;;  %v3554_v60 = vld [vmem:[#allocation2 + $0x10] sm:$0xff]  ;;  %v3198_v0 = vld [vmem:[%s4126_s1 + $0xe8] sm:$0xff]  ;;  %v389_v2 = vpack.c.b16 %v378_v59, %v378_v59  ;;  %v3214_v5 = vld [vmem:[%s4126_s1 + $0x120] sm:$0xff] }
  0x34   : > { %v394_v3 = vrot.slane %v3554_v60, 1  ;;  %v3162_v6 = vld [vmem:[%s4126_s1 + $0x18] sm:$0xff]  ;;  %v3197_v7 = vld [vmem:[%s4126_s1 + $0xe0] sm:$0xff]  ;;  %v401_v11 = vsel %vm390_vm0, %v398_v39, %v400_v4  ;;  %v3161_v14 = vld [vmem:[%s4126_s1 + $0x10] sm:$0xff] }
  0x35   : > { %473 = vmatpush.bf16.msra.mxu0 %v3171_v19  ;;  %v3178_v8 = vld [vmem:[%s4126_s1 + $0x98] sm:$0xff]  ;;  %v410_v9 = vrot.slane %v389_v2, 1  ;;  %v3177_v17 = vld [vmem:[%s4126_s1 + $0x90] sm:$0xff]  ;;  %v649_v18 = vld [vmem:[#allocation2] sm:$0xc] }
  0x36   : > { %3282 = vmatpush.bf16.msra.mxu1 %v3171_v19  ;;  %3283 = vmatpush.bf16.msra.mxu2 %v3171_v19  ;;  %v395_v10 = vsel %vm390_vm0, %v392_v37, %v394_v3  ;;  %v3213_v12 = vld [vmem:[%s4126_s1 + $0x118] sm:$0xff]  ;;  %v670_v22 = vunpack.c.l.b16 %v649_v18  ;;  %v3176_v25 = vld [vmem:[%s4126_s1 + $0x88] sm:$0xff]  ;;  %v3175_v37 = vld [vmem:[%s4126_s1 + $0x80] sm:$0xff] }
  0x37   : > { %3284 = vmatpush.bf16.msra.mxu3 %v3171_v19  ;;  %v411_v15 = vsel %vm390_vm0, %v408_v45, %v410_v9  ;;  %v3196_v16 = vld [vmem:[%s4126_s1 + $0xd8] sm:$0xff]  ;;  %v3212_v19 = vld [vmem:[%s4126_s1 + $0x110] sm:$0xff]  ;;  %v3194_v36 = vld [vmem:[%s4126_s1 + $0xc8] sm:$0xff] }
  0x38   : > { %v672_v28 = vpack.c.b16 %v3272_v24, %v670_v22  ;;  %v3243_v39 = vld [vmem:[%s4126_s1 + $0x1b8] sm:$0xff]  ;;  %v3193_v45 = vld [vmem:[%s4126_s1 + $0xc0] sm:$0xff]  ;;  %v3259_v54 = vld [vmem:[%s4126_s1 + $0x1f0] sm:$0xff] }
  0x39   : > { %474 = vmatpush.bf16.msra.mxu0 %v3170_v20  ;;  %v3225_v24 = vld [vmem:[%s4126_s1 + $0x178] sm:$0xff] }
  0x3a   : > { %3285 = vmatpush.bf16.msra.mxu1 %v3170_v20  ;;  %3286 = vmatpush.bf16.msra.mxu2 %v3170_v20  ;;  %v675_v42 = vrot.slane %v672_v28, 2  ;;  %v3268_v44 = vld [vmem:[%s4126_s1 + $0x238] sm:$0xff] }
  0x3b   : > { %3287 = vmatpush.bf16.msra.mxu3 %v3170_v20  ;;  %v3160_v20 = vld [vmem:[%s4126_s1 + $0x8] sm:$0xff]  ;;  %v3184_v2 = vld [vmem:[#allocation2 + $0x1c] sm:$0xff] }
  0x3c   : > { %v3239_v22 = vld [vmem:[%s4126_s1 + $0x198] sm:$0xff] }
  0x3d   : > { %475 = vmatpush.bf16.msra.mxu0 %v3169_v23  ;;  %v3256_v28 = vld [vmem:[%s4126_s1 + $0x1d8] sm:$0xff] }
  0x3e   : > { %3288 = vmatpush.bf16.msra.mxu1 %v3169_v23  ;;  %3289 = vmatpush.bf16.msra.mxu2 %v3169_v23 }
  0x3f   : > { %3290 = vmatpush.bf16.msra.mxu3 %v3169_v23  ;;  %v3195_v23 = vld [vmem:[%s4126_s1 + $0xd0] sm:$0xff] }
  0x41   : > { %476 = vmatpush.bf16.msra.mxu0 %v3168_v26 }
  0x42   : > { %3291 = vmatpush.bf16.msra.mxu1 %v3168_v26  ;;  %3292 = vmatpush.bf16.msra.mxu2 %v3168_v26 }
  0x43   : > { %3293 = vmatpush.bf16.msra.mxu3 %v3168_v26  ;;  %v3211_v26 = vld [vmem:[%s4126_s1 + $0x108] sm:$0xff] }
  0x45   : > { %477 = vmatpush.bf16.msra.mxu0 %v3167_v35 }
  0x46   : > { %3294 = vmatpush.bf16.msra.mxu1 %v3167_v35  ;;  %3295 = vmatpush.bf16.msra.mxu2 %v3167_v35 }
  0x47   : > { %3296 = vmatpush.bf16.msra.mxu3 %v3167_v35  ;;  %v3159_v35 = vld [vmem:[%s4126_s1] sm:$0xff] }
  0x48   : > { %478 = vmatmul.bf16.vlgmr.msra.gmra.mxu0 %v393_v46  ;;  %v397_v46 = vsel %vm390_vm0, %v394_v3, %v396_v38  ;;  %v3242_v38 = vld [vmem:[%s4126_s1 + $0x1b0] sm:$0xff]  ;;  %v3241_v3 = vld [vmem:[%s4126_s1 + $0x1a8] sm:$0xff] }
  0x49   : > { %493 = vmatmul.bf16.vlgmr.msra.gmra.mxu1 %v399_v47  ;;  %508 = vmatmul.bf16.vlgmr.msra.gmra.mxu2 %v405_v49  ;;  %v403_v47 = vsel %vm390_vm0, %v400_v4, %v402_v41  ;;  %v3258_v4 = vld [vmem:[%s4126_s1 + $0x1e8] sm:$0xff] }
  0x4a   : > { %590 = vmatpush.bf16.msrb.mxu1 %v3166_v40  ;;  %754 = vmatpush.bf16.msrb.mxu2 %v3182_v43  ;;  %v3210_v40 = vld [vmem:[%s4126_s1 + $0x100] sm:$0xff]  ;;  %v676_v43 = vrot.slane %v3488_v27, 2 }
  0x4b   : > { %1227 = vmatpush.bf16.msrb.mxu0 %v3217_v48  ;;  %518 = vmatmul.bf16.vlgmr.msra.gmra.mxu3 %v409_v51  ;;  %v3260_v48 = vld [vmem:[%s4126_s1 + $0x1f8] sm:$0xff]  ;;  %v1057_v51 = vld [vmem:[#allocation2 + $0x14] sm:$0xe] }
  0x4c   : > { %978 = vmatpush.bf16.msrb.mxu3 %v3200_v52  ;;  %v677_v49 = vsel %vm674_vm1, %v675_v42, %v676_v43  ;;  %v3654_v52 = vld [vmem:[#allocation2 + $0x18] sm:$0xf]  ;;  %v1116_v41 = vunpack.c.l.b16 %v1057_v51  ;;  %v686_v42 = vrot.slane %v3496_v31, 2 }
  0x4e   : > { %591 = vmatpush.bf16.msrb.mxu1 %v3165_v50  ;;  %755 = vmatpush.bf16.msrb.mxu2 %v3181_v53  ;;  %v3183_v50 = vld [vmem:[#allocation2 + $0x14] sm:$0xff]  ;;  %v1117_v53 = vunpack.c.l.b16 %v3654_v52 }
  0x4f   : > { %1228 = vmatpush.bf16.msrb.mxu0 %v3216_v55  ;;  %v3224_v55 = vld [vmem:[%s4126_s1 + $0x170] sm:$0xff] }
  0x50   : > { %979 = vmatpush.bf16.msrb.mxu3 %v3199_v57  ;;  %v3669_v57 = vld [vmem:[#allocation2 + $0x1c] sm:$0xff] }
  0x52   : > { %592 = vmatpush.bf16.msrb.mxu1 %v3164_v56  ;;  %756 = vmatpush.bf16.msrb.mxu2 %v3180_v58  ;;  %v3267_v56 = vld [vmem:[%s4126_s1 + $0x230] sm:$0xff]  ;;  %v1137_v58 = vpack.c.b16 %v1117_v53, %v1116_v41 }
  0x53   : > { %1229 = vmatpush.bf16.msrb.mxu0 %v3215_v62  ;;  %v1149_v62 = vrot.slane %v3669_v57, 1 }
  0x54   : > { %980 = vmatpush.bf16.msrb.mxu3 %v3198_v0  ;;  %v1148_v59 = vrot.slane %v1137_v58, 1 }
  0x56   : > { %593 = vmatpush.bf16.msrb.mxu1 %v3163_v63  ;;  %757 = vmatpush.bf16.msrb.mxu2 %v3179_v1  ;;  %v678_v63 = vrot.slane %v3554_v60, 2  ;;  %v1150_v0 = vsel %vm390_vm0, %v1148_v59, %v1149_v62 }
  0x57   : > { %1230 = vmatpush.bf16.msrb.mxu0 %v3214_v5  ;;  %v3223_v5 = vld [vmem:[%s4126_s1 + $0x168] sm:$0xff] }
  0x58   : > { %981 = vmatpush.bf16.msrb.mxu3 %v3197_v7  ;;  %483 = vmatmul.bf16.gmra.mxu0 %v395_v10  ;;  %v679_v1 = vsel %vm674_vm1, %v676_v43, %v678_v63 }
  0x59   : > { %498 = vmatmul.bf16.gmra.mxu1 %v401_v11  ;;  %513 = vmatmul.bf16.gmra.mxu2 %v407_v13  ;;  %v3185_v11 = vld [vmem:[#allocation2 + $0x24] sm:$0xff] }
  0x5a   : > { %594 = vmatpush.bf16.msrb.mxu1 %v3162_v6  ;;  %758 = vmatpush.bf16.msrb.mxu2 %v3178_v8  ;;  %v3266_v6 = vld [vmem:[%s4126_s1 + $0x228] sm:$0xff]  ;;  %v680_v8 = vrot.slane %v3492_v29, 2  ;;  %v3257_v13 = vld [vmem:[%s4126_s1 + $0x1e0] sm:$0xff] }
  0x5b   : > { %1231 = vmatpush.bf16.msrb.mxu0 %v3213_v12  ;;  %523 = vmatmul.bf16.gmra.mxu3 %v411_v15  ;;  %v3240_v12 = vld [vmem:[%s4126_s1 + $0x1a0] sm:$0xff]  ;;  %v3706_v15 = vld [vmem:[#allocation2 + $0x2c] sm:$0xff] }
  0x5c   : > { %982 = vmatpush.bf16.msrb.mxu3 %v3196_v16  ;;  %v681_v10 = vsel %vm674_vm1, %v678_v63, %v680_v8  ;;  %v682_v16 = vrot.slane %v3494_v30, 2  ;;  %v3774_v63 = vld [vmem:[#allocation2 + $0x4c] sm:$0xff] }
  0x5e   : > { %595 = vmatpush.bf16.msrb.mxu1 %v3161_v14  ;;  %759 = vmatpush.bf16.msrb.mxu2 %v3177_v17  ;;  %v3222_v14 = vld [vmem:[%s4126_s1 + $0x160] sm:$0xff]  ;;  %v683_v18 = vsel %vm674_vm1, %v680_v8, %v682_v16 }
  0x5f   : > { %1232 = vmatpush.bf16.msrb.mxu0 %v3212_v19  ;;  %v3186_v19 = vld [vmem:[#allocation2 + $0x2c] sm:$0xff] }
  0x60   : > { %983 = vmatpush.bf16.msrb.mxu3 %v3195_v23  ;;  %v3719_v23 = vld [vmem:[#allocation2 + $0x34] sm:$0xff] }
  0x62   : > { %596 = vmatpush.bf16.msrb.mxu1 %v3160_v20  ;;  %760 = vmatpush.bf16.msrb.mxu2 %v3176_v25  ;;  %v3265_v20 = vld [vmem:[%s4126_s1 + $0x220] sm:$0xff]  ;;  %v1155_v25 = vrot.slane %v3719_v23, 1 }
  0x63   : > { %1233 = vmatpush.bf16.msrb.mxu0 %v3211_v26  ;;  %v684_v26 = vrot.slane %v3556_v61, 2 }
  0x64   : > { %984 = vmatpush.bf16.msrb.mxu3 %v3194_v36  ;;  %v3187_v36 = vld [vmem:[#allocation2 + $0x34] sm:$0xff] }
  0x65   : > { %v687_v43 = vsel %vm674_vm1, %v684_v26, %v686_v42 }
  0x66   : > { %597 = vmatpush.bf16.msrb.mxu1 %v3159_v35  ;;  %761 = vmatpush.bf16.msrb.mxu2 %v3175_v37  ;;  %v685_v35 = vsel %vm674_vm1, %v682_v16, %v684_v26  ;;  %v3221_v37 = vld [vmem:[%s4126_s1 + $0x158] sm:$0xff] }
  0x67   : > { %1234 = vmatpush.bf16.msrb.mxu0 %v3210_v40 }
  0x68   : > { %985 = vmatpush.bf16.msrb.mxu3 %v3193_v45  ;;  %488 = vmatmul.bf16.gmra.mxu0 %v397_v46  ;;  %v3238_v45 = vld [vmem:[%s4126_s1 + $0x190] sm:$0xff] }
  0x69   : > { %503 = vmatmul.bf16.gmra.mxu1 %v403_v47  ;;  %762 = vmatmul.bf16.vlgmr.msrb.gmra.mxu2 %v677_v49  ;;  %v3255_v46 = vld [vmem:[%s4126_s1 + $0x1d0] sm:$0xff] }
  0x6a   : > { %1634 = vmatpush.bf16.msra.mxu2 %v3243_v39  ;;  %1410 = vmatpush.bf16.msra.mxu1 %v3225_v24  ;;  %v3732_v39 = vld [vmem:[#allocation2 + $0x3c] sm:$0xff]  ;;  %v3220_v47 = vld [vmem:[%s4126_s1 + $0x150] sm:$0xff] }
  0x6b   : > { %2066 = vmatpush.bf16.msra.mxu0 %v3268_v44  ;;  %986 = vmatmul.bf16.vlgmr.msrb.gmra.mxu3 %v3183_v50  ;;  %v3264_v24 = vld [vmem:[%s4126_s1 + $0x218] sm:$0xff]  ;;  %v1157_v40 = vrot.slane %v3732_v39, 1  ;;  %v688_v50 = vrot.slane %v3498_v32, 2 }
  0x6c   : > { %1883 = vmatpush.bf16.msra.mxu3 %v3260_v48  ;;  %v3188_v44 = vld [vmem:[#allocation2 + $0x3c] sm:$0xff]  ;;  %v3751_v48 = vld [vmem:[#allocation2 + $0x44] sm:$0xff] }
  0x6d   : > { %v1159_v49 = vrot.slane %v3751_v48, 1 }
  0x6e   : > { %1635 = vmatpush.bf16.msra.mxu2 %v3242_v38  ;;  %1411 = vmatpush.bf16.msra.mxu1 %v3224_v55  ;;  %v3189_v55 = vld [vmem:[#allocation2 + $0x44] sm:$0xff] }
  0x6f   : > { %2067 = vmatpush.bf16.msra.mxu0 %v3267_v56  ;;  %v1160_v41 = vsel %vm390_vm0, %v1157_v40, %v1159_v49  ;;  %v3237_v56 = vld [vmem:[%s4126_s1 + $0x188] sm:$0xff] }
  0x70   : > { %1884 = vmatpush.bf16.msra.mxu3 %v3259_v54  ;;  %v689_v54 = vsel %vm674_vm1, %v686_v42, %v688_v50  ;;  %v3261_v42 = vld [vmem:[%s4126_s1 + $0x200] sm:$0xff] }
  0x72   : > { %1636 = vmatpush.bf16.msra.mxu2 %v3241_v3  ;;  %1412 = vmatpush.bf16.msra.mxu1 %v3223_v5  ;;  %v690_v3 = vrot.slane %v3500_v33, 2 }
  0x73   : > { %2068 = vmatpush.bf16.msra.mxu0 %v3266_v6 }
  0x74   : > { %1885 = vmatpush.bf16.msra.mxu3 %v3258_v4 }
  0x76   : > { %1637 = vmatpush.bf16.msra.mxu2 %v3240_v12  ;;  %1413 = vmatpush.bf16.msra.mxu1 %v3222_v14  ;;  %v3262_v12 = vld [vmem:[%s4126_s1 + $0x208] sm:$0xff] }
  0x77   : > { %2069 = vmatpush.bf16.msra.mxu0 %v3265_v20  ;;  %v3253_v20 = vld [vmem:[%s4126_s1 + $0x1c0] sm:$0xff] }
  0x78   : > { %1235 = vmatmul.bf16.vlgmr.msrb.gmra.mxu0 %v1150_v0  ;;  %1886 = vmatpush.bf16.msra.mxu3 %v3257_v13  ;;  %v3219_v0 = vld [vmem:[%s4126_s1 + $0x148] sm:$0xff] }
  0x79   : > { %598 = vmatmul.bf16.vlgmr.msrb.gmra.mxu1 %v3479_v21  ;;  %767 = vmatmul.bf16.gmra.mxu2 %v679_v1  ;;  %v3690_v21 = vld [vmem:[#allocation2 + $0x24] sm:$0xff] }
  0x7a   : > { %v1151_v7 = vrot.slane %v3690_v21, 1  ;;  %1638 = vmatpush.bf16.msra.mxu2 %v3239_v22  ;;  %1414 = vmatpush.bf16.msra.mxu1 %v3221_v37  ;;  %v3218_v22 = vld [vmem:[%s4126_s1 + $0x140] sm:$0xff]  ;;  %v650_v37 = vld [vmem:[#allocation2 + $0x50] sm:$0x3] }
  0x7b   : > { %991 = vmatmul.bf16.gmra.mxu3 %v3184_v2  ;;  %2070 = vmatpush.bf16.msra.mxu0 %v3264_v24  ;;  %v1161_v2 = vrot.slane %v3774_v63, 1  ;;  %v671_v24 = vunpack.c.l.b16 %v650_v37 }
  0x7c   : > { %v1152_v9 = vsel %vm390_vm0, %v1149_v62, %v1151_v7  ;;  %1887 = vmatpush.bf16.msra.mxu3 %v3256_v28 }
  0x7e   : > { %1639 = vmatpush.bf16.msra.mxu2 %v3238_v45  ;;  %1415 = vmatpush.bf16.msra.mxu1 %v3220_v47 }
  0x80   : > { %1888 = vmatpush.bf16.msra.mxu3 %v3255_v46  ;;  %v673_v46 = vpack.c.b16 %v671_v24, %v671_v24 }
  0x82   : > { %1640 = vmatpush.bf16.msra.mxu2 %v3237_v56  ;;  %1416 = vmatpush.bf16.msra.mxu1 %v3219_v0  ;;  %v694_v47 = vrot.slane %v673_v46, 2  ;;  %v1077_v0 = vld [vmem:[#allocation2 + $0x64] sm:$0x1] }
  0x86   : > { %1417 = vmatpush.bf16.msra.mxu1 %v3218_v22 }
  0x88   : > { %1240 = vmatmul.bf16.gmra.mxu0 %v1152_v9  ;;  %v691_v9 = vsel %vm674_vm1, %v688_v50, %v690_v3 }
  0x89   : > { %603 = vmatmul.bf16.gmra.mxu1 %v3488_v27  ;;  %772 = vmatmul.bf16.gmra.mxu2 %v681_v10  ;;  %v1153_v27 = vrot.slane %v3706_v15, 1  ;;  %v3190_v10 = vld [vmem:[#allocation2 + $0x4c] sm:$0xff] }
  0x8b   : > { %996 = vmatmul.bf16.gmra.mxu3 %v3185_v11  ;;  %v1154_v17 = vsel %vm390_vm0, %v1151_v7, %v1153_v27  ;;  %v1162_v7 = vsel %vm390_vm0, %v1159_v49, %v1161_v2 }
  0x98   : > { %1245 = vmatmul.bf16.gmra.mxu0 %v1154_v17  ;;  %v692_v17 = vrot.slane %v3502_v34, 2 }
  0x99   : > { %608 = vmatmul.bf16.gmra.mxu1 %v3554_v60  ;;  %777 = vmatmul.bf16.gmra.mxu2 %v683_v18  ;;  %v1156_v60 = vsel %vm390_vm0, %v1153_v27, %v1155_v25  ;;  %v3806_v27 = vld [vmem:[#allocation2 + $0x54] sm:$0xff] }
  0x9a   : > { %v695_v56 = vsel %vm674_vm1, %v692_v17, %v694_v47 }
  0x9b   : > { %1001 = vmatmul.bf16.gmra.mxu3 %v3186_v19  ;;  %v3236_v19 = vld [vmem:[%s4126_s1 + $0x180] sm:$0xff] }
  0x9c   : > { %1641 = vmatpush.bf16.msra.mxu2 %v3236_v19 }
  0xa8   : > { %1250 = vmatmul.bf16.gmra.mxu0 %v1156_v60 }
  0xa9   : > { %613 = vmatmul.bf16.gmra.mxu1 %v3492_v29  ;;  %782 = vmatmul.bf16.gmra.mxu2 %v685_v35  ;;  %v1158_v29 = vsel %vm390_vm0, %v1155_v25, %v1157_v40  ;;  %v693_v35 = vsel %vm674_vm1, %v690_v3, %v692_v17  ;;  %v1713_v3 = vld [vmem:[#allocation2 + $0x28] sm:$0xe] }
  0xab   : > { %1006 = vmatmul.bf16.gmra.mxu3 %v3187_v36  ;;  %v3191_v36 = vld [vmem:[#allocation2 + $0x54] sm:$0xff] }
  0xb8   : > { %1255 = vmatmul.bf16.gmra.mxu0 %v1158_v29 }
  0xb9   : > { %618 = vmatmul.bf16.gmra.mxu1 %v3494_v30  ;;  %787 = vmatmul.bf16.gmra.mxu2 %v687_v43  ;;  %v3263_v30 = vld [vmem:[%s4126_s1 + $0x210] sm:$0xff] }
  0xba   : > { %2071 = vmatpush.bf16.msra.mxu0 %v3263_v30 }
  0xbb   : > { %1011 = vmatmul.bf16.gmra.mxu3 %v3188_v44  ;;  %v3839_v44 = vld [vmem:[#allocation2 + $0x5c] sm:$0xff] }
  0xbe   : > { %2072 = vmatpush.bf16.msra.mxu0 %v3262_v12  ;;  %v1772_v12 = vunpack.c.l.b16 %v1713_v3 }
  0xc2   : > { %2073 = vmatpush.bf16.msra.mxu0 %v3261_v42 }
  0xc5   : > { %v3758_v51 = vpop.f32.mrf.mxu0 }
  0xc6   : > { %v3760_v38 = vpop.f32.mrf.mxu1 }
  0xc8   : > { %1260 = vmatmul.bf16.gmra.mxu0 %v1160_v41 }
  0xc9   : > { %623 = vmatmul.bf16.gmra.mxu1 %v3556_v61  ;;  %792 = vmatmul.bf16.gmra.mxu2 %v689_v54  ;;  %v3254_v61 = vld [vmem:[%s4126_s1 + $0x1c8] sm:$0xff] }
  0xca   : > { %1889 = vmatpush.bf16.msra.mxu3 %v3254_v61  ;;  %v3192_v61 = vld [vmem:[#allocation2 + $0x5c] sm:$0xff] }
  0xcb   : > { %1016 = vmatmul.bf16.gmra.mxu3 %v3189_v55 }
  0xcc   : > { %v3768_v58 = vpop.f32.mrf.mxu2 }
  0xcd   : > { %v3770_v59 = vpop.f32.mrf.mxu0 }
  0xce   : > { %v3772_v62 = vpop.f32.mrf.mxu1  ;;  %v3782_v1 = vpop.f32.mrf.mxu3  ;;  %1890 = vmatpush.bf16.msra.mxu3 %v3253_v20 }
  0xd4   : > { %v3786_v4 = vpop.f32.mrf.mxu2 }
  0xd5   : > { %v3788_v5 = vpop.f32.mrf.mxu0 }
  0xd6   : > { %v3790_v6 = vpop.f32.mrf.mxu1  ;;  %v3793_v8 = vpop.f32.mrf.mxu3 }
  0xd8   : > { %1265 = vmatmul.bf16.gmra.mxu0 %v1162_v7  ;;  %v1714_v7 = vld [vmem:[#allocation2 + $0x2c] sm:$0xf] }
  0xd9   : > { %628 = vmatmul.bf16.gmra.mxu1 %v3496_v31  ;;  %797 = vmatmul.bf16.gmra.mxu2 %v691_v9  ;;  %v1163_v31 = vrot.slane %v3806_v27, 1  ;;  %v1136_v9 = vunpack.c.l.b16 %v1077_v0  ;;  %v1773_v19 = vunpack.c.l.b16 %v1714_v7  ;;  %v1962_v0 = vld [vmem:[#allocation2 + $0x28] sm:$0xc] }
  0xda   : > { %v1983_v3 = vunpack.c.l.b16 %v1962_v0 }
  0xdb   : > { %1021 = vmatmul.bf16.gmra.mxu3 %v3190_v10  ;;  %v1164_v60 = vsel %vm390_vm0, %v1161_v2, %v1163_v31  ;;  %v1147_v17 = vpack.c.b16 %v1136_v9, %v1136_v9 }
  0xdc   : > { %v3797_v11 = vpop.f32.mrf.mxu2 }
  0xdd   : > { %v3802_v13 = vpop.f32.mrf.mxu0  ;;  %v1167_v24 = vrot.slane %v1147_v17, 1  ;;  %v3866_v17 = vld [vmem:[#allocation2 + $0x38] sm:$0xff] }
  0xde   : > { %v3804_v14 = vpop.f32.mrf.mxu1  ;;  %v3808_v16 = vpop.f32.mrf.mxu3 }
  0xe4   : > { %v3812_v18 = vpop.f32.mrf.mxu2 }
  0xe5   : > { %v3823_v25 = vpop.f32.mrf.mxu0 }
  0xe6   : > { %v3825_v26 = vpop.f32.mrf.mxu1  ;;  %v3828_v28 = vpop.f32.mrf.mxu3 }
  0xe8   : > { %1270 = vmatmul.bf16.gmra.mxu0 %v1164_v60 }
  0xe9   : > { %633 = vmatmul.bf16.gmra.mxu1 %v3498_v32  ;;  %802 = vmatmul.bf16.gmra.mxu2 %v693_v35  ;;  %v1165_v32 = vrot.slane %v3839_v44, 1 }
  0xeb   : > { %1026 = vmatmul.bf16.gmra.mxu3 %v3191_v36  ;;  %v1166_v41 = vsel %vm390_vm0, %v1163_v31, %v1165_v32  ;;  %v3849_v36 = vld [vmem:[#allocation2 + $0x30] sm:$0xff] }
  0xec   : > { %v763_v40 = vpop.f32.mrf.mxu2 }
  0xed   : > { %v3835_v29 = vpop.f32.mrf.mxu0 }
  0xee   : > { %v3837_v43 = vpop.f32.mrf.mxu1  ;;  %v987_v45 = vpop.f32.mrf.mxu3 }
  0xf4   : > { %v765_v30 = vpop.f32.mrf.mxu2 }
  0xf5   : > { %v1236_v50 = vpop.f32.mrf.mxu0 }
  0xf6   : > { %v599_v49 = vpop.f32.mrf.mxu1  ;;  %v989_v55 = vpop.f32.mrf.mxu3 }
  0xf7   : > { %v600_v54 = vadd.f32 %v599_v49, %v3758_v51 }
  0xf8   : > { %1275 = vmatmul.bf16.gmra.mxu0 %v1166_v41  ;;  %v1168_v41 = vsel %vm390_vm0, %v1165_v32, %v1167_v24  ;;  %v1988_v24 = vrot.slane %v3849_v36, 2 }
  0xf9   : > { %v813_v2 = vadd.f32 %v763_v40, %v600_v54  ;;  %638 = vmatmul.bf16.gmra.mxu1 %v3500_v33  ;;  %807 = vmatmul.bf16.gmra.mxu2 %v695_v56  ;;  %v1793_v33 = vpack.c.b16 %v1773_v19, %v1772_v12  ;;  %v3226_v54 = vld [vmem:[#allocation2 + $0x28] sm:$0xff] }
  0xfb   : > { %v1037_v10 = vadd.f32 %v987_v45, %v813_v2  ;;  %1031 = vmatmul.bf16.gmra.mxu3 %v3192_v61  ;;  %v1804_v42 = vrot.slane %v1793_v33, 1  ;;  %v1805_v45 = vrot.slane %v3849_v36, 1  ;;  %v1306_v61 = vld [vmem:[#allocation2 + $0x14] sm:$0xc]  ;;  %v1332_v33 = vrot.slane %v3669_v57, 2 }
  0xfc   : > { %v768_v51 = vpop.f32.mrf.mxu2  ;;  %v3227_v57 = vld [vmem:[#allocation2 + $0x30] sm:$0xff] }
  0xfd   : > { %v3846_v31 = vadd.f32 %v1236_v50, %v1037_v10  ;;  %v1238_v22 = vpop.f32.mrf.mxu0 }
  0xfe   : > { %v601_v20 = vpop.f32.mrf.mxu1  ;;  %v992_v35 = vpop.f32.mrf.mxu3 }
  0xff   : > { %v602_v60 = vadd.f32 %v601_v20, %v3770_v59  ;;  %v1985_v20 = vpack.c.b16 %v1773_v19, %v1983_v3 }
 0x101   : > { %v814_v37 = vadd.f32 %v765_v30, %v602_v60  ;;  %v1806_v30 = vsel %vm390_vm0, %v1804_v42, %v1805_v45  ;;  %v1807_v42 = vrot.slane %v3866_v17, 1 }
 0x103   : > { %v1038_v40 = vadd.f32 %v989_v55, %v814_v37  ;;  %v1327_v55 = vunpack.c.l.b16 %v1306_v61  ;;  %v1987_v37 = vrot.slane %v1985_v20, 2 }
 0x104   : > { %v770_v47 = vpop.f32.mrf.mxu2 }
 0x105   : > { %v3852_v46 = vadd.f32 %v1238_v22, %v1038_v40  ;;  %v1241_v50 = vpop.f32.mrf.mxu0 }
 0x106   : > { %v604_v49 = vpop.f32.mrf.mxu1  ;;  %v994_v56 = vpop.f32.mrf.mxu3 }
 0x107   : > { %v605_v59 = vadd.f32 %v604_v49, %v3788_v5  ;;  %v2169_v5 = vld [vmem:[%s4128_s3] sm:$0xff] }
 0x108   : > { %1280 = vmatmul.bf16.gmra.mxu0 %v1168_v41  ;;  %2191 = vperm.xlu0 %3339, %v2169_v5   ;;  %v1990_v5 = vrot.slane %v3866_v17, 2 }
 0x109   : > { %v815_v2 = vadd.f32 %v768_v51, %v605_v59  ;;  %643 = vmatmul.bf16.gmra.mxu1 %v3502_v34  ;;  %1642 = vmatmul.bf16.vlgmr.msra.gmra.mxu2 %v3226_v54  ;;  %v1329_v51 = vpack.c.b16 %v1117_v53, %v1327_v55  ;;  %v2170_v53 = vld [vmem:[%s4128_s3 + $0x8] sm:$0xff]  ;;  %v1808_v54 = vsel %vm390_vm0, %v1805_v45, %v1807_v42  ;;  %v3886_v45 = vld [vmem:[#allocation2 + $0x40] sm:$0xff] }
 0x10b   : > { %v1039_v7 = vadd.f32 %v992_v35, %v815_v2  ;;  %1891 = vmatmul.bf16.vlgmr.msra.gmra.mxu3 %v1806_v30  ;;  %v1331_v35 = vrot.slane %v1329_v51, 2  ;;  %v2171_v30 = vld [vmem:[%s4128_s3 + $0x10] sm:$0xff] }
 0x10c   : > { %v773_v32 = vpop.f32.mrf.mxu2  ;;  %2201 = vperm.xlu1 %3340, %v2171_v30  }
 0x10d   : > { %v3858_v9 = vadd.f32 %v1241_v50, %v1039_v7  ;;  %v1243_v12 = vpop.f32.mrf.mxu0  ;;  %v1989_v50 = vsel %vm674_vm1, %v1987_v37, %v1988_v24  ;;  %v3228_v37 = vld [vmem:[#allocation2 + $0x38] sm:$0xff] }
 0x10e   : > { %v606_v10 = vpop.f32.mrf.mxu1  ;;  %v997_v22 = vpop.f32.mrf.mxu3 }
 0x10f   : > { %v607_v34 = vadd.f32 %v606_v10, %v3802_v13 }
 0x110   : > { %2196 = vperm.xlu0 %3339, %v2170_v53  }
 0x111   : > { %v816_v60 = vadd.f32 %v770_v47, %v607_v34  ;;  %v1333_v47 = vsel %vm674_vm1, %v1331_v35, %v1332_v33  ;;  %v2172_v34 = vld [vmem:[%s4128_s3 + $0x18] sm:$0xff]  ;;  %v1991_v35 = vsel %vm674_vm1, %v1988_v24, %v1990_v5 }
 0x113   : > { %v1040_v40 = vadd.f32 %v994_v56, %v816_v60 }
 0x114   : > { %v775_v52 = vpop.f32.mrf.mxu2  ;;  %2206 = vperm.xlu1 %3340, %v2172_v34  }
 0x115   : > { %v3871_v49 = vadd.f32 %v1243_v12, %v1040_v40  ;;  %v1246_v19 = vpop.f32.mrf.mxu0  ;;  %v1809_v12 = vrot.slane %v3886_v45, 1 }
 0x116   : > { %v609_v13 = vpop.f32.mrf.mxu1  ;;  %v999_v41 = vpop.f32.mrf.mxu3 }
 0x117   : > { %v610_v36 = vadd.f32 %v609_v13, %v3823_v25  ;;  %v1810_v40 = vsel %vm390_vm0, %v1807_v42, %v1809_v12  ;;  %v1992_v42 = vrot.slane %v3886_v45, 2 }
 0x118   : > { %2074 = vmatmul.bf16.vlgmr.msra.gmra.mxu0 %v1989_v50 }
 0x119   : > { %v817_v59 = vadd.f32 %v773_v32, %v610_v36  ;;  %1418 = vmatmul.bf16.vlgmr.msra.gmra.mxu1 %v1333_v47  ;;  %1647 = vmatmul.bf16.gmra.mxu2 %v3227_v57  ;;  %v1334_v32 = vrot.slane %v3690_v21, 2  ;;  %v3903_v57 = vld [vmem:[#allocation2 + $0x48] sm:$0xff]  ;;  %v1336_v36 = vrot.slane %v3706_v15, 2 }
 0x11b   : > { %v1041_v56 = vadd.f32 %v997_v22, %v817_v59  ;;  %1896 = vmatmul.bf16.gmra.mxu3 %v1808_v54  ;;  %v1335_v60 = vsel %vm674_vm1, %v1332_v33, %v1334_v32  ;;  %v1811_v54 = vrot.slane %v3903_v57, 1 }
 0x11c   : > { %v778_v0 = vpop.f32.mrf.mxu2 }
 0x11d   : > { %v3880_v61 = vadd.f32 %v1246_v19, %v1041_v56  ;;  %v1248_v55 = vpop.f32.mrf.mxu0  ;;  %v1812_v15 = vsel %vm390_vm0, %v1809_v12, %v1811_v54  ;;  %v3920_v12 = vld [vmem:[#allocation2 + $0x50] sm:$0xff] }
 0x11e   : > { %v611_v2 = vpop.f32.mrf.mxu1  ;;  %v1002_v3 = vpop.f32.mrf.mxu3 }
 0x11f   : > { %v612_v25 = vadd.f32 %v611_v2, %v3835_v29  ;;  %v1337_v2 = vsel %vm674_vm1, %v1334_v32, %v1336_v36  ;;  %v2175_v32 = vld [vmem:[%s4128_s3 + $0x30] sm:$0xff] }
 0x120   : > { %2221 = vperm.xlu0 %3339, %v2175_v32  }
 0x121   : > { %v818_v7 = vadd.f32 %v775_v52, %v612_v25 }
 0x123   : > { %v1042_v10 = vadd.f32 %v999_v41, %v818_v7 }
 0x124   : > { %v780_v20 = vpop.f32.mrf.mxu2 }
 0x125   : > { %v3891_v51 = vadd.f32 %v1248_v55, %v1042_v10  ;;  %v1251_v29 = vpop.f32.mrf.mxu0  ;;  %v3229_v55 = vld [vmem:[#allocation2 + $0x40] sm:$0xff] }
 0x126   : > { %v614_v22 = vpop.f32.mrf.mxu1  ;;  %v1004_v17 = vpop.f32.mrf.mxu3 }
 0x127   : > { %v615_v21 = vadd.f32 %v614_v22, %v3760_v38 }
 0x128   : > { %2079 = vmatmul.bf16.gmra.mxu0 %v1991_v35  ;;  %v1994_v35 = vrot.slane %v3903_v57, 2 }
 0x129   : > { %v819_v52 = vadd.f32 %v778_v0, %v615_v21  ;;  %1423 = vmatmul.bf16.gmra.mxu1 %v1335_v60  ;;  %1652 = vmatmul.bf16.gmra.mxu2 %v3228_v37  ;;  %v1338_v60 = vrot.slane %v3719_v23, 2  ;;  %v1813_v21 = vrot.slane %v3920_v12, 1 }
 0x12b   : > { %v1043_v53 = vadd.f32 %v1002_v3, %v819_v52  ;;  %1901 = vmatmul.bf16.gmra.mxu3 %v1810_v40  ;;  %v2173_v52 = vld [vmem:[%s4128_s3 + $0x20] sm:$0xff]  ;;  %v1339_v23 = vsel %vm674_vm1, %v1336_v36, %v1338_v60  ;;  %v1814_v57 = vsel %vm390_vm0, %v1811_v54, %v1813_v21  ;;  %v2174_v36 = vld [vmem:[%s4128_s3 + $0x28] sm:$0xff]  ;;  %v3943_v54 = vld [vmem:[#allocation2 + $0x58] sm:$0xff] }
 0x12c   : > { %v783_v19 = vpop.f32.mrf.mxu2  ;;  %2211 = vperm.xlu2 %3341, %v2173_v52  }
 0x12d   : > { %v3900_v13 = vadd.f32 %v1251_v29, %v1043_v53  ;;  %v1253_v33 = vpop.f32.mrf.mxu0 }
 0x12e   : > { %v616_v47 = vpop.f32.mrf.mxu1  ;;  %v1007_v50 = vpop.f32.mrf.mxu3 }
 0x12f   : > { %v617_v24 = vadd.f32 %v616_v47, %v3772_v62  ;;  %v1993_v62 = vsel %vm674_vm1, %v1990_v5, %v1992_v42  ;;  %v1995_v47 = vsel %vm674_vm1, %v1992_v42, %v1994_v35 }
 0x131   : > { %v820_v38 = vadd.f32 %v780_v20, %v617_v24 }
 0x133   : > { %v1044_v41 = vadd.f32 %v1004_v17, %v820_v38 }
 0x134   : > { %v785_v56 = vpop.f32.mrf.mxu2  ;;  %2216 = vperm.xlu2 %3341, %v2174_v36  }
 0x135   : > { %v3908_v59 = vadd.f32 %v1253_v33, %v1044_v41  ;;  %v1256_v30 = vpop.f32.mrf.mxu0  ;;  %v3230_v33 = vld [vmem:[#allocation2 + $0x48] sm:$0xff] }
 0x136   : > { %v619_v0 = vpop.f32.mrf.mxu1  ;;  %v1009_v3 = vpop.f32.mrf.mxu3 }
 0x137   : > { %v620_v25 = vadd.f32 %v619_v0, %v3790_v6 }
 0x138   : > { %2084 = vmatmul.bf16.gmra.mxu0 %v1993_v62 }
 0x139   : > { %v821_v7 = vadd.f32 %v783_v19, %v620_v25  ;;  %1428 = vmatmul.bf16.gmra.mxu1 %v1337_v2  ;;  %1657 = vmatmul.bf16.gmra.mxu2 %v3229_v55  ;;  %v1340_v55 = vrot.slane %v3732_v39, 2  ;;  %v1996_v25 = vrot.slane %v3920_v12, 2 }
 0x13b   : > { %v1045_v45 = vadd.f32 %v1007_v50, %v821_v7  ;;  %1906 = vmatmul.bf16.gmra.mxu3 %v1812_v15  ;;  %v1815_v15 = vrot.slane %v3943_v54, 1 }
 0x13c   : > { %v788_v20 = vpop.f32.mrf.mxu2 }
 0x13d   : > { %v3914_v10 = vadd.f32 %v1256_v30, %v1045_v45  ;;  %v1258_v34 = vpop.f32.mrf.mxu0  ;;  %v1816_v12 = vsel %vm390_vm0, %v1813_v21, %v1815_v15  ;;  %v3963_v21 = vld [vmem:[#allocation2 + $0x60] sm:$0xff] }
 0x13e   : > { %v621_v5 = vpop.f32.mrf.mxu1  ;;  %v1012_v22 = vpop.f32.mrf.mxu3 }
 0x13f   : > { %v622_v6 = vadd.f32 %v621_v5, %v3804_v14  ;;  %v2176_v14 = vld [vmem:[%s4128_s3 + $0x38] sm:$0xff]  ;;  %v1341_v5 = vsel %vm674_vm1, %v1338_v60, %v1340_v55  ;;  %v2179_v60 = vld [vmem:[%s4128_s3 + $0x50] sm:$0xff] }
 0x140   : > { %2226 = vperm.xlu1 %3340, %v2176_v14  }
 0x141   : > { %v822_v29 = vadd.f32 %v785_v56, %v622_v6  ;;  %v3231_v6 = vld [vmem:[#allocation2 + $0x50] sm:$0xff] }
 0x143   : > { %v1046_v37 = vadd.f32 %v1009_v3, %v822_v29 }
 0x144   : > { %v790_v40 = vpop.f32.mrf.mxu2 }
 0x145   : > { %v3925_v17 = vadd.f32 %v1258_v34, %v1046_v37  ;;  %v1261_v19 = vpop.f32.mrf.mxu0  ;;  %v1997_v34 = vsel %vm674_vm1, %v1994_v35, %v1996_v25 }
 0x146   : > { %v624_v53 = vpop.f32.mrf.mxu1  ;;  %v1014_v50 = vpop.f32.mrf.mxu3 }
 0x147   : > { %v625_v24 = vadd.f32 %v624_v53, %v3825_v26 }
 0x148   : > { %2089 = vmatmul.bf16.gmra.mxu0 %v1995_v47  ;;  %2241 = vperm.xlu1 %3340, %v2179_v60   ;;  %v1998_v47 = vrot.slane %v3943_v54, 2 }
 0x149   : > { %v823_v38 = vadd.f32 %v788_v20, %v625_v24  ;;  %1433 = vmatmul.bf16.gmra.mxu1 %v1339_v23  ;;  %1662 = vmatmul.bf16.gmra.mxu2 %v3230_v33  ;;  %v2178_v20 = vld [vmem:[%s4128_s3 + $0x48] sm:$0xff]  ;;  %v1342_v23 = vrot.slane %v3751_v48, 2  ;;  %v2181_v24 = vld [vmem:[%s4128_s3 + $0x60] sm:$0xff] }
 0x14a   : > { %2236 = vperm.xlu0 %3339, %v2178_v20   ;;  %v2182_v48 = vld [vmem:[%s4128_s3 + $0x68] sm:$0xff] }
 0x14b   : > { %v1047_v41 = vadd.f32 %v1012_v22, %v823_v38  ;;  %1911 = vmatmul.bf16.gmra.mxu3 %v1814_v57  ;;  %v1343_v36 = vsel %vm674_vm1, %v1340_v55, %v1342_v23  ;;  %v2184_v55 = vld [vmem:[%s4128_s3 + $0x78] sm:$0xff] }
 0x14c   : > { %v793_v0 = vpop.f32.mrf.mxu2 }
 0x14d   : > { %v3937_v56 = vadd.f32 %v1261_v19, %v1047_v41  ;;  %v1263_v30 = vpop.f32.mrf.mxu0 }
 0x14e   : > { %v626_v42 = vpop.f32.mrf.mxu1  ;;  %v1017_v2 = vpop.f32.mrf.mxu3 }
 0x14f   : > { %v627_v26 = vadd.f32 %v626_v42, %v3837_v43  ;;  %v1999_v42 = vsel %vm674_vm1, %v1996_v25, %v1998_v47 }
 0x150   : > { %2256 = vperm.xlu1 %3340, %v2182_v48  }
 0x151   : > { %v824_v62 = vadd.f32 %v790_v40, %v627_v26 }
 0x152   : > { %2251 = vperm.xlu0 %3339, %v2181_v24  }
 0x153   : > { %v1048_v3 = vadd.f32 %v1014_v50, %v824_v62  ;;  %v1817_v50 = vrot.slane %v3963_v21, 1 }
 0x154   : > { %v795_v45 = vpop.f32.mrf.mxu2 }
 0x155   : > { %v3948_v7 = vadd.f32 %v1263_v30, %v1048_v3  ;;  %v1266_v43 = vpop.f32.mrf.mxu0  ;;  %v3232_v30 = vld [vmem:[#allocation2 + $0x58] sm:$0xff]  ;;  %v1818_v54 = vsel %vm390_vm0, %v1815_v15, %v1817_v50 }
 0x156   : > { %v629_v32 = vpop.f32.mrf.mxu1  ;;  %v1019_v22 = vpop.f32.mrf.mxu3 }
 0x157   : > { %v630_v39 = vadd.f32 %v629_v32, %v3768_v58 }
 0x158   : > { %2094 = vmatmul.bf16.gmra.mxu0 %v1997_v34 }
 0x159   : > { %v825_v29 = vadd.f32 %v793_v0, %v630_v39  ;;  %1438 = vmatmul.bf16.gmra.mxu1 %v1341_v5  ;;  %1667 = vmatmul.bf16.gmra.mxu2 %v3231_v6  ;;  %v3992_v5 = vld [vmem:[#allocation2 + $0x68] sm:$0xff]  ;;  %v1344_v6 = vrot.slane %v3774_v63, 2  ;;  %v2000_v39 = vrot.slane %v3963_v21, 2 }
 0x15a   : > { %2266 = vperm.xlu0 %3339, %v2184_v55  }
 0x15b   : > { %v1049_v37 = vadd.f32 %v1017_v2, %v825_v29  ;;  %1916 = vmatmul.bf16.gmra.mxu3 %v1816_v12  ;;  %v2187_v12 = vld [vmem:[%s4128_s3 + $0x90] sm:$0xff]  ;;  %v1819_v29 = vrot.slane %v3992_v5, 1  ;;  %v1345_v63 = vsel %vm674_vm1, %v1342_v23, %v1344_v6  ;;  %v2180_v23 = vld [vmem:[%s4128_s3 + $0x58] sm:$0xff] }
 0x15c   : > { %v798_v52 = vpop.f32.mrf.mxu2 }
 0x15d   : > { %v3957_v40 = vadd.f32 %v1266_v43, %v1049_v37  ;;  %v1268_v14 = vpop.f32.mrf.mxu0 }
 0x15e   : > { %v631_v35 = vpop.f32.mrf.mxu1  ;;  %v1022_v53 = vpop.f32.mrf.mxu3 }
 0x15f   : > { %v632_v58 = vadd.f32 %v631_v35, %v3786_v4  ;;  %v2177_v4 = vld [vmem:[%s4128_s3 + $0x40] sm:$0xff] }
 0x160   : > { %2231 = vperm.xlu2 %3341, %v2177_v4  }
 0x161   : > { %v826_v19 = vadd.f32 %v795_v45, %v632_v58  ;;  %v3233_v58 = vld [vmem:[#allocation2 + $0x60] sm:$0xff] }
 0x162   : > { %2281 = vperm.xlu0 %3339, %v2187_v12  }
 0x163   : > { %v1050_v33 = vadd.f32 %v1019_v22, %v826_v19  ;;  %v1820_v19 = vsel %vm390_vm0, %v1817_v50, %v1819_v29  ;;  %v4015_v50 = vld [vmem:[#allocation2 + $0x70] sm:$0xff] }
 0x164   : > { %v800_v38 = vpop.f32.mrf.mxu2 }
 0x165   : > { %v3971_v57 = vadd.f32 %v1268_v14, %v1050_v33  ;;  %v1271_v0 = vpop.f32.mrf.mxu0  ;;  %v2001_v14 = vsel %vm674_vm1, %v1998_v47, %v2000_v39 }
 0x166   : > { %v634_v41 = vpop.f32.mrf.mxu1  ;;  %v1024_v2 = vpop.f32.mrf.mxu3 }
 0x167   : > { %v635_v26 = vadd.f32 %v634_v41, %v3797_v11  ;;  %v2185_v11 = vld [vmem:[%s4128_s3 + $0x80] sm:$0xff] }
 0x168   : > { %2099 = vmatmul.bf16.gmra.mxu0 %v1999_v42  ;;  %2271 = vperm.xlu1 %3340, %v2185_v11   ;;  %v2002_v42 = vrot.slane %v3992_v5, 2 }
 0x169   : > { %v827_v62 = vadd.f32 %v798_v52, %v635_v26  ;;  %1443 = vmatmul.bf16.gmra.mxu1 %v1343_v36  ;;  %1672 = vmatmul.bf16.gmra.mxu2 %v3232_v30  ;;  %v1346_v36 = vrot.slane %v3806_v27, 2  ;;  %v1821_v26 = vrot.slane %v4015_v50, 1 }
 0x16a   : > { %2246 = vperm.xlu2 %3341, %v2180_v23  }
 0x16b   : > { %v1051_v3 = vadd.f32 %v1022_v53, %v827_v62  ;;  %1921 = vmatmul.bf16.gmra.mxu3 %v1818_v54  ;;  %v1347_v55 = vsel %vm674_vm1, %v1344_v6, %v1346_v36  ;;  %v1822_v27 = vsel %vm390_vm0, %v1819_v29, %v1821_v26 }
 0x16c   : > { %v803_v45 = vpop.f32.mrf.mxu2 }
 0x16d   : > { %v3986_v25 = vadd.f32 %v1271_v0, %v1051_v3  ;;  %v1273_v15 = vpop.f32.mrf.mxu0 }
 0x16e   : > { %v636_v20 = vpop.f32.mrf.mxu1  ;;  %v1027_v43 = vpop.f32.mrf.mxu3 }
 0x16f   : > { %v637_v32 = vadd.f32 %v636_v20, %v3812_v18  ;;  %v2188_v18 = vld [vmem:[%s4128_s3 + $0x98] sm:$0xff] }
 0x170   : > { %2286 = vperm.xlu1 %3340, %v2188_v18  }
 0x171   : > { %v828_v34 = vadd.f32 %v800_v38, %v637_v32  ;;  %v1733_v32 = vld [vmem:[#allocation2 + $0x78] sm:$0x1] }
 0x173   : > { %v1052_v22 = vadd.f32 %v1024_v2, %v828_v34  ;;  %v1792_v34 = vunpack.c.l.b16 %v1733_v32 }
 0x174   : > { %v805_v52 = vpop.f32.mrf.mxu2 }
 0x175   : > { %v4000_v37 = vadd.f32 %v1273_v15, %v1052_v22  ;;  %v1276_v35 = vpop.f32.mrf.mxu0 }
 0x176   : > { %v639_v60 = vpop.f32.mrf.mxu1  ;;  %v1029_v21 = vpop.f32.mrf.mxu3 }
 0x177   : > { %v640_v53 = vadd.f32 %v639_v60, %v3782_v1  ;;  %v2186_v60 = vld [vmem:[%s4128_s3 + $0x88] sm:$0xff] }
 0x178   : > { %2104 = vmatmul.bf16.gmra.mxu0 %v2001_v14 }
 0x179   : > { %v829_v33 = vadd.f32 %v803_v45, %v640_v53  ;;  %1448 = vmatmul.bf16.gmra.mxu1 %v1345_v63  ;;  %1677 = vmatmul.bf16.gmra.mxu2 %v3233_v58  ;;  %v3234_v45 = vld [vmem:[#allocation2 + $0x68] sm:$0xff]  ;;  %v2004_v63 = vrot.slane %v4015_v50, 2 }
 0x17b   : > { %v1053_v24 = vadd.f32 %v1027_v43, %v829_v33  ;;  %1926 = vmatmul.bf16.gmra.mxu3 %v1820_v19  ;;  %v2183_v43 = vld [vmem:[%s4128_s3 + $0x70] sm:$0xff] }
 0x17c   : > { %v808_v4 = vpop.f32.mrf.mxu2  ;;  %2261 = vperm.xlu2 %3341, %v2183_v43  }
 0x17d   : > { %v4009_v38 = vadd.f32 %v1276_v35, %v1053_v24  ;;  %v1278_v48 = vpop.f32.mrf.mxu0  ;;  %v1348_v35 = vrot.slane %v3839_v44, 2  ;;  %v2005_v24 = vsel %vm674_vm1, %v2002_v42, %v2004_v63  ;;  %v1963_v44 = vld [vmem:[#allocation2 + $0x78] sm:$0x3] }
 0x17e   : > { %v641_v47 = vpop.f32.mrf.mxu1  ;;  %v1032_v41 = vpop.f32.mrf.mxu3 }
 0x17f   : > { %v642_v1 = vadd.f32 %v641_v47, %v3793_v8  ;;  %v2003_v8 = vsel %vm674_vm1, %v2000_v39, %v2002_v42 }
 0x181   : > { %v830_v0 = vadd.f32 %v805_v52, %v642_v1  ;;  %v1803_v52 = vpack.c.b16 %v1792_v34, %v1792_v34 }
 0x183   : > { %v1054_v30 = vadd.f32 %v1029_v21, %v830_v0  ;;  %v1823_v58 = vrot.slane %v1803_v52, 1  ;;  %v1984_v0 = vunpack.c.l.b16 %v1963_v44 }
 0x184   : > { %v810_v54 = vpop.f32.mrf.mxu2  ;;  %2276 = vperm.xlu2 %3341, %v2186_v60  }
 0x185   : > { %v4020_v2 = vadd.f32 %v1278_v48, %v1054_v30  ;;  %v1281_v3 = vpop.f32.mrf.mxu0  ;;  %v1307_v48 = vld [vmem:[#allocation2 + $0x64] sm:$0x3]  ;;  %v1824_v1 = vsel %vm390_vm0, %v1821_v26, %v1823_v58 }
 0x186   : > { %v644_v62 = vpop.f32.mrf.mxu1  ;;  %v1034_v20 = vpop.f32.mrf.mxu3  ;;  %v1328_v50 = vunpack.c.l.b16 %v1307_v48 }
 0x187   : > { %v645_v11 = vadd.f32 %v644_v62, %v3808_v16 }
 0x188   : > { %2109 = vmatmul.bf16.gmra.mxu0 %v2003_v8  ;;  %v1330_v26 = vpack.c.b16 %v1328_v50, %v1328_v50 }
 0x189   : > { %v831_v15 = vadd.f32 %v808_v4, %v645_v11  ;;  %1453 = vmatmul.bf16.gmra.mxu1 %v1347_v55  ;;  %1682 = vmatmul.bf16.gmra.mxu2 %v3234_v45  ;;  %v3235_v4 = vld [vmem:[#allocation2 + $0x70] sm:$0xff]  ;;  %v1986_v55 = vpack.c.b16 %v1984_v0, %v1984_v0 }
 0x18b   : > { %v1055_v5 = vadd.f32 %v1032_v41, %v831_v15  ;;  %1931 = vmatmul.bf16.gmra.mxu3 %v1822_v27  ;;  %v1350_v15 = vrot.slane %v1330_v26, 2  ;;  %v2006_v32 = vrot.slane %v1986_v55, 2 }
 0x18c   : > { %v1643_v39 = vpop.f32.mrf.mxu2 }
 0x18d   : > { %v4029_v6 = vadd.f32 %v1281_v3, %v1055_v5  ;;  %v1283_v22 = vpop.f32.mrf.mxu0 }
 0x18e   : > { %v646_v16 = vpop.f32.mrf.mxu1  ;;  %v1892_v29 = vpop.f32.mrf.mxu3 }
 0x18f   : > { %v647_v12 = vadd.f32 %v646_v16, %v3828_v28  ;;  %v1349_v28 = vsel %vm674_vm1, %v1346_v36, %v1348_v35  ;;  %v4046_v36 = vld [vmem:[%s4127_s2] ss:$0 sm:$0xff] }
 0x191   : > { %v832_v18 = vadd.f32 %v810_v54, %v647_v12  ;;  %v2192_v54 = vpop.permute.xlu0 %2191  ;;  %v1351_v12 = vsel %vm674_vm1, %v1348_v35, %v1350_v15  ;;  %v2212_v15 = vpop.permute.xlu2 %2211 }
 0x193   : > { %v1056_v14 = vadd.f32 %v1034_v20, %v832_v18 }
 0x194   : > { %v1645_v21 = vpop.f32.mrf.mxu2 }
 0x195   : > { %v4037_v53 = vadd.f32 %v1283_v22, %v1056_v14  ;;  %v2075_v33 = vpop.f32.mrf.mxu0 }
 0x196   : > { %v1419_v19 = vpop.f32.mrf.mxu1  ;;  %v1894_v47 = vpop.f32.mrf.mxu3 }
 0x197   : > { %v1469_v23 = vadd.f32 %v1419_v19, %v3846_v31 }
 0x198   : > { %2114 = vmatmul.bf16.gmra.mxu0 %v2005_v24 }
 0x199   : > { %v1693_v41 = vadd.f32 %v1643_v39, %v1469_v23  ;;  %1458 = vmatmul.bf16.gmra.mxu1 %v1349_v28  ;;  %1687 = vmatmul.bf16.gmra.mxu2 %v3235_v4  ;;  %v2197_v34 = vpop.permute.xlu0 %2196  ;;  %v2202_v28 = vpop.permute.xlu1 %2201 }
 0x19b   : > { %v1942_v30 = vadd.f32 %v1892_v29, %v1693_v41  ;;  %1936 = vmatmul.bf16.gmra.mxu3 %v1824_v1  ;;  %v2007_v29 = vsel %vm674_vm1, %v2004_v63, %v2006_v32 }
 0x19c   : > { %v1648_v42 = vpop.f32.mrf.mxu2 }
 0x19d   : > { %v2125_v31 = vadd.f32 %v2075_v33, %v1942_v30  ;;  %v2077_v3 = vpop.f32.mrf.mxu0 }
 0x19e   : > { %v1421_v62 = vpop.f32.mrf.mxu1  ;;  %v1897_v11 = vpop.f32.mrf.mxu3 }
 0x19f   : > { %v1470_v8 = vadd.f32 %v1421_v62, %v3852_v46  ;;  %v2149_v45 = vadd.f32 %v4046_v36, %v2125_v31 }
 0x1a1   : > { %v1694_v20 = vadd.f32 %v1645_v21, %v1470_v8  ;;  %v2289_v27 = vmul.f32 %v2192_v54, %v2149_v45  ;;  %v2207_v31 = vpop.permute.xlu1 %2206 }
 0x1a3   : > { %v1943_v43 = vadd.f32 %v1894_v47, %v1694_v20  ;;  %2382 = vst [vmem:[%s3454_s12] sm:$0xff] %v2289_v27  ;;  %v2334_v58 = vmul.f32 %v2289_v27, %v2289_v27 }
 0x1a4   : > { %v1650_v39 = vpop.f32.mrf.mxu2 }
 0x1a5   : > { %v2126_v5 = vadd.f32 %v2077_v3, %v1943_v43  ;;  %v2080_v22 = vpop.f32.mrf.mxu0 }
 0x1a6   : > { %v1424_v16 = vpop.f32.mrf.mxu1  ;;  %v1899_v18 = vpop.f32.mrf.mxu3 }
 0x1a7   : > { %v1471_v46 = vadd.f32 %v1424_v16, %v3858_v9  ;;  %v2150_v52 = vadd.f32 %v4046_v36, %v2126_v5 }
 0x1a8   : > { %2119 = vmatmul.bf16.gmra.mxu0 %v2007_v29 }
 0x1a9   : > { %v1695_v60 = vadd.f32 %v1648_v42, %v1471_v46  ;;  %v2290_v14 = vmul.f32 %v2197_v34, %v2150_v52  ;;  %1463 = vmatmul.bf16.gmra.mxu1 %v1351_v12 }
 0x1ab   : > { %v1944_v21 = vadd.f32 %v1897_v11, %v1695_v60  ;;  %v2309_v19 = vadd.f32 %v2290_v14, %v2289_v27  ;;  %v2335_v33 = vmul.f32 %v2290_v14, %v2290_v14  ;;  %2383 = vst [vmem:[%s3454_s12 + $0x8] sm:$0xff] %v2290_v14 }
 0x1ac   : > { %v1653_v4 = vpop.f32.mrf.mxu2 }
 0x1ad   : > { %v2127_v24 = vadd.f32 %v2080_v22, %v1944_v21  ;;  %v2354_v35 = vadd.f32 %v2335_v33, %v2334_v58  ;;  %v2082_v23 = vpop.f32.mrf.mxu0  ;;  %v2217_v58 = vpop.permute.xlu2 %2216 }
 0x1ae   : > { %v1426_v63 = vpop.f32.mrf.mxu1  ;;  %v1902_v48 = vpop.f32.mrf.mxu3 }
 0x1af   : > { %v1472_v9 = vadd.f32 %v1426_v63, %v3871_v49  ;;  %v2151_v47 = vadd.f32 %v4046_v36, %v2127_v24 }
 0x1b1   : > { %v1696_v44 = vadd.f32 %v1650_v39, %v1472_v9  ;;  %v2291_v1 = vmul.f32 %v2202_v28, %v2151_v47 }
 0x1b3   : > { %v1945_v41 = vadd.f32 %v1899_v18, %v1696_v44  ;;  %v2310_v50 = vadd.f32 %v2309_v19, %v2291_v1  ;;  %v2336_v0 = vmul.f32 %v2291_v1, %v2291_v1  ;;  %2384 = vst [vmem:[%s3454_s12 + $0x10] sm:$0xff] %v2291_v1  ;;  %v2222_v44 = vpop.permute.xlu0 %2221 }
 0x1b4   : > { %v1655_v42 = vpop.f32.mrf.mxu2 }
 0x1b5   : > { %v2128_v30 = vadd.f32 %v2082_v23, %v1945_v41  ;;  %v2355_v54 = vadd.f32 %v2354_v35, %v2336_v0  ;;  %v2085_v3 = vpop.f32.mrf.mxu0 }
 0x1b6   : > { %v1429_v62 = vpop.f32.mrf.mxu1  ;;  %v1904_v55 = vpop.f32.mrf.mxu3 }
 0x1b7   : > { %v1473_v26 = vadd.f32 %v1429_v62, %v3880_v61  ;;  %v2152_v49 = vadd.f32 %v4046_v36, %v2128_v30 }
 0x1b9   : > { %v1697_v8 = vadd.f32 %v1653_v4, %v1473_v26  ;;  %v2292_v45 = vmul.f32 %v2207_v31, %v2152_v49 }
 0x1bb   : > { %v1946_v11 = vadd.f32 %v1902_v48, %v1697_v8  ;;  %v2311_v20 = vadd.f32 %v2310_v50, %v2292_v45  ;;  %v2337_v27 = vmul.f32 %v2292_v45, %v2292_v45  ;;  %2385 = vst [vmem:[%s3454_s12 + $0x18] sm:$0xff] %v2292_v45 }
 0x1bc   : > { %v1658_v5 = vpop.f32.mrf.mxu2 }
 0x1bd   : > { %v2129_v32 = vadd.f32 %v2085_v3, %v1946_v11  ;;  %v2356_v43 = vadd.f32 %v2355_v54, %v2337_v27  ;;  %v2087_v39 = vpop.f32.mrf.mxu0 }
 0x1be   : > { %v1431_v34 = vpop.f32.mrf.mxu1  ;;  %v1907_v22 = vpop.f32.mrf.mxu3 }
 0x1bf   : > { %v1474_v16 = vadd.f32 %v1431_v34, %v3891_v51  ;;  %v2153_v61 = vadd.f32 %v4046_v36, %v2129_v32 }
 0x1c1   : > { %v1698_v12 = vadd.f32 %v1655_v42, %v1474_v16  ;;  %v2293_v29 = vmul.f32 %v2212_v15, %v2153_v61  ;;  %v2232_v61 = vpop.permute.xlu2 %2231 }
 0x1c3   : > { %v1947_v46 = vadd.f32 %v1904_v55, %v1698_v12  ;;  %v2312_v52 = vadd.f32 %v2311_v20, %v2293_v29  ;;  %v2338_v18 = vmul.f32 %v2293_v29, %v2293_v29  ;;  %2386 = vst [vmem:[%s3454_s12 + $0x20] sm:$0xff] %v2293_v29  ;;  %v2227_v55 = vpop.permute.xlu1 %2226 }
 0x1c4   : > { %v1660_v21 = vpop.f32.mrf.mxu2 }
 0x1c5   : > { %v2130_v60 = vadd.f32 %v2087_v39, %v1947_v46  ;;  %v2357_v14 = vadd.f32 %v2356_v43, %v2338_v18  ;;  %v2090_v33 = vpop.f32.mrf.mxu0 }
 0x1c6   : > { %v1434_v19 = vpop.f32.mrf.mxu1  ;;  %v1909_v24 = vpop.f32.mrf.mxu3 }
 0x1c7   : > { %v1475_v28 = vadd.f32 %v1434_v19, %v3900_v13  ;;  %v2154_v51 = vadd.f32 %v4046_v36, %v2130_v60 }
 0x1c9   : > { %v1699_v35 = vadd.f32 %v1658_v5, %v1475_v28  ;;  %v2294_v4 = vmul.f32 %v2217_v58, %v2154_v51  ;;  %v2237_v28 = vpop.permute.xlu0 %2236 }
 0x1cb   : > { %v1948_v63 = vadd.f32 %v1907_v22, %v1699_v35  ;;  %v2313_v23 = vadd.f32 %v2312_v52, %v2294_v4  ;;  %v2339_v9 = vmul.f32 %v2294_v4, %v2294_v4  ;;  %2387 = vst [vmem:[%s3454_s12 + $0x28] sm:$0xff] %v2294_v4 }
 0x1cc   : > { %v1663_v1 = vpop.f32.mrf.mxu2 }
 0x1cd   : > { %v2131_v47 = vadd.f32 %v2090_v33, %v1948_v63  ;;  %v2358_v48 = vadd.f32 %v2357_v14, %v2339_v9  ;;  %v2092_v50 = vpop.f32.mrf.mxu0 }
 0x1ce   : > { %v1436_v41 = vpop.f32.mrf.mxu1  ;;  %v1912_v30 = vpop.f32.mrf.mxu3 }
 0x1cf   : > { %v1476_v0 = vadd.f32 %v1436_v41, %v3908_v59  ;;  %v2155_v13 = vadd.f32 %v4046_v36, %v2131_v47 }
 0x1d1   : > { %v1700_v54 = vadd.f32 %v1660_v21, %v1476_v0  ;;  %v2295_v31 = vmul.f32 %v2222_v44, %v2155_v13 }
 0x1d3   : > { %v1949_v42 = vadd.f32 %v1909_v24, %v1700_v54  ;;  %v2314_v62 = vadd.f32 %v2313_v23, %v2295_v31  ;;  %v2340_v3 = vmul.f32 %v2295_v31, %v2295_v31  ;;  %2388 = vst [vmem:[%s3454_s12 + $0x30] sm:$0xff] %v2295_v31 }
 0x1d4   : > { %v1665_v8 = vpop.f32.mrf.mxu2 }
 0x1d5   : > { %v2132_v26 = vadd.f32 %v2092_v50, %v1949_v42  ;;  %v2359_v49 = vadd.f32 %v2358_v48, %v2340_v3  ;;  %v2095_v11 = vpop.f32.mrf.mxu0  ;;  %v2242_v50 = vpop.permute.xlu1 %2241 }
 0x1d6   : > { %v1439_v45 = vpop.f32.mrf.mxu1  ;;  %v1914_v27 = vpop.f32.mrf.mxu3 }
 0x1d7   : > { %v1477_v20 = vadd.f32 %v1439_v45, %v3914_v10  ;;  %v2156_v59 = vadd.f32 %v4046_v36, %v2132_v26  ;;  %v2247_v45 = vpop.permute.xlu2 %2246 }
 0x1d9   : > { %v1701_v15 = vadd.f32 %v1663_v1, %v1477_v20  ;;  %v2296_v32 = vmul.f32 %v2227_v55, %v2156_v59 }
 0x1db   : > { %v1950_v43 = vadd.f32 %v1912_v30, %v1701_v15  ;;  %v2315_v5 = vadd.f32 %v2314_v62, %v2296_v32  ;;  %v2341_v34 = vmul.f32 %v2296_v32, %v2296_v32  ;;  %2389 = vst [vmem:[%s3454_s12 + $0x38] sm:$0xff] %v2296_v32 }
 0x1dc   : > { %v1668_v22 = vpop.f32.mrf.mxu2 }
 0x1dd   : > { %v2133_v39 = vadd.f32 %v2095_v11, %v1950_v43  ;;  %v2360_v16 = vadd.f32 %v2359_v49, %v2341_v34  ;;  %v2097_v29 = vpop.f32.mrf.mxu0 }
 0x1de   : > { %v1441_v12 = vpop.f32.mrf.mxu1  ;;  %v1917_v52 = vpop.f32.mrf.mxu3 }
 0x1df   : > { %v1478_v46 = vadd.f32 %v1441_v12, %v3925_v17  ;;  %v2157_v10 = vadd.f32 %v4046_v36, %v2133_v39 }
 0x1e1   : > { %v1702_v18 = vadd.f32 %v1665_v8, %v1478_v46  ;;  %v2297_v60 = vmul.f32 %v2232_v61, %v2157_v10 }
 0x1e3   : > { %v1951_v14 = vadd.f32 %v1914_v27, %v1702_v18  ;;  %v2316_v58 = vadd.f32 %v2315_v5, %v2297_v60  ;;  %v2342_v21 = vmul.f32 %v2297_v60, %v2297_v60  ;;  %2390 = vst [vmem:[%s3454_s12 + $0x40] sm:$0xff] %v2297_v60 }
 0x1e4   : > { %v1670_v51 = vpop.f32.mrf.mxu2 }
 0x1e5   : > { %v2134_v19 = vadd.f32 %v2097_v29, %v1951_v14  ;;  %v2361_v33 = vadd.f32 %v2360_v16, %v2342_v21  ;;  %v2100_v35 = vpop.f32.mrf.mxu0 }
 0x1e6   : > { %v1444_v24 = vpop.f32.mrf.mxu1  ;;  %v1919_v63 = vpop.f32.mrf.mxu3 }
 0x1e7   : > { %v1479_v4 = vadd.f32 %v1444_v24, %v3937_v56  ;;  %v2158_v17 = vadd.f32 %v4046_v36, %v2134_v19 }
 0x1e9   : > { %v1703_v23 = vadd.f32 %v1668_v22, %v1479_v4  ;;  %v2298_v9 = vmul.f32 %v2237_v28, %v2158_v17  ;;  %v2257_v4 = vpop.permute.xlu1 %2256 }
 0x1eb   : > { %v1952_v47 = vadd.f32 %v1917_v52, %v1703_v23  ;;  %v2317_v48 = vadd.f32 %v2316_v58, %v2298_v9  ;;  %v2343_v44 = vmul.f32 %v2298_v9, %v2298_v9  ;;  %2391 = vst [vmem:[%s3454_s12 + $0x48] sm:$0xff] %v2298_v9 }
 0x1ec   : > { %v1673_v0 = vpop.f32.mrf.mxu2 }
 0x1ed   : > { %v2135_v1 = vadd.f32 %v2100_v35, %v1952_v47  ;;  %v2362_v41 = vadd.f32 %v2361_v33, %v2343_v44  ;;  %v2102_v30 = vpop.f32.mrf.mxu0 }
 0x1ee   : > { %v1446_v13 = vpop.f32.mrf.mxu1  ;;  %v1922_v31 = vpop.f32.mrf.mxu3 }
 0x1ef   : > { %v1480_v54 = vadd.f32 %v1446_v13, %v3948_v7  ;;  %v2159_v56 = vadd.f32 %v4046_v36, %v2135_v1 }
 0x1f1   : > { %v1704_v42 = vadd.f32 %v1670_v51, %v1480_v54  ;;  %v2299_v62 = vmul.f32 %v2242_v50, %v2159_v56 }
 0x1f3   : > { %v1953_v3 = vadd.f32 %v1919_v63, %v1704_v42  ;;  %v2318_v26 = vadd.f32 %v2317_v48, %v2299_v62  ;;  %v2344_v49 = vmul.f32 %v2299_v62, %v2299_v62  ;;  %2392 = vst [vmem:[%s3454_s12 + $0x50] sm:$0xff] %v2299_v62 }
 0x1f4   : > { %v1675_v11 = vpop.f32.mrf.mxu2 }
 0x1f5   : > { %v2136_v55 = vadd.f32 %v2102_v30, %v1953_v3  ;;  %v2363_v8 = vadd.f32 %v2362_v41, %v2344_v49  ;;  %v2105_v59 = vpop.f32.mrf.mxu0  ;;  %v2262_v30 = vpop.permute.xlu2 %2261 }
 0x1f6   : > { %v1449_v20 = vpop.f32.mrf.mxu1  ;;  %v1924_v15 = vpop.f32.mrf.mxu3 }
 0x1f7   : > { %v1481_v27 = vadd.f32 %v1449_v20, %v3957_v40  ;;  %v2160_v7 = vadd.f32 %v4046_v36, %v2136_v55  ;;  %v2252_v40 = vpop.permute.xlu0 %2251 }
 0x1f9   : > { %v1705_v32 = vadd.f32 %v1673_v0, %v1481_v27  ;;  %v2300_v43 = vmul.f32 %v2247_v45, %v2160_v7 }
 0x1fb   : > { %v1954_v5 = vadd.f32 %v1922_v31, %v1705_v32  ;;  %v2319_v34 = vadd.f32 %v2318_v26, %v2300_v43  ;;  %v2345_v39 = vmul.f32 %v2300_v43, %v2300_v43  ;;  %2393 = vst [vmem:[%s3454_s12 + $0x58] sm:$0xff] %v2300_v43 }
 0x1fc   : > { %v1678_v22 = vpop.f32.mrf.mxu2 }
 0x1fd   : > { %v2137_v16 = vadd.f32 %v2105_v59, %v1954_v5  ;;  %v2364_v61 = vadd.f32 %v2363_v8, %v2345_v39  ;;  %v2107_v29 = vpop.f32.mrf.mxu0 }
 0x1fe   : > { %v1451_v12 = vpop.f32.mrf.mxu1  ;;  %v1927_v52 = vpop.f32.mrf.mxu3 }
 0x1ff   : > { %v2161_v46 = vadd.f32 %v4046_v36, %v2137_v16  ;;  %v1482_v10 = vadd.f32 %v1451_v12, %v3971_v57  ;;  %v2267_v20 = vpop.permute.xlu0 %2266 }
 0x201   : > { %v2301_v18 = vmul.f32 %v2252_v40, %v2161_v46  ;;  %v1706_v60 = vadd.f32 %v1675_v11, %v1482_v10 }
 0x203   : > { %v2346_v14 = vmul.f32 %v2301_v18, %v2301_v18  ;;  %2394 = vst [vmem:[%s3454_s12 + $0x60] sm:$0xff] %v2301_v18  ;;  %v2320_v58 = vadd.f32 %v2319_v34, %v2301_v18  ;;  %v1955_v21 = vadd.f32 %v1924_v15, %v1706_v60 }
 0x204   : > { %v1680_v17 = vpop.f32.mrf.mxu2 }
 0x205   : > { %v2365_v19 = vadd.f32 %v2364_v61, %v2346_v14  ;;  %v2138_v33 = vadd.f32 %v2107_v29, %v1955_v21  ;;  %v2110_v51 = vpop.f32.mrf.mxu0 }
 0x206   : > { %v1454_v28 = vpop.f32.mrf.mxu1  ;;  %v1929_v23 = vpop.f32.mrf.mxu3 }
 0x207   : > { %v2162_v24 = vadd.f32 %v4046_v36, %v2138_v33  ;;  %v1483_v35 = vadd.f32 %v1454_v28, %v3986_v25 }
 0x209   : > { %v2302_v57 = vmul.f32 %v2257_v4, %v2162_v24  ;;  %v1707_v63 = vadd.f32 %v1678_v22, %v1483_v35  ;;  %v2272_v22 = vpop.permute.xlu1 %2271 }
 0x20b   : > { %v2321_v9 = vadd.f32 %v2320_v58, %v2302_v57  ;;  %v2347_v47 = vmul.f32 %v2302_v57, %v2302_v57  ;;  %2395 = vst [vmem:[%s3454_s12 + $0x68] sm:$0xff] %v2302_v57  ;;  %v1956_v48 = vadd.f32 %v1927_v52, %v1707_v63 }
 0x20c   : > { %v1683_v56 = vpop.f32.mrf.mxu2 }
 0x20d   : > { %v2366_v44 = vadd.f32 %v2365_v19, %v2347_v47  ;;  %v2139_v1 = vadd.f32 %v2110_v51, %v1956_v48  ;;  %v2112_v50 = vpop.f32.mrf.mxu0  ;;  %v2277_v19 = vpop.permute.xlu2 %2276 }
 0x20e   : > { %v1456_v41 = vpop.f32.mrf.mxu1  ;;  %v1932_v3 = vpop.f32.mrf.mxu3 }
 0x20f   : > { %v2163_v0 = vadd.f32 %v4046_v36, %v2139_v1  ;;  %v1484_v13 = vadd.f32 %v1456_v41, %v4000_v37  ;;  %v2282_v47 = vpop.permute.xlu0 %2281 }
 0x211   : > { %v2303_v25 = vmul.f32 %v2262_v30, %v2163_v0  ;;  %v1708_v54 = vadd.f32 %v1680_v17, %v1484_v13 }
 0x213   : > { %v2322_v31 = vadd.f32 %v2321_v9, %v2303_v25  ;;  %v2348_v42 = vmul.f32 %v2303_v25, %v2303_v25  ;;  %2396 = vst [vmem:[%s3454_s12 + $0x70] sm:$0xff] %v2303_v25  ;;  %v1957_v62 = vadd.f32 %v1929_v23, %v1708_v54 }
 0x214   : > { %v1685_v32 = vpop.f32.mrf.mxu2 }
 0x215   : > { %v2367_v26 = vadd.f32 %v2366_v44, %v2348_v42  ;;  %v2140_v49 = vadd.f32 %v2112_v50, %v1957_v62  ;;  %v2115_v8 = vpop.f32.mrf.mxu0 }
 0x216   : > { %v1459_v55 = vpop.f32.mrf.mxu1  ;;  %v1934_v34 = vpop.f32.mrf.mxu3 }
 0x217   : > { %v2164_v45 = vadd.f32 %v4046_v36, %v2140_v49  ;;  %v1485_v11 = vadd.f32 %v1459_v55, %v4009_v38 }
 0x219   : > { %v2304_v37 = vmul.f32 %v2267_v20, %v2164_v45  ;;  %v1709_v59 = vadd.f32 %v1683_v56, %v1485_v11  ;;  %v2287_v56 = vpop.permute.xlu1 %2286 }
 0x21b   : > { %v2323_v27 = vadd.f32 %v2322_v31, %v2304_v37  ;;  %v2349_v7 = vmul.f32 %v2304_v37, %v2304_v37  ;;  %2397 = vst [vmem:[%s3454_s12 + $0x78] sm:$0xff] %v2304_v37  ;;  %v1958_v15 = vadd.f32 %v1932_v3, %v1709_v59 }
 0x21c   : > { %v1688_v60 = vpop.f32.mrf.mxu2 }
 0x21d   : > { %v2368_v43 = vadd.f32 %v2367_v26, %v2349_v7  ;;  %v2141_v5 = vadd.f32 %v2115_v8, %v1958_v15  ;;  %v2117_v12 = vpop.f32.mrf.mxu0 }
 0x21e   : > { %v1461_v39 = vpop.f32.mrf.mxu1  ;;  %v1937_v33 = vpop.f32.mrf.mxu3 }
 0x21f   : > { %v2165_v16 = vadd.f32 %v4046_v36, %v2141_v5  ;;  %v1486_v61 = vadd.f32 %v1461_v39, %v4020_v2 }
 0x221   : > { %v2305_v38 = vmul.f32 %v2272_v22, %v2165_v16  ;;  %v1710_v29 = vadd.f32 %v1685_v32, %v1486_v61 }
 0x223   : > { %v2324_v46 = vadd.f32 %v2323_v27, %v2305_v38  ;;  %v2350_v10 = vmul.f32 %v2305_v38, %v2305_v38  ;;  %2398 = vst [vmem:[%s3454_s12 + $0x80] sm:$0xff] %v2305_v38  ;;  %v1959_v40 = vadd.f32 %v1934_v34, %v1710_v29 }
 0x224   : > { %v1690_v48 = vpop.f32.mrf.mxu2 }
 0x225   : > { %v2369_v52 = vadd.f32 %v2368_v43, %v2350_v10  ;;  %v2142_v18 = vadd.f32 %v2117_v12, %v1959_v40  ;;  %v2120_v51 = vpop.f32.mrf.mxu0 }
 0x226   : > { %v1464_v14 = vpop.f32.mrf.mxu1  ;;  %v1939_v1 = vpop.f32.mrf.mxu3 }
 0x227   : > { %v2166_v58 = vadd.f32 %v4046_v36, %v2142_v18  ;;  %v1487_v21 = vadd.f32 %v1464_v14, %v4029_v6 }
 0x229   : > { %v2306_v2 = vmul.f32 %v2277_v19, %v2166_v58  ;;  %v1711_v28 = vadd.f32 %v1688_v60, %v1487_v21 }
 0x22b   : > { %v2325_v24 = vadd.f32 %v2324_v46, %v2306_v2  ;;  %v2351_v35 = vmul.f32 %v2306_v2, %v2306_v2  ;;  %2399 = vst [vmem:[%s3454_s12 + $0x88] sm:$0xff] %v2306_v2  ;;  %v1960_v4 = vadd.f32 %v1937_v33, %v1711_v28 }
 0x22d   : > { %v2370_v17 = vadd.f32 %v2369_v52, %v2351_v35  ;;  %v2143_v57 = vadd.f32 %v2120_v51, %v1960_v4  ;;  %v2122_v13 = vpop.f32.mrf.mxu0 }
 0x22e   : > { %v1466_v63 = vpop.f32.mrf.mxu1 }
 0x22f   : > { %v2167_v23 = vadd.f32 %v4046_v36, %v2143_v57  ;;  %v1488_v9 = vadd.f32 %v1466_v63, %v4037_v53 }
 0x231   : > { %v2307_v6 = vmul.f32 %v2282_v47, %v2167_v23  ;;  %v1712_v44 = vadd.f32 %v1690_v48, %v1488_v9 }
 0x233   : > { %v2326_v41 = vadd.f32 %v2325_v24, %v2307_v6  ;;  %v2352_v50 = vmul.f32 %v2307_v6, %v2307_v6  ;;  %2400 = vst [vmem:[%s3454_s12 + $0x90] sm:$0xff] %v2307_v6  ;;  %v1961_v0 = vadd.f32 %v1939_v1, %v1712_v44 }
 0x235   : > { %v2371_v30 = vadd.f32 %v2370_v17, %v2352_v50  ;;  %v2144_v25 = vadd.f32 %v2122_v13, %v1961_v0 }
 0x237   : > { %v2168_v54 = vadd.f32 %v4046_v36, %v2144_v25 }
 0x239   : > { %v2308_v31 = vmul.f32 %v2287_v56, %v2168_v54 }
 0x23b   : > { %v2327_v42 = vadd.f32 %v2326_v41, %v2308_v31  ;;  %v2353_v62 = vmul.f32 %v2308_v31, %v2308_v31  ;;  %2401 = vst [vmem:[%s3454_s12 + $0x98] sm:$0xff] %v2308_v31 }
 0x23d   : > { %v2328_v53 = vrot.slane %v2327_v42, 4  ;;  %v2372_v3 = vadd.f32 %v2371_v30, %v2353_v62 }
 0x23f   : > { %v2329_v26 = vadd.f32 %v2328_v53, %v2327_v42  ;;  %v2373_v49 = vrot.slane %v2372_v3, 4 }
 0x241   : > { %v2330_v55 = vrot.slane %v2329_v26, 2  ;;  %v2374_v8 = vadd.f32 %v2373_v49, %v2372_v3 }
 0x243   : > { %v2331_v45 = vadd.f32 %v2330_v55, %v2329_v26  ;;  %v2375_v11 = vrot.slane %v2374_v8, 2 }
 0x245   : > { %v2332_v20 = vrot.slane %v2331_v45, 1  ;;  %v2376_v37 = vadd.f32 %v2375_v11, %v2374_v8 }
 0x247   : > { %v2377_v59 = vrot.slane %v2376_v37, 1  ;;  %v2333_v27 = vadd.f32 %v2332_v20, %v2331_v45 }
 0x249   : > { %v2378_v36 = vadd.f32 %v2377_v59, %v2376_v37 }
 0x24b   : > { %v2380_v7 = vsel %vm2379_vm2, %v2333_v27, %v2378_v36 }
 0x24c   : > { %2381 = vst [vmem:[%s3459_s16] sm:$0x3] %v2380_v7 }
 0x24d PF: > { %s16_s22 = sadd.s32 1, %s3383_s22   ;;  %s4132_s12 = sld [smem:[#allocation6_spill]] }
 0x24e   : > { %p13_p8 = scmp.ge.s32.totalorder %s16_s22, 6   ;;  %s4133_s18 = smov %s3375_s20 }
 0x24f   : > { %s4134_s19 = smov %s3379_s21  ;;  %s4135_s20 = smov %s4138_s23 }
 0x250   :  { %15 = sbr.rel (!%p13_p8) target bundleno = 3 (0x3), region = 103 }
 0x253   : > { %s4136_s21 = smov %s4132_s12 }
 0x255   :  { %2454 = vsyncmov [#allocation3] }
 0x258   :  { %s2455_s16 = vpop.sfrf %2454 }
 0x259   :  { %p3149_p9 = scmp.ne.s32.totalorder %s2455_s16, 0 }
 0x25b   :  { %2459 = shalt.err (%p3149_p9)  }

</bundles_post_ra>
